<compile_context>
chip_gen: v6e
topology: v6e:2x2x1
jax: 0.10.0
libtpu: 0.0.40
codegen_flags: <defaults>
</compile_context>

<pallas_src>
import functools

import jax
import jax.numpy as jnp
from jax.experimental import pallas as pl
from jax.experimental.pallas import tpu as pltpu


def _round_up(x, m):
    return (x + m - 1) // m * m


def _fused_resnet_kernel(p_ref, w0_ref, s0_ref, b0_ref,
                         w1_ref, s1_ref, b1_ref,
                         w2_ref, s2_ref, b2_ref,
                         o_ref, h_ref, z_ref, patch_ref,
                         *, W, F, bH, Ks, KP):
    """One row band: stem(conv-BN-ReLU) -> BasicBlock(conv-BN-ReLU, conv-BN, +id, ReLU)."""
    band = pl.program_id(1)
    last = pl.num_programs(1) - 1

    # ---- stem: one (bH+4)*W x Ks @ Ks x F matmul (patches pre-built in wrapper) ----
    p = p_ref[0].reshape((bH + 4) * W, Ks)                       # bf16
    acc0 = jnp.dot(p, w0_ref[...], preferred_element_type=jnp.float32)
    hval = jnp.maximum(acc0 * s0_ref[...] + b0_ref[...], 0.0)    # folded BN, f32
    h_ref[...] = hval.reshape(bH + 4, W, F)

    # Out-of-image halo rows must be exact zeros (they are blk1's conv padding).
    @pl.when(band == 0)
    def _():
        h_ref[0:2] = jnp.zeros((2, W, F), jnp.float32)

    @pl.when(band == last)
    def _():
        h_ref[bH + 2:bH + 4] = jnp.zeros((2, W, F), jnp.float32)

    # Zero only the K-pad slab; the 9 real tap slabs are fully overwritten below.
    if KP > 9 * F:
        patch_ref[:, :, 9 * F:] = jnp.zeros((bH + 2, W, KP - 9 * F), jnp.bfloat16)

    col = jax.lax.broadcasted_iota(jnp.int32, (1, W, F), 1)

    def im2col(src_ref, n_rows):
        # patch[r, w, t*F:(t+1)*F] = src[r + kh, w + kw - 1, :]   (0 where w+kw-1 OOB)
        for kh in range(3):
            rows = src_ref[kh:kh + n_rows]                       # aligned row slice, f32
            for kw in range(3):
                dw = kw - 1
                v = rows
                if dw != 0:
                    v = pltpu.roll(v, shift=(-dw) % W, axis=1)   # XLU sublane roll
                    v = jnp.where((col + dw >= 0) & (col + dw < W), v, 0.0)
                t = 3 * kh + kw
                # lane offset t*F is a multiple of 128 -> unmasked bf16 stores
                patch_ref[0:n_rows, :, t * F:(t + 1) * F] = v.astype(jnp.bfloat16)

    # ---- BasicBlock conv1: conv3x3 + BN + ReLU over band rows +/- 1 halo ----
    im2col(h_ref, bH + 2)
    p1 = patch_ref[...].reshape((bH + 2) * W, KP)
    acc1 = jnp.dot(p1, w1_ref[...], preferred_element_type=jnp.float32)
    zval = jnp.maximum(acc1 * s1_ref[...] + b1_ref[...], 0.0)
    z_ref[...] = zval.reshape(bH + 2, W, F)

    @pl.when(band == 0)
    def _():
        z_ref[0:1] = jnp.zeros((1, W, F), jnp.float32)

    @pl.when(band == last)
    def _():
        z_ref[bH + 1:bH + 2] = jnp.zeros((1, W, F), jnp.float32)

    # ---- BasicBlock conv2: conv3x3 + BN + identity skip + ReLU ----
    im2col(z_ref, bH)
    p2 = patch_ref[0:bH].reshape(bH * W, KP)
    acc2 = jnp.dot(p2, w2_ref[...], preferred_element_type=jnp.float32)
    y = acc2 * s2_ref[...] + b2_ref[...]
    y = y + h_ref[2:2 + bH].reshape(bH * W, F)                   # identity skip (f32)
    y = jnp.maximum(y, 0.0)
    o_ref[0] = y.reshape(bH, W, F).astype(o_ref.dtype)           # F=128: lane-dense store


def init_encoder_params(key, cin, n_features):
    """Deterministic synthetic parameters (conv weights + folded BN affine)."""
    ks = jax.random.split(key, 9)
    F = n_features

    def conv_w(k, ci, co):
        return 0.1 * jax.random.normal(k, (3, 3, ci, co), jnp.float32)

    def affine(k_s, k_b, co):
        scale = 1.0 + 0.05 * jax.random.normal(k_s, (1, co), jnp.float32)
        shift = 0.05 * jax.random.normal(k_b, (1, co), jnp.float32)
        return scale, shift

    params = {
        "stem_w": conv_w(ks[0], cin, F),
        "blk1_w": conv_w(ks[1], F, F),
        "blk2_w": conv_w(ks[2], F, F),
    }
    params["stem_scale"], params["stem_shift"] = affine(ks[3], ks[4], F)
    params["blk1_scale"], params["blk1_shift"] = affine(ks[5], ks[6], F)
    params["blk2_scale"], params["blk2_shift"] = affine(ks[7], ks[8], F)
    return params


def _pick_band_rows(H, W, F, Ks, KP, budget=40 << 20):
    """Largest divisor of H whose per-step VMEM stays under `budget` (v7x-safe)."""
    best = None
    for d in range(2, H + 1):
        if H % d:
            continue
        vmem = ((d + 2) * W * KP * 2           # bf16 im2col patches
                + (d + 4) * W * F * 4          # h scratch (f32)
                + (d + 2) * W * F * 4          # z scratch (f32)
                + 2 * (d + 4) * W * Ks * 2     # double-buffered stem-patch input
                + 2 * d * W * F * 4            # double-buffered output block
                + 2 * (Ks + 2 * KP) * F * 2)   # weights
        if vmem <= budget:
            best = d
    assert best is not None, "image too wide for the per-band VMEM budget"
    return best


@functools.partial(jax.jit, static_argnames=("band_rows",))
def encoder_forward(x_nchw, params, band_rows=None):
    """Equivalent of Encoder.forward for the 'resnet' model_type.

    Returns (features, hiddens): features NHWC (B, H, W, n_features), matching
    `features.permute(0, 2, 3, 1)`; hiddens = [] (empty tuple).
    """
    x = jnp.transpose(x_nchw, (0, 2, 3, 1)).astype(jnp.float32)    # NCHW -> NHWC
    B, H, W, Cin = x.shape
    F = params["stem_w"].shape[-1]
    assert F % 128 == 0 and W % 8 == 0, (F, W)

    Ks = _round_up(9 * Cin, 128)       # stem im2col K, lane/MXU aligned
    KP = _round_up(9 * F, 256)         # block im2col K, padded for 256-deep MXU

    bH = band_rows if band_rows is not None else _pick_band_rows(H, W, F, Ks, KP)
    assert bH >= 2 and H % bH == 0, (H, bH)
    nb = H // bH

    # ---- stem im2col in XLA (Cin=4 tap slabs would be 4/128-lane masked
    #      stores in-kernel); zero-padded K, cast to bf16 ----
    xp = jnp.pad(x, ((0, 0), (1, 1), (1, 1), (0, 0)))
    taps = [xp[:, kh:kh + H, kw:kw + W, :] for kh in range(3) for kw in range(3)]
    p = jnp.concatenate(taps, axis=-1)                              # (B, H, W, 9*Cin)
    p = jnp.pad(p, ((0, 0), (0, 0), (0, 0), (0, Ks - 9 * Cin))).astype(jnp.bfloat16)
    # Pre-halo per band: rows [n*bH - 2, n*bH + bH + 2), zeros outside the image.
    pp = jnp.pad(p, ((0, 0), (2, 2), (0, 0), (0, 0)))               # (B, H+4, W, Ks)
    p_bands = jnp.stack([pp[:, n * bH:n * bH + bH + 4] for n in range(nb)],
                        axis=1).reshape(B * nb, bH + 4, W, Ks)

    # Weights: reshape for im2col matmul, zero-pad K, cast to bf16.
    w0 = jnp.pad(params["stem_w"].reshape(9 * Cin, F),
                 ((0, Ks - 9 * Cin), (0, 0))).astype(jnp.bfloat16)
    w1 = jnp.pad(params["blk1_w"].reshape(9 * F, F),
                 ((0, KP - 9 * F), (0, 0))).astype(jnp.bfloat16)
    w2 = jnp.pad(params["blk2_w"].reshape(9 * F, F),
                 ((0, KP - 9 * F), (0, 0))).astype(jnp.bfloat16)

    kernel = functools.partial(_fused_resnet_kernel, W=W, F=F, bH=bH, Ks=Ks, KP=KP)
    const2 = lambda b, n: (0, 0)       # grid-invariant VMEM residents

    feats = pl.pallas_call(
        kernel,
        out_shape=jax.ShapeDtypeStruct((B, H, W, F), jnp.float32),
        grid=(B, nb),
        in_specs=[
            pl.BlockSpec((1, bH + 4, W, Ks), lambda b, n: (b * nb + n, 0, 0, 0)),
            pl.BlockSpec((Ks, F), const2),     # stem weights (bf16)
            pl.BlockSpec((1, F), const2),      # stem BN scale
            pl.BlockSpec((1, F), const2),      # stem BN shift
            pl.BlockSpec((KP, F), const2),     # blk1 weights (bf16, K-padded)
            pl.BlockSpec((1, F), const2),
            pl.BlockSpec((1, F), const2),
            pl.BlockSpec((KP, F), const2),     # blk2 weights (bf16, K-padded)
            pl.BlockSpec((1, F), const2),
            pl.BlockSpec((1, F), const2),
        ],
        out_specs=pl.BlockSpec((1, bH, W, F), lambda b, n: (b, n, 0, 0)),
        scratch_shapes=[
            pltpu.VMEM((bH + 4, W, F), jnp.float32),      # h (stem out / residual)
            pltpu.VMEM((bH + 2, W, F), jnp.float32),      # z (blk1 out)
            pltpu.VMEM((bH + 2, W, KP), jnp.bfloat16),    # shared im2col patches
        ],
        compiler_params=pltpu.CompilerParams(
            dimension_semantics=("parallel", "parallel"),
            vmem_limit_bytes=48 * 1024 * 1024),           # within v7x's 64 MiB physical
    )(p_bands, w0, params["stem_scale"], params["stem_shift"],
      w1, params["blk1_scale"], params["blk1_shift"],
      w2, params["blk2_scale"], params["blk2_shift"])

    hiddens = ()   # CNN branch: hiddens = []
    return feats, hiddens


# ----------------------------- plain-XLA reference --------------------------
def _conv_bn_ref(x, w, scale, shift, residual=None, relu=True):
    y = jax.lax.conv_general_dilated(
        x, w, window_strides=(1, 1), padding="SAME",
        dimension_numbers=("NHWC", "HWIO", "NHWC"),
        precision=jax.lax.Precision.HIGHEST)
    y = y * scale.reshape(1, 1, 1, -1) + shift.reshape(1, 1, 1, -1)
    if residual is not None:
        y = y + residual
    if relu:
        y = jnp.maximum(y, 0.0)
    return y


def encoder_reference(x_nchw, params):
    x = jnp.transpose(x_nchw, (0, 2, 3, 1)).astype(jnp.float32)
    h = _conv_bn_ref(x, params["stem_w"], params["stem_scale"],
                     params["stem_shift"])
    b1 = _conv_bn_ref(h, params["blk1_w"], params["blk1_scale"],
                      params["blk1_shift"])
    y = _conv_bn_ref(b1, params["blk2_w"], params["blk2_scale"],
                     params["blk2_shift"], residual=h)
    return y, ()


if __name__ == "__main__":
    B, Cin, H, W = 2, 4, 16, 16
    N_FEATURES = 128   # lane-width-aligned synthetic feature count (real resnets: >=512)

    key = jax.random.PRNGKey(0)
    k_x, k_p = jax.random.split(key)
    x = jax.random.normal(k_x, (B, Cin, H, W), jnp.float32)   # NCHW like PyTorch
    params = init_encoder_params(k_p, Cin, N_FEATURES)

    # band_rows=8 -> 2 row bands: exercises the halo / band-tiling path at toy size.
    features, hiddens = encoder_forward(x, params, band_rows=8)
    features = jax.block_until_ready(features)

    assert features.shape == (B, H, W, N_FEATURES), features.shape
    assert features.dtype == jnp.float32
    assert len(hiddens) == 0

    # Correctness vs a plain-XLA f32 reference.  Matmuls run bf16-in / f32-acc
    # on the MXU (3 stacked conv layers, K up to 1280) -> loose tolerance.
    ref, _ = encoder_reference(x, params)
    max_err = float(jnp.max(jnp.abs(features - ref)))
    assert bool(jnp.allclose(features, ref, rtol=0.1, atol=0.3)), max_err

    print("KERNEL_OK")
</pallas_src>

<mosaic_0001>
module attributes {stable_mosaic.version = 11 : i64} {
  func.func @_fused_resnet_kernel(%arg0: i32, %arg1: i32, %arg2: memref<1x12x16x128xbf16, #tpu.memory_space<vmem>>, %arg3: memref<128x128xbf16, #tpu.memory_space<vmem>>, %arg4: memref<1x128xf32, #tpu.memory_space<vmem>>, %arg5: memref<1x128xf32, #tpu.memory_space<vmem>>, %arg6: memref<1280x128xbf16, #tpu.memory_space<vmem>>, %arg7: memref<1x128xf32, #tpu.memory_space<vmem>>, %arg8: memref<1x128xf32, #tpu.memory_space<vmem>>, %arg9: memref<1280x128xbf16, #tpu.memory_space<vmem>>, %arg10: memref<1x128xf32, #tpu.memory_space<vmem>>, %arg11: memref<1x128xf32, #tpu.memory_space<vmem>>, %arg12: memref<1x8x16x128xf32, #tpu.memory_space<vmem>>, %arg13: memref<12x16x128xf32, #tpu.memory_space<vmem>>, %arg14: memref<10x16x128xf32, #tpu.memory_space<vmem>>, %arg15: memref<10x16x1280xbf16, #tpu.memory_space<vmem>>) attributes {dimension_semantics = [#tpu.dimension_semantics<parallel>, #tpu.dimension_semantics<parallel>], iteration_bounds = array<i64: 2, 2>, scalar_prefetch = 0 : i64, scratch_operands = 3 : i64, tpu.core_type = #tpu.core_type<tc>, window_params = [{transform_indices = @transform_0, window_bounds = array<i64: 1, 12, 16, 128>}, {pipeline_mode = #tpu.pipeline_mode<synchronous>, transform_indices = @transform_1, window_bounds = array<i64: 128, 128>}, {pipeline_mode = #tpu.pipeline_mode<synchronous>, transform_indices = @transform_2, window_bounds = array<i64: 1, 128>}, {pipeline_mode = #tpu.pipeline_mode<synchronous>, transform_indices = @transform_3, window_bounds = array<i64: 1, 128>}, {pipeline_mode = #tpu.pipeline_mode<synchronous>, transform_indices = @transform_4, window_bounds = array<i64: 1280, 128>}, {pipeline_mode = #tpu.pipeline_mode<synchronous>, transform_indices = @transform_5, window_bounds = array<i64: 1, 128>}, {pipeline_mode = #tpu.pipeline_mode<synchronous>, transform_indices = @transform_6, window_bounds = array<i64: 1, 128>}, {pipeline_mode = #tpu.pipeline_mode<synchronous>, transform_indices = @transform_7, window_bounds = array<i64: 1280, 128>}, {pipeline_mode = #tpu.pipeline_mode<synchronous>, transform_indices = @transform_8, window_bounds = array<i64: 1, 128>}, {pipeline_mode = #tpu.pipeline_mode<synchronous>, transform_indices = @transform_9, window_bounds = array<i64: 1, 128>}, {transform_indices = @transform_10, window_bounds = array<i64: 1, 8, 16, 128>}]} {
    %c0 = arith.constant 0 : index
    %c0_0 = arith.constant 0 : index
    %c0_1 = arith.constant 0 : index
    %c0_2 = arith.constant 0 : index
    %0 = vector.load %arg2[%c0, %c0_0, %c0_1, %c0_2] : memref<1x12x16x128xbf16, #tpu.memory_space<vmem>>, vector<1x12x16x128xbf16>
    %1 = vector.shape_cast %0 : vector<1x12x16x128xbf16> to vector<12x16x128xbf16>
    %2 = vector.shape_cast %1 : vector<12x16x128xbf16> to vector<192x128xbf16>
    %c0_3 = arith.constant 0 : index
    %c0_4 = arith.constant 0 : index
    %3 = vector.load %arg3[%c0_3, %c0_4] : memref<128x128xbf16, #tpu.memory_space<vmem>>, vector<128x128xbf16>
    %cst = arith.constant dense<0.000000e+00> : vector<192x128xf32>
    %4 = tpu.matmul %2, %3, %cst {dimension_numbers = #tpu.dot_dimension_numbers<[1], [0], [0], [1], [0, 0, 1, 1], [], []>} : vector<192x128xbf16>, vector<128x128xbf16>, vector<192x128xf32> -> vector<192x128xf32>
    %c0_5 = arith.constant 0 : index
    %c0_6 = arith.constant 0 : index
    %5 = vector.load %arg4[%c0_5, %c0_6] : memref<1x128xf32, #tpu.memory_space<vmem>>, vector<1x128xf32>
    %6 = vector.broadcast %5 : vector<1x128xf32> to vector<192x128xf32>
    %7 = arith.mulf %4, %6 : vector<192x128xf32>
    %c0_7 = arith.constant 0 : index
    %c0_8 = arith.constant 0 : index
    %8 = vector.load %arg5[%c0_7, %c0_8] : memref<1x128xf32, #tpu.memory_space<vmem>>, vector<1x128xf32>
    %9 = vector.broadcast %8 : vector<1x128xf32> to vector<192x128xf32>
    %10 = arith.addf %7, %9 : vector<192x128xf32>
    %cst_9 = arith.constant 0.000000e+00 : f32
    %11 = vector.broadcast %cst_9 : f32 to vector<192x128xf32>
    %12 = arith.maximumf %10, %11 : vector<192x128xf32>
    %13 = vector.shape_cast %12 : vector<192x128xf32> to vector<12x16x128xf32>
    %c0_10 = arith.constant 0 : index
    %c0_11 = arith.constant 0 : index
    %c0_12 = arith.constant 0 : index
    %14 = vector.load %arg13[%c0_10, %c0_11, %c0_12] : memref<12x16x128xf32, #tpu.memory_space<vmem>>, vector<12x16x128xf32>
    tpu.vector_store %arg13[%c0_10, %c0_11, %c0_12], %13 {strides = array<i32>} : memref<12x16x128xf32, #tpu.memory_space<vmem>>, vector<12x16x128xf32>,
    %c0_i32 = arith.constant 0 : i32
    %15 = arith.cmpi eq, %arg1, %c0_i32 : i32
    %16 = arith.extui %15 : i1 to i32
    %c0_i32_13 = arith.constant 0 : i32
    %17 = arith.cmpi ne, %16, %c0_i32_13 : i32
    scf.if %17 {
      %cst_185 = arith.constant 0.000000e+00 : f32
      %273 = vector.broadcast %cst_185 : f32 to vector<2x16x128xf32>
      %c0_186 = arith.constant 0 : index
      %c0_187 = arith.constant 0 : index
      %c0_188 = arith.constant 0 : index
      %274 = vector.load %arg13[%c0_186, %c0_187, %c0_188] : memref<12x16x128xf32, #tpu.memory_space<vmem>>, vector<2x16x128xf32>
      tpu.vector_store %arg13[%c0_186, %c0_187, %c0_188], %273 {strides = array<i32>} : memref<12x16x128xf32, #tpu.memory_space<vmem>>, vector<2x16x128xf32>,
    } else {
    }
    %c1_i32 = arith.constant 1 : i32
    %18 = arith.cmpi eq, %arg1, %c1_i32 : i32
    %19 = arith.extui %18 : i1 to i32
    %c0_i32_14 = arith.constant 0 : i32
    %20 = arith.cmpi ne, %19, %c0_i32_14 : i32
    scf.if %20 {
      %cst_185 = arith.constant 0.000000e+00 : f32
      %273 = vector.broadcast %cst_185 : f32 to vector<2x16x128xf32>
      %c10 = arith.constant 10 : index
      %c0_186 = arith.constant 0 : index
      %c0_187 = arith.constant 0 : index
      %274 = vector.load %arg13[%c10, %c0_186, %c0_187] : memref<12x16x128xf32, #tpu.memory_space<vmem>>, vector<2x16x128xf32>
      tpu.vector_store %arg13[%c10, %c0_186, %c0_187], %273 {strides = array<i32>} : memref<12x16x128xf32, #tpu.memory_space<vmem>>, vector<2x16x128xf32>,
    } else {
    }
    %cst_15 = arith.constant 0.000000e+00 : bf16
    %21 = vector.broadcast %cst_15 : bf16 to vector<10x16x128xbf16>
    %c0_16 = arith.constant 0 : index
    %c0_17 = arith.constant 0 : index
    %c1152 = arith.constant 1152 : index
    %22 = vector.load %arg15[%c0_16, %c0_17, %c1152] : memref<10x16x1280xbf16, #tpu.memory_space<vmem>>, vector<10x16x128xbf16>
    tpu.vector_store %arg15[%c0_16, %c0_17, %c1152], %21 {strides = array<i32>} : memref<10x16x1280xbf16, #tpu.memory_space<vmem>>, vector<10x16x128xbf16>,
    %23 = tpu.iota {dimensions = array<i32: 1>} : vector<1x16x128xi32>
    %c0_18 = arith.constant 0 : index
    %c0_19 = arith.constant 0 : index
    %c0_20 = arith.constant 0 : index
    %24 = vector.load %arg13[%c0_18, %c0_19, %c0_20] : memref<12x16x128xf32, #tpu.memory_space<vmem>>, vector<10x16x128xf32>
    %c1_i32_21 = arith.constant 1 : i32
    %25 = tpu.dynamic_rotate %24 by %c1_i32_21 dim 1 : vector<10x16x128xf32>, i32 -> vector<10x16x128xf32>
    %c-1_i32 = arith.constant -1 : i32
    %26 = vector.broadcast %c-1_i32 : i32 to vector<1x16x128xi32>
    %27 = arith.addi %23, %26 : vector<1x16x128xi32>
    %c0_i32_22 = arith.constant 0 : i32
    %28 = vector.broadcast %c0_i32_22 : i32 to vector<1x16x128xi32>
    %29 = arith.cmpi sge, %27, %28 : vector<1x16x128xi32>
    %c-1_i32_23 = arith.constant -1 : i32
    %30 = vector.broadcast %c-1_i32_23 : i32 to vector<1x16x128xi32>
    %31 = arith.addi %23, %30 : vector<1x16x128xi32>
    %c16_i32 = arith.constant 16 : i32
    %32 = vector.broadcast %c16_i32 : i32 to vector<1x16x128xi32>
    %33 = arith.cmpi slt, %31, %32 : vector<1x16x128xi32>
    %34 = arith.andi %29, %33 : vector<1x16x128xi1>
    %cst_24 = arith.constant 0.000000e+00 : f32
    %35 = vector.shape_cast %34 : vector<1x16x128xi1> to vector<1x16x128xi1>
    %36 = vector.broadcast %35 : vector<1x16x128xi1> to vector<10x16x128xi1>
    %37 = vector.broadcast %cst_24 : f32 to vector<10x16x128xf32>
    %38 = arith.select %36, %25, %37 : vector<10x16x128xi1>, vector<10x16x128xf32>
    %39 = arith.truncf %38 : vector<10x16x128xf32> to vector<10x16x128xbf16>
    %c0_25 = arith.constant 0 : index
    %c0_26 = arith.constant 0 : index
    %c0_27 = arith.constant 0 : index
    %40 = vector.load %arg15[%c0_25, %c0_26, %c0_27] : memref<10x16x1280xbf16, #tpu.memory_space<vmem>>, vector<10x16x128xbf16>
    tpu.vector_store %arg15[%c0_25, %c0_26, %c0_27], %39 {strides = array<i32>} : memref<10x16x1280xbf16, #tpu.memory_space<vmem>>, vector<10x16x128xbf16>,
    %41 = arith.truncf %24 : vector<10x16x128xf32> to vector<10x16x128xbf16>
    %c0_28 = arith.constant 0 : index
    %c0_29 = arith.constant 0 : index
    %c128 = arith.constant 128 : index
    %42 = vector.load %arg15[%c0_28, %c0_29, %c128] : memref<10x16x1280xbf16, #tpu.memory_space<vmem>>, vector<10x16x128xbf16>
    tpu.vector_store %arg15[%c0_28, %c0_29, %c128], %41 {strides = array<i32>} : memref<10x16x1280xbf16, #tpu.memory_space<vmem>>, vector<10x16x128xbf16>,
    %c15_i32 = arith.constant 15 : i32
    %43 = tpu.dynamic_rotate %24 by %c15_i32 dim 1 : vector<10x16x128xf32>, i32 -> vector<10x16x128xf32>
    %c1_i32_30 = arith.constant 1 : i32
    %44 = vector.broadcast %c1_i32_30 : i32 to vector<1x16x128xi32>
    %45 = arith.addi %23, %44 : vector<1x16x128xi32>
    %c0_i32_31 = arith.constant 0 : i32
    %46 = vector.broadcast %c0_i32_31 : i32 to vector<1x16x128xi32>
    %47 = arith.cmpi sge, %45, %46 : vector<1x16x128xi32>
    %c1_i32_32 = arith.constant 1 : i32
    %48 = vector.broadcast %c1_i32_32 : i32 to vector<1x16x128xi32>
    %49 = arith.addi %23, %48 : vector<1x16x128xi32>
    %c16_i32_33 = arith.constant 16 : i32
    %50 = vector.broadcast %c16_i32_33 : i32 to vector<1x16x128xi32>
    %51 = arith.cmpi slt, %49, %50 : vector<1x16x128xi32>
    %52 = arith.andi %47, %51 : vector<1x16x128xi1>
    %cst_34 = arith.constant 0.000000e+00 : f32
    %53 = vector.shape_cast %52 : vector<1x16x128xi1> to vector<1x16x128xi1>
    %54 = vector.broadcast %53 : vector<1x16x128xi1> to vector<10x16x128xi1>
    %55 = vector.broadcast %cst_34 : f32 to vector<10x16x128xf32>
    %56 = arith.select %54, %43, %55 : vector<10x16x128xi1>, vector<10x16x128xf32>
    %57 = arith.truncf %56 : vector<10x16x128xf32> to vector<10x16x128xbf16>
    %c0_35 = arith.constant 0 : index
    %c0_36 = arith.constant 0 : index
    %c256 = arith.constant 256 : index
    %58 = vector.load %arg15[%c0_35, %c0_36, %c256] : memref<10x16x1280xbf16, #tpu.memory_space<vmem>>, vector<10x16x128xbf16>
    tpu.vector_store %arg15[%c0_35, %c0_36, %c256], %57 {strides = array<i32>} : memref<10x16x1280xbf16, #tpu.memory_space<vmem>>, vector<10x16x128xbf16>,
    %c1 = arith.constant 1 : index
    %c0_37 = arith.constant 0 : index
    %c0_38 = arith.constant 0 : index
    %59 = vector.load %arg13[%c1, %c0_37, %c0_38] : memref<12x16x128xf32, #tpu.memory_space<vmem>>, vector<10x16x128xf32>
    %c1_i32_39 = arith.constant 1 : i32
    %60 = tpu.dynamic_rotate %59 by %c1_i32_39 dim 1 : vector<10x16x128xf32>, i32 -> vector<10x16x128xf32>
    %c-1_i32_40 = arith.constant -1 : i32
    %61 = vector.broadcast %c-1_i32_40 : i32 to vector<1x16x128xi32>
    %62 = arith.addi %23, %61 : vector<1x16x128xi32>
    %c0_i32_41 = arith.constant 0 : i32
    %63 = vector.broadcast %c0_i32_41 : i32 to vector<1x16x128xi32>
    %64 = arith.cmpi sge, %62, %63 : vector<1x16x128xi32>
    %c-1_i32_42 = arith.constant -1 : i32
    %65 = vector.broadcast %c-1_i32_42 : i32 to vector<1x16x128xi32>
    %66 = arith.addi %23, %65 : vector<1x16x128xi32>
    %c16_i32_43 = arith.constant 16 : i32
    %67 = vector.broadcast %c16_i32_43 : i32 to vector<1x16x128xi32>
    %68 = arith.cmpi slt, %66, %67 : vector<1x16x128xi32>
    %69 = arith.andi %64, %68 : vector<1x16x128xi1>
    %cst_44 = arith.constant 0.000000e+00 : f32
    %70 = vector.shape_cast %69 : vector<1x16x128xi1> to vector<1x16x128xi1>
    %71 = vector.broadcast %70 : vector<1x16x128xi1> to vector<10x16x128xi1>
    %72 = vector.broadcast %cst_44 : f32 to vector<10x16x128xf32>
    %73 = arith.select %71, %60, %72 : vector<10x16x128xi1>, vector<10x16x128xf32>
    %74 = arith.truncf %73 : vector<10x16x128xf32> to vector<10x16x128xbf16>
    %c0_45 = arith.constant 0 : index
    %c0_46 = arith.constant 0 : index
    %c384 = arith.constant 384 : index
    %75 = vector.load %arg15[%c0_45, %c0_46, %c384] : memref<10x16x1280xbf16, #tpu.memory_space<vmem>>, vector<10x16x128xbf16>
    tpu.vector_store %arg15[%c0_45, %c0_46, %c384], %74 {strides = array<i32>} : memref<10x16x1280xbf16, #tpu.memory_space<vmem>>, vector<10x16x128xbf16>,
    %76 = arith.truncf %59 : vector<10x16x128xf32> to vector<10x16x128xbf16>
    %c0_47 = arith.constant 0 : index
    %c0_48 = arith.constant 0 : index
    %c512 = arith.constant 512 : index
    %77 = vector.load %arg15[%c0_47, %c0_48, %c512] : memref<10x16x1280xbf16, #tpu.memory_space<vmem>>, vector<10x16x128xbf16>
    tpu.vector_store %arg15[%c0_47, %c0_48, %c512], %76 {strides = array<i32>} : memref<10x16x1280xbf16, #tpu.memory_space<vmem>>, vector<10x16x128xbf16>,
    %c15_i32_49 = arith.constant 15 : i32
    %78 = tpu.dynamic_rotate %59 by %c15_i32_49 dim 1 : vector<10x16x128xf32>, i32 -> vector<10x16x128xf32>
    %c1_i32_50 = arith.constant 1 : i32
    %79 = vector.broadcast %c1_i32_50 : i32 to vector<1x16x128xi32>
    %80 = arith.addi %23, %79 : vector<1x16x128xi32>
    %c0_i32_51 = arith.constant 0 : i32
    %81 = vector.broadcast %c0_i32_51 : i32 to vector<1x16x128xi32>
    %82 = arith.cmpi sge, %80, %81 : vector<1x16x128xi32>
    %c1_i32_52 = arith.constant 1 : i32
    %83 = vector.broadcast %c1_i32_52 : i32 to vector<1x16x128xi32>
    %84 = arith.addi %23, %83 : vector<1x16x128xi32>
    %c16_i32_53 = arith.constant 16 : i32
    %85 = vector.broadcast %c16_i32_53 : i32 to vector<1x16x128xi32>
    %86 = arith.cmpi slt, %84, %85 : vector<1x16x128xi32>
    %87 = arith.andi %82, %86 : vector<1x16x128xi1>
    %cst_54 = arith.constant 0.000000e+00 : f32
    %88 = vector.shape_cast %87 : vector<1x16x128xi1> to vector<1x16x128xi1>
    %89 = vector.broadcast %88 : vector<1x16x128xi1> to vector<10x16x128xi1>
    %90 = vector.broadcast %cst_54 : f32 to vector<10x16x128xf32>
    %91 = arith.select %89, %78, %90 : vector<10x16x128xi1>, vector<10x16x128xf32>
    %92 = arith.truncf %91 : vector<10x16x128xf32> to vector<10x16x128xbf16>
    %c0_55 = arith.constant 0 : index
    %c0_56 = arith.constant 0 : index
    %c640 = arith.constant 640 : index
    %93 = vector.load %arg15[%c0_55, %c0_56, %c640] : memref<10x16x1280xbf16, #tpu.memory_space<vmem>>, vector<10x16x128xbf16>
    tpu.vector_store %arg15[%c0_55, %c0_56, %c640], %92 {strides = array<i32>} : memref<10x16x1280xbf16, #tpu.memory_space<vmem>>, vector<10x16x128xbf16>,
    %c2 = arith.constant 2 : index
    %c0_57 = arith.constant 0 : index
    %c0_58 = arith.constant 0 : index
    %94 = vector.load %arg13[%c2, %c0_57, %c0_58] : memref<12x16x128xf32, #tpu.memory_space<vmem>>, vector<10x16x128xf32>
    %c1_i32_59 = arith.constant 1 : i32
    %95 = tpu.dynamic_rotate %94 by %c1_i32_59 dim 1 : vector<10x16x128xf32>, i32 -> vector<10x16x128xf32>
    %c-1_i32_60 = arith.constant -1 : i32
    %96 = vector.broadcast %c-1_i32_60 : i32 to vector<1x16x128xi32>
    %97 = arith.addi %23, %96 : vector<1x16x128xi32>
    %c0_i32_61 = arith.constant 0 : i32
    %98 = vector.broadcast %c0_i32_61 : i32 to vector<1x16x128xi32>
    %99 = arith.cmpi sge, %97, %98 : vector<1x16x128xi32>
    %c-1_i32_62 = arith.constant -1 : i32
    %100 = vector.broadcast %c-1_i32_62 : i32 to vector<1x16x128xi32>
    %101 = arith.addi %23, %100 : vector<1x16x128xi32>
    %c16_i32_63 = arith.constant 16 : i32
    %102 = vector.broadcast %c16_i32_63 : i32 to vector<1x16x128xi32>
    %103 = arith.cmpi slt, %101, %102 : vector<1x16x128xi32>
    %104 = arith.andi %99, %103 : vector<1x16x128xi1>
    %cst_64 = arith.constant 0.000000e+00 : f32
    %105 = vector.shape_cast %104 : vector<1x16x128xi1> to vector<1x16x128xi1>
    %106 = vector.broadcast %105 : vector<1x16x128xi1> to vector<10x16x128xi1>
    %107 = vector.broadcast %cst_64 : f32 to vector<10x16x128xf32>
    %108 = arith.select %106, %95, %107 : vector<10x16x128xi1>, vector<10x16x128xf32>
    %109 = arith.truncf %108 : vector<10x16x128xf32> to vector<10x16x128xbf16>
    %c0_65 = arith.constant 0 : index
    %c0_66 = arith.constant 0 : index
    %c768 = arith.constant 768 : index
    %110 = vector.load %arg15[%c0_65, %c0_66, %c768] : memref<10x16x1280xbf16, #tpu.memory_space<vmem>>, vector<10x16x128xbf16>
    tpu.vector_store %arg15[%c0_65, %c0_66, %c768], %109 {strides = array<i32>} : memref<10x16x1280xbf16, #tpu.memory_space<vmem>>, vector<10x16x128xbf16>,
    %111 = arith.truncf %94 : vector<10x16x128xf32> to vector<10x16x128xbf16>
    %c0_67 = arith.constant 0 : index
    %c0_68 = arith.constant 0 : index
    %c896 = arith.constant 896 : index
    %112 = vector.load %arg15[%c0_67, %c0_68, %c896] : memref<10x16x1280xbf16, #tpu.memory_space<vmem>>, vector<10x16x128xbf16>
    tpu.vector_store %arg15[%c0_67, %c0_68, %c896], %111 {strides = array<i32>} : memref<10x16x1280xbf16, #tpu.memory_space<vmem>>, vector<10x16x128xbf16>,
    %c15_i32_69 = arith.constant 15 : i32
    %113 = tpu.dynamic_rotate %94 by %c15_i32_69 dim 1 : vector<10x16x128xf32>, i32 -> vector<10x16x128xf32>
    %c1_i32_70 = arith.constant 1 : i32
    %114 = vector.broadcast %c1_i32_70 : i32 to vector<1x16x128xi32>
    %115 = arith.addi %23, %114 : vector<1x16x128xi32>
    %c0_i32_71 = arith.constant 0 : i32
    %116 = vector.broadcast %c0_i32_71 : i32 to vector<1x16x128xi32>
    %117 = arith.cmpi sge, %115, %116 : vector<1x16x128xi32>
    %c1_i32_72 = arith.constant 1 : i32
    %118 = vector.broadcast %c1_i32_72 : i32 to vector<1x16x128xi32>
    %119 = arith.addi %23, %118 : vector<1x16x128xi32>
    %c16_i32_73 = arith.constant 16 : i32
    %120 = vector.broadcast %c16_i32_73 : i32 to vector<1x16x128xi32>
    %121 = arith.cmpi slt, %119, %120 : vector<1x16x128xi32>
    %122 = arith.andi %117, %121 : vector<1x16x128xi1>
    %cst_74 = arith.constant 0.000000e+00 : f32
    %123 = vector.shape_cast %122 : vector<1x16x128xi1> to vector<1x16x128xi1>
    %124 = vector.broadcast %123 : vector<1x16x128xi1> to vector<10x16x128xi1>
    %125 = vector.broadcast %cst_74 : f32 to vector<10x16x128xf32>
    %126 = arith.select %124, %113, %125 : vector<10x16x128xi1>, vector<10x16x128xf32>
    %127 = arith.truncf %126 : vector<10x16x128xf32> to vector<10x16x128xbf16>
    %c0_75 = arith.constant 0 : index
    %c0_76 = arith.constant 0 : index
    %c1024 = arith.constant 1024 : index
    %128 = vector.load %arg15[%c0_75, %c0_76, %c1024] : memref<10x16x1280xbf16, #tpu.memory_space<vmem>>, vector<10x16x128xbf16>
    tpu.vector_store %arg15[%c0_75, %c0_76, %c1024], %127 {strides = array<i32>} : memref<10x16x1280xbf16, #tpu.memory_space<vmem>>, vector<10x16x128xbf16>,
    %c0_77 = arith.constant 0 : index
    %c0_78 = arith.constant 0 : index
    %c0_79 = arith.constant 0 : index
    %129 = vector.load %arg15[%c0_77, %c0_78, %c0_79] : memref<10x16x1280xbf16, #tpu.memory_space<vmem>>, vector<10x16x1280xbf16>
    %130 = vector.shape_cast %129 : vector<10x16x1280xbf16> to vector<160x1280xbf16>
    %c0_80 = arith.constant 0 : index
    %c0_81 = arith.constant 0 : index
    %131 = vector.load %arg6[%c0_80, %c0_81] : memref<1280x128xbf16, #tpu.memory_space<vmem>>, vector<1280x128xbf16>
    %cst_82 = arith.constant dense<0.000000e+00> : vector<160x128xf32>
    %132 = tpu.matmul %130, %131, %cst_82 {dimension_numbers = #tpu.dot_dimension_numbers<[1], [0], [0], [1], [0, 0, 1, 1], [], []>} : vector<160x1280xbf16>, vector<1280x128xbf16>, vector<160x128xf32> -> vector<160x128xf32>
    %c0_83 = arith.constant 0 : index
    %c0_84 = arith.constant 0 : index
    %133 = vector.load %arg7[%c0_83, %c0_84] : memref<1x128xf32, #tpu.memory_space<vmem>>, vector<1x128xf32>
    %134 = vector.broadcast %133 : vector<1x128xf32> to vector<160x128xf32>
    %135 = arith.mulf %132, %134 : vector<160x128xf32>
    %c0_85 = arith.constant 0 : index
    %c0_86 = arith.constant 0 : index
    %136 = vector.load %arg8[%c0_85, %c0_86] : memref<1x128xf32, #tpu.memory_space<vmem>>, vector<1x128xf32>
    %137 = vector.broadcast %136 : vector<1x128xf32> to vector<160x128xf32>
    %138 = arith.addf %135, %137 : vector<160x128xf32>
    %cst_87 = arith.constant 0.000000e+00 : f32
    %139 = vector.broadcast %cst_87 : f32 to vector<160x128xf32>
    %140 = arith.maximumf %138, %139 : vector<160x128xf32>
    %141 = vector.shape_cast %140 : vector<160x128xf32> to vector<10x16x128xf32>
    %c0_88 = arith.constant 0 : index
    %c0_89 = arith.constant 0 : index
    %c0_90 = arith.constant 0 : index
    %142 = vector.load %arg14[%c0_88, %c0_89, %c0_90] : memref<10x16x128xf32, #tpu.memory_space<vmem>>, vector<10x16x128xf32>
    tpu.vector_store %arg14[%c0_88, %c0_89, %c0_90], %141 {strides = array<i32>} : memref<10x16x128xf32, #tpu.memory_space<vmem>>, vector<10x16x128xf32>,
    %c0_i32_91 = arith.constant 0 : i32
    %143 = arith.cmpi eq, %arg1, %c0_i32_91 : i32
    %144 = arith.extui %143 : i1 to i32
    %c0_i32_92 = arith.constant 0 : i32
    %145 = arith.cmpi ne, %144, %c0_i32_92 : i32
    scf.if %145 {
      %cst_185 = arith.constant 0.000000e+00 : f32
      %273 = vector.broadcast %cst_185 : f32 to vector<1x16x128xf32>
      %c0_186 = arith.constant 0 : index
      %c0_187 = arith.constant 0 : index
      %c0_188 = arith.constant 0 : index
      %274 = vector.load %arg14[%c0_186, %c0_187, %c0_188] : memref<10x16x128xf32, #tpu.memory_space<vmem>>, vector<1x16x128xf32>
      tpu.vector_store %arg14[%c0_186, %c0_187, %c0_188], %273 {strides = array<i32>} : memref<10x16x128xf32, #tpu.memory_space<vmem>>, vector<1x16x128xf32>,
    } else {
    }
    %c1_i32_93 = arith.constant 1 : i32
    %146 = arith.cmpi eq, %arg1, %c1_i32_93 : i32
    %147 = arith.extui %146 : i1 to i32
    %c0_i32_94 = arith.constant 0 : i32
    %148 = arith.cmpi ne, %147, %c0_i32_94 : i32
    scf.if %148 {
      %cst_185 = arith.constant 0.000000e+00 : f32
      %273 = vector.broadcast %cst_185 : f32 to vector<1x16x128xf32>
      %c9 = arith.constant 9 : index
      %c0_186 = arith.constant 0 : index
      %c0_187 = arith.constant 0 : index
      %274 = vector.load %arg14[%c9, %c0_186, %c0_187] : memref<10x16x128xf32, #tpu.memory_space<vmem>>, vector<1x16x128xf32>
      tpu.vector_store %arg14[%c9, %c0_186, %c0_187], %273 {strides = array<i32>} : memref<10x16x128xf32, #tpu.memory_space<vmem>>, vector<1x16x128xf32>,
    } else {
    }
    %c0_95 = arith.constant 0 : index
    %c0_96 = arith.constant 0 : index
    %c0_97 = arith.constant 0 : index
    %149 = vector.load %arg14[%c0_95, %c0_96, %c0_97] : memref<10x16x128xf32, #tpu.memory_space<vmem>>, vector<8x16x128xf32>
    %c1_i32_98 = arith.constant 1 : i32
    %150 = tpu.dynamic_rotate %149 by %c1_i32_98 dim 1 : vector<8x16x128xf32>, i32 -> vector<8x16x128xf32>
    %c-1_i32_99 = arith.constant -1 : i32
    %151 = vector.broadcast %c-1_i32_99 : i32 to vector<1x16x128xi32>
    %152 = arith.addi %23, %151 : vector<1x16x128xi32>
    %c0_i32_100 = arith.constant 0 : i32
    %153 = vector.broadcast %c0_i32_100 : i32 to vector<1x16x128xi32>
    %154 = arith.cmpi sge, %152, %153 : vector<1x16x128xi32>
    %c-1_i32_101 = arith.constant -1 : i32
    %155 = vector.broadcast %c-1_i32_101 : i32 to vector<1x16x128xi32>
    %156 = arith.addi %23, %155 : vector<1x16x128xi32>
    %c16_i32_102 = arith.constant 16 : i32
    %157 = vector.broadcast %c16_i32_102 : i32 to vector<1x16x128xi32>
    %158 = arith.cmpi slt, %156, %157 : vector<1x16x128xi32>
    %159 = arith.andi %154, %158 : vector<1x16x128xi1>
    %cst_103 = arith.constant 0.000000e+00 : f32
    %160 = vector.shape_cast %159 : vector<1x16x128xi1> to vector<1x16x128xi1>
    %161 = vector.broadcast %160 : vector<1x16x128xi1> to vector<8x16x128xi1>
    %162 = vector.broadcast %cst_103 : f32 to vector<8x16x128xf32>
    %163 = arith.select %161, %150, %162 : vector<8x16x128xi1>, vector<8x16x128xf32>
    %164 = arith.truncf %163 : vector<8x16x128xf32> to vector<8x16x128xbf16>
    %c0_104 = arith.constant 0 : index
    %c0_105 = arith.constant 0 : index
    %c0_106 = arith.constant 0 : index
    %165 = vector.load %arg15[%c0_104, %c0_105, %c0_106] : memref<10x16x1280xbf16, #tpu.memory_space<vmem>>, vector<8x16x128xbf16>
    tpu.vector_store %arg15[%c0_104, %c0_105, %c0_106], %164 {strides = array<i32>} : memref<10x16x1280xbf16, #tpu.memory_space<vmem>>, vector<8x16x128xbf16>,
    %166 = arith.truncf %149 : vector<8x16x128xf32> to vector<8x16x128xbf16>
    %c0_107 = arith.constant 0 : index
    %c0_108 = arith.constant 0 : index
    %c128_109 = arith.constant 128 : index
    %167 = vector.load %arg15[%c0_107, %c0_108, %c128_109] : memref<10x16x1280xbf16, #tpu.memory_space<vmem>>, vector<8x16x128xbf16>
    tpu.vector_store %arg15[%c0_107, %c0_108, %c128_109], %166 {strides = array<i32>} : memref<10x16x1280xbf16, #tpu.memory_space<vmem>>, vector<8x16x128xbf16>,
    %c15_i32_110 = arith.constant 15 : i32
    %168 = tpu.dynamic_rotate %149 by %c15_i32_110 dim 1 : vector<8x16x128xf32>, i32 -> vector<8x16x128xf32>
    %c1_i32_111 = arith.constant 1 : i32
    %169 = vector.broadcast %c1_i32_111 : i32 to vector<1x16x128xi32>
    %170 = arith.addi %23, %169 : vector<1x16x128xi32>
    %c0_i32_112 = arith.constant 0 : i32
    %171 = vector.broadcast %c0_i32_112 : i32 to vector<1x16x128xi32>
    %172 = arith.cmpi sge, %170, %171 : vector<1x16x128xi32>
    %c1_i32_113 = arith.constant 1 : i32
    %173 = vector.broadcast %c1_i32_113 : i32 to vector<1x16x128xi32>
    %174 = arith.addi %23, %173 : vector<1x16x128xi32>
    %c16_i32_114 = arith.constant 16 : i32
    %175 = vector.broadcast %c16_i32_114 : i32 to vector<1x16x128xi32>
    %176 = arith.cmpi slt, %174, %175 : vector<1x16x128xi32>
    %177 = arith.andi %172, %176 : vector<1x16x128xi1>
    %cst_115 = arith.constant 0.000000e+00 : f32
    %178 = vector.shape_cast %177 : vector<1x16x128xi1> to vector<1x16x128xi1>
    %179 = vector.broadcast %178 : vector<1x16x128xi1> to vector<8x16x128xi1>
    %180 = vector.broadcast %cst_115 : f32 to vector<8x16x128xf32>
    %181 = arith.select %179, %168, %180 : vector<8x16x128xi1>, vector<8x16x128xf32>
    %182 = arith.truncf %181 : vector<8x16x128xf32> to vector<8x16x128xbf16>
    %c0_116 = arith.constant 0 : index
    %c0_117 = arith.constant 0 : index
    %c256_118 = arith.constant 256 : index
    %183 = vector.load %arg15[%c0_116, %c0_117, %c256_118] : memref<10x16x1280xbf16, #tpu.memory_space<vmem>>, vector<8x16x128xbf16>
    tpu.vector_store %arg15[%c0_116, %c0_117, %c256_118], %182 {strides = array<i32>} : memref<10x16x1280xbf16, #tpu.memory_space<vmem>>, vector<8x16x128xbf16>,
    %c1_119 = arith.constant 1 : index
    %c0_120 = arith.constant 0 : index
    %c0_121 = arith.constant 0 : index
    %184 = vector.load %arg14[%c1_119, %c0_120, %c0_121] : memref<10x16x128xf32, #tpu.memory_space<vmem>>, vector<8x16x128xf32>
    %c1_i32_122 = arith.constant 1 : i32
    %185 = tpu.dynamic_rotate %184 by %c1_i32_122 dim 1 : vector<8x16x128xf32>, i32 -> vector<8x16x128xf32>
    %c-1_i32_123 = arith.constant -1 : i32
    %186 = vector.broadcast %c-1_i32_123 : i32 to vector<1x16x128xi32>
    %187 = arith.addi %23, %186 : vector<1x16x128xi32>
    %c0_i32_124 = arith.constant 0 : i32
    %188 = vector.broadcast %c0_i32_124 : i32 to vector<1x16x128xi32>
    %189 = arith.cmpi sge, %187, %188 : vector<1x16x128xi32>
    %c-1_i32_125 = arith.constant -1 : i32
    %190 = vector.broadcast %c-1_i32_125 : i32 to vector<1x16x128xi32>
    %191 = arith.addi %23, %190 : vector<1x16x128xi32>
    %c16_i32_126 = arith.constant 16 : i32
    %192 = vector.broadcast %c16_i32_126 : i32 to vector<1x16x128xi32>
    %193 = arith.cmpi slt, %191, %192 : vector<1x16x128xi32>
    %194 = arith.andi %189, %193 : vector<1x16x128xi1>
    %cst_127 = arith.constant 0.000000e+00 : f32
    %195 = vector.shape_cast %194 : vector<1x16x128xi1> to vector<1x16x128xi1>
    %196 = vector.broadcast %195 : vector<1x16x128xi1> to vector<8x16x128xi1>
    %197 = vector.broadcast %cst_127 : f32 to vector<8x16x128xf32>
    %198 = arith.select %196, %185, %197 : vector<8x16x128xi1>, vector<8x16x128xf32>
    %199 = arith.truncf %198 : vector<8x16x128xf32> to vector<8x16x128xbf16>
    %c0_128 = arith.constant 0 : index
    %c0_129 = arith.constant 0 : index
    %c384_130 = arith.constant 384 : index
    %200 = vector.load %arg15[%c0_128, %c0_129, %c384_130] : memref<10x16x1280xbf16, #tpu.memory_space<vmem>>, vector<8x16x128xbf16>
    tpu.vector_store %arg15[%c0_128, %c0_129, %c384_130], %199 {strides = array<i32>} : memref<10x16x1280xbf16, #tpu.memory_space<vmem>>, vector<8x16x128xbf16>,
    %201 = arith.truncf %184 : vector<8x16x128xf32> to vector<8x16x128xbf16>
    %c0_131 = arith.constant 0 : index
    %c0_132 = arith.constant 0 : index
    %c512_133 = arith.constant 512 : index
    %202 = vector.load %arg15[%c0_131, %c0_132, %c512_133] : memref<10x16x1280xbf16, #tpu.memory_space<vmem>>, vector<8x16x128xbf16>
    tpu.vector_store %arg15[%c0_131, %c0_132, %c512_133], %201 {strides = array<i32>} : memref<10x16x1280xbf16, #tpu.memory_space<vmem>>, vector<8x16x128xbf16>,
    %c15_i32_134 = arith.constant 15 : i32
    %203 = tpu.dynamic_rotate %184 by %c15_i32_134 dim 1 : vector<8x16x128xf32>, i32 -> vector<8x16x128xf32>
    %c1_i32_135 = arith.constant 1 : i32
    %204 = vector.broadcast %c1_i32_135 : i32 to vector<1x16x128xi32>
    %205 = arith.addi %23, %204 : vector<1x16x128xi32>
    %c0_i32_136 = arith.constant 0 : i32
    %206 = vector.broadcast %c0_i32_136 : i32 to vector<1x16x128xi32>
    %207 = arith.cmpi sge, %205, %206 : vector<1x16x128xi32>
    %c1_i32_137 = arith.constant 1 : i32
    %208 = vector.broadcast %c1_i32_137 : i32 to vector<1x16x128xi32>
    %209 = arith.addi %23, %208 : vector<1x16x128xi32>
    %c16_i32_138 = arith.constant 16 : i32
    %210 = vector.broadcast %c16_i32_138 : i32 to vector<1x16x128xi32>
    %211 = arith.cmpi slt, %209, %210 : vector<1x16x128xi32>
    %212 = arith.andi %207, %211 : vector<1x16x128xi1>
    %cst_139 = arith.constant 0.000000e+00 : f32
    %213 = vector.shape_cast %212 : vector<1x16x128xi1> to vector<1x16x128xi1>
    %214 = vector.broadcast %213 : vector<1x16x128xi1> to vector<8x16x128xi1>
    %215 = vector.broadcast %cst_139 : f32 to vector<8x16x128xf32>
    %216 = arith.select %214, %203, %215 : vector<8x16x128xi1>, vector<8x16x128xf32>
    %217 = arith.truncf %216 : vector<8x16x128xf32> to vector<8x16x128xbf16>
    %c0_140 = arith.constant 0 : index
    %c0_141 = arith.constant 0 : index
    %c640_142 = arith.constant 640 : index
    %218 = vector.load %arg15[%c0_140, %c0_141, %c640_142] : memref<10x16x1280xbf16, #tpu.memory_space<vmem>>, vector<8x16x128xbf16>
    tpu.vector_store %arg15[%c0_140, %c0_141, %c640_142], %217 {strides = array<i32>} : memref<10x16x1280xbf16, #tpu.memory_space<vmem>>, vector<8x16x128xbf16>,
    %c2_143 = arith.constant 2 : index
    %c0_144 = arith.constant 0 : index
    %c0_145 = arith.constant 0 : index
    %219 = vector.load %arg14[%c2_143, %c0_144, %c0_145] : memref<10x16x128xf32, #tpu.memory_space<vmem>>, vector<8x16x128xf32>
    %c1_i32_146 = arith.constant 1 : i32
    %220 = tpu.dynamic_rotate %219 by %c1_i32_146 dim 1 : vector<8x16x128xf32>, i32 -> vector<8x16x128xf32>
    %c-1_i32_147 = arith.constant -1 : i32
    %221 = vector.broadcast %c-1_i32_147 : i32 to vector<1x16x128xi32>
    %222 = arith.addi %23, %221 : vector<1x16x128xi32>
    %c0_i32_148 = arith.constant 0 : i32
    %223 = vector.broadcast %c0_i32_148 : i32 to vector<1x16x128xi32>
    %224 = arith.cmpi sge, %222, %223 : vector<1x16x128xi32>
    %c-1_i32_149 = arith.constant -1 : i32
    %225 = vector.broadcast %c-1_i32_149 : i32 to vector<1x16x128xi32>
    %226 = arith.addi %23, %225 : vector<1x16x128xi32>
    %c16_i32_150 = arith.constant 16 : i32
    %227 = vector.broadcast %c16_i32_150 : i32 to vector<1x16x128xi32>
    %228 = arith.cmpi slt, %226, %227 : vector<1x16x128xi32>
    %229 = arith.andi %224, %228 : vector<1x16x128xi1>
    %cst_151 = arith.constant 0.000000e+00 : f32
    %230 = vector.shape_cast %229 : vector<1x16x128xi1> to vector<1x16x128xi1>
    %231 = vector.broadcast %230 : vector<1x16x128xi1> to vector<8x16x128xi1>
    %232 = vector.broadcast %cst_151 : f32 to vector<8x16x128xf32>
    %233 = arith.select %231, %220, %232 : vector<8x16x128xi1>, vector<8x16x128xf32>
    %234 = arith.truncf %233 : vector<8x16x128xf32> to vector<8x16x128xbf16>
    %c0_152 = arith.constant 0 : index
    %c0_153 = arith.constant 0 : index
    %c768_154 = arith.constant 768 : index
    %235 = vector.load %arg15[%c0_152, %c0_153, %c768_154] : memref<10x16x1280xbf16, #tpu.memory_space<vmem>>, vector<8x16x128xbf16>
    tpu.vector_store %arg15[%c0_152, %c0_153, %c768_154], %234 {strides = array<i32>} : memref<10x16x1280xbf16, #tpu.memory_space<vmem>>, vector<8x16x128xbf16>,
    %236 = arith.truncf %219 : vector<8x16x128xf32> to vector<8x16x128xbf16>
    %c0_155 = arith.constant 0 : index
    %c0_156 = arith.constant 0 : index
    %c896_157 = arith.constant 896 : index
    %237 = vector.load %arg15[%c0_155, %c0_156, %c896_157] : memref<10x16x1280xbf16, #tpu.memory_space<vmem>>, vector<8x16x128xbf16>
    tpu.vector_store %arg15[%c0_155, %c0_156, %c896_157], %236 {strides = array<i32>} : memref<10x16x1280xbf16, #tpu.memory_space<vmem>>, vector<8x16x128xbf16>,
    %c15_i32_158 = arith.constant 15 : i32
    %238 = tpu.dynamic_rotate %219 by %c15_i32_158 dim 1 : vector<8x16x128xf32>, i32 -> vector<8x16x128xf32>
    %c1_i32_159 = arith.constant 1 : i32
    %239 = vector.broadcast %c1_i32_159 : i32 to vector<1x16x128xi32>
    %240 = arith.addi %23, %239 : vector<1x16x128xi32>
    %c0_i32_160 = arith.constant 0 : i32
    %241 = vector.broadcast %c0_i32_160 : i32 to vector<1x16x128xi32>
    %242 = arith.cmpi sge, %240, %241 : vector<1x16x128xi32>
    %c1_i32_161 = arith.constant 1 : i32
    %243 = vector.broadcast %c1_i32_161 : i32 to vector<1x16x128xi32>
    %244 = arith.addi %23, %243 : vector<1x16x128xi32>
    %c16_i32_162 = arith.constant 16 : i32
    %245 = vector.broadcast %c16_i32_162 : i32 to vector<1x16x128xi32>
    %246 = arith.cmpi slt, %244, %245 : vector<1x16x128xi32>
    %247 = arith.andi %242, %246 : vector<1x16x128xi1>
    %cst_163 = arith.constant 0.000000e+00 : f32
    %248 = vector.shape_cast %247 : vector<1x16x128xi1> to vector<1x16x128xi1>
    %249 = vector.broadcast %248 : vector<1x16x128xi1> to vector<8x16x128xi1>
    %250 = vector.broadcast %cst_163 : f32 to vector<8x16x128xf32>
    %251 = arith.select %249, %238, %250 : vector<8x16x128xi1>, vector<8x16x128xf32>
    %252 = arith.truncf %251 : vector<8x16x128xf32> to vector<8x16x128xbf16>
    %c0_164 = arith.constant 0 : index
    %c0_165 = arith.constant 0 : index
    %c1024_166 = arith.constant 1024 : index
    %253 = vector.load %arg15[%c0_164, %c0_165, %c1024_166] : memref<10x16x1280xbf16, #tpu.memory_space<vmem>>, vector<8x16x128xbf16>
    tpu.vector_store %arg15[%c0_164, %c0_165, %c1024_166], %252 {strides = array<i32>} : memref<10x16x1280xbf16, #tpu.memory_space<vmem>>, vector<8x16x128xbf16>,
    %c0_167 = arith.constant 0 : index
    %c0_168 = arith.constant 0 : index
    %c0_169 = arith.constant 0 : index
    %254 = vector.load %arg15[%c0_167, %c0_168, %c0_169] : memref<10x16x1280xbf16, #tpu.memory_space<vmem>>, vector<8x16x1280xbf16>
    %255 = vector.shape_cast %254 : vector<8x16x1280xbf16> to vector<128x1280xbf16>
    %c0_170 = arith.constant 0 : index
    %c0_171 = arith.constant 0 : index
    %256 = vector.load %arg9[%c0_170, %c0_171] : memref<1280x128xbf16, #tpu.memory_space<vmem>>, vector<1280x128xbf16>
    %cst_172 = arith.constant dense<0.000000e+00> : vector<128x128xf32>
    %257 = tpu.matmul %255, %256, %cst_172 {dimension_numbers = #tpu.dot_dimension_numbers<[1], [0], [0], [1], [0, 0, 1, 1], [], []>} : vector<128x1280xbf16>, vector<1280x128xbf16>, vector<128x128xf32> -> vector<128x128xf32>
    %c0_173 = arith.constant 0 : index
    %c0_174 = arith.constant 0 : index
    %258 = vector.load %arg10[%c0_173, %c0_174] : memref<1x128xf32, #tpu.memory_space<vmem>>, vector<1x128xf32>
    %259 = vector.broadcast %258 : vector<1x128xf32> to vector<128x128xf32>
    %260 = arith.mulf %257, %259 : vector<128x128xf32>
    %c0_175 = arith.constant 0 : index
    %c0_176 = arith.constant 0 : index
    %261 = vector.load %arg11[%c0_175, %c0_176] : memref<1x128xf32, #tpu.memory_space<vmem>>, vector<1x128xf32>
    %262 = vector.broadcast %261 : vector<1x128xf32> to vector<128x128xf32>
    %263 = arith.addf %260, %262 : vector<128x128xf32>
    %c2_177 = arith.constant 2 : index
    %c0_178 = arith.constant 0 : index
    %c0_179 = arith.constant 0 : index
    %264 = vector.load %arg13[%c2_177, %c0_178, %c0_179] : memref<12x16x128xf32, #tpu.memory_space<vmem>>, vector<8x16x128xf32>
    %265 = vector.shape_cast %264 : vector<8x16x128xf32> to vector<128x128xf32>
    %266 = arith.addf %263, %265 : vector<128x128xf32>
    %cst_180 = arith.constant 0.000000e+00 : f32
    %267 = vector.broadcast %cst_180 : f32 to vector<128x128xf32>
    %268 = arith.maximumf %266, %267 : vector<128x128xf32>
    %269 = vector.shape_cast %268 : vector<128x128xf32> to vector<8x16x128xf32>
    %c0_181 = arith.constant 0 : index
    %c0_182 = arith.constant 0 : index
    %c0_183 = arith.constant 0 : index
    %c0_184 = arith.constant 0 : index
    %270 = vector.load %arg12[%c0_181, %c0_182, %c0_183, %c0_184] : memref<1x8x16x128xf32, #tpu.memory_space<vmem>>, vector<1x8x16x128xf32>
    %271 = vector.shape_cast %270 : vector<1x8x16x128xf32> to vector<8x16x128xf32>
    %272 = vector.shape_cast %269 : vector<8x16x128xf32> to vector<1x8x16x128xf32>
    tpu.vector_store %arg12[%c0_181, %c0_182, %c0_183, %c0_184], %272 {strides = array<i32>} : memref<1x8x16x128xf32, #tpu.memory_space<vmem>>, vector<1x8x16x128xf32>,
    return
  }
  func.func @transform_0(%arg0: i32, %arg1: i32) -> (i32, i32, i32, i32) {
    %c2_i32 = arith.constant 2 : i32
    %0 = arith.muli %arg0, %c2_i32 : i32
    %1 = arith.addi %0, %arg1 : i32
    %c0_i32 = arith.constant 0 : i32
    %c0_i32_0 = arith.constant 0 : i32
    %c0_i32_1 = arith.constant 0 : i32
    %c0_i32_2 = arith.constant 0 : i32
    return %1, %c0_i32, %c0_i32_0, %c0_i32_1 : i32, i32, i32, i32
  }
  func.func @transform_1(%arg0: i32, %arg1: i32) -> (i32, i32) {
    %c0_i32 = arith.constant 0 : i32
    %c0_i32_0 = arith.constant 0 : i32
    %c0_i32_1 = arith.constant 0 : i32
    return %c0_i32, %c0_i32_0 : i32, i32
  }
  func.func @transform_2(%arg0: i32, %arg1: i32) -> (i32, i32) {
    %c0_i32 = arith.constant 0 : i32
    %c0_i32_0 = arith.constant 0 : i32
    %c0_i32_1 = arith.constant 0 : i32
    return %c0_i32, %c0_i32_0 : i32, i32
  }
  func.func @transform_3(%arg0: i32, %arg1: i32) -> (i32, i32) {
    %c0_i32 = arith.constant 0 : i32
    %c0_i32_0 = arith.constant 0 : i32
    %c0_i32_1 = arith.constant 0 : i32
    return %c0_i32, %c0_i32_0 : i32, i32
  }
  func.func @transform_4(%arg0: i32, %arg1: i32) -> (i32, i32) {
    %c0_i32 = arith.constant 0 : i32
    %c0_i32_0 = arith.constant 0 : i32
    %c0_i32_1 = arith.constant 0 : i32
    return %c0_i32, %c0_i32_0 : i32, i32
  }
  func.func @transform_5(%arg0: i32, %arg1: i32) -> (i32, i32) {
    %c0_i32 = arith.constant 0 : i32
    %c0_i32_0 = arith.constant 0 : i32
    %c0_i32_1 = arith.constant 0 : i32
    return %c0_i32, %c0_i32_0 : i32, i32
  }
  func.func @transform_6(%arg0: i32, %arg1: i32) -> (i32, i32) {
    %c0_i32 = arith.constant 0 : i32
    %c0_i32_0 = arith.constant 0 : i32
    %c0_i32_1 = arith.constant 0 : i32
    return %c0_i32, %c0_i32_0 : i32, i32
  }
  func.func @transform_7(%arg0: i32, %arg1: i32) -> (i32, i32) {
    %c0_i32 = arith.constant 0 : i32
    %c0_i32_0 = arith.constant 0 : i32
    %c0_i32_1 = arith.constant 0 : i32
    return %c0_i32, %c0_i32_0 : i32, i32
  }
  func.func @transform_8(%arg0: i32, %arg1: i32) -> (i32, i32) {
    %c0_i32 = arith.constant 0 : i32
    %c0_i32_0 = arith.constant 0 : i32
    %c0_i32_1 = arith.constant 0 : i32
    return %c0_i32, %c0_i32_0 : i32, i32
  }
  func.func @transform_9(%arg0: i32, %arg1: i32) -> (i32, i32) {
    %c0_i32 = arith.constant 0 : i32
    %c0_i32_0 = arith.constant 0 : i32
    %c0_i32_1 = arith.constant 0 : i32
    return %c0_i32, %c0_i32_0 : i32, i32
  }
  func.func @transform_10(%arg0: i32, %arg1: i32) -> (i32, i32, i32, i32) {
    %c0_i32 = arith.constant 0 : i32
    %c0_i32_0 = arith.constant 0 : i32
    %c0_i32_1 = arith.constant 0 : i32
    return %arg0, %arg1, %c0_i32, %c0_i32_0 : i32, i32, i32, i32
  }
}

</mosaic_0001>

<bundles_post_ra>
// kernel: encoder_forward.1
= control target key start
LH: loop header
LB: loop body
LE: loop exit
PB: predicated region body
PF: predicated region fallthrough
CT: control target
= control target key end

     0   :  { %15 = vsyncpa [#allocation6], 0  ;;  %s11256_s0 = inlined_call_operand.vmem [shape: bf16[4,12,16,128], index: 0, kind: input, shape index: {}]   ;;  %s11257_s1 = inlined_call_operand.vmem [shape: bf16[128,128], index: 1, kind: input, shape index: {}]   ;;  %s11258_s2 = inlined_call_operand.vmem [shape: f32[1,128], index: 2, kind: input, shape index: {}]   ;;  %s11259_s3 = inlined_call_operand.vmem [shape: f32[1,128], index: 3, kind: input, shape index: {}]   ;;  %s11260_s4 = inlined_call_operand.vmem [shape: bf16[1280,128], index: 4, kind: input, shape index: {}]   ;;  %s11261_s5 = inlined_call_operand.vmem [shape: f32[1,128], index: 5, kind: input, shape index: {}]   ;;  %s11262_s6 = inlined_call_operand.vmem [shape: f32[1,128], index: 6, kind: input, shape index: {}]   ;;  %s11263_s7 = inlined_call_operand.vmem [shape: bf16[1280,128], index: 7, kind: input, shape index: {}]   ;;  %s11264_s8 = inlined_call_operand.vmem [shape: f32[1,128], index: 8, kind: input, shape index: {}]   ;;  %s11265_s9 = inlined_call_operand.vmem [shape: f32[1,128], index: 9, kind: input, shape index: {}]   ;;  %s11266_s10 = inlined_call_operand.hbm [shape: f32[2,16,16,128], index: 10, kind: output, shape index: {}]  }
   0x1   :  { %17 = vsyncpa [#allocation6 + $0x1], 0  ;;  %s9449_s13 = smov 0   ;;  %s9451_s14 = smov 0  }
   0x2   :  { %s9453_s15 = smov 0   ;;  %s9455_s16 = smov 0  }
   0x3   :  { %s9457_s17 = smov 0   ;;  %s9459_s18 = smov 0  }
   0x4   :  { %s9461_s19 = smov 0   ;;  %s9463_s20 = smov 0  }
   0x5 LB: > { %11272 = sst [smem:[#allocation8_spill]] %s9376_s18  ;;  %s6951_s21 = sadd.s32 4294967295, %s9384_s20   ;;  %s9384_s20 = sphi %s9463_s20, %s23_s20   ;;  %s9380_s19 = sphi %s9461_s19, %s11340_s19   ;;  %s9376_s18 = sphi %s9459_s18, %s11335_s18   ;;  %s9372_s17 = sphi %s9457_s17, %s11334_s17   ;;  %s9368_s16 = sphi %s9455_s16, %s11333_s16   ;;  %s9364_s15 = sphi %s9453_s15, %s11339_s15   ;;  %s9360_s14 = sphi %s9451_s14, %s11338_s14   ;;  %s9356_s13 = sphi %s9449_s13, %s11337_s13  }
   0x6   : > { %11273 = sst [smem:[#allocation9_spill]] %s9380_s19  ;;  %s6952_s22 = sadd.s32 4294967294, %s9384_s20  }
   0x7   : > { %s32_s23 = sadd.s32 1, %s9376_s18  ;;  %s35_s24 = sadd.s32 1, %s9380_s19 }
   0x8   : > { %p33_p0 = scmp.ge.s32.totalorder %s32_s23, 2  ;;  %p273_p1 = scmp.ne.s32.totalorder %s9364_s15, %s9360_s14 }
   0x9   : > { %p274_p2 = scmp.eq.s32.totalorder %s6951_s21, 3  ;;  %p279_p5 = scmp.ne.s32.totalorder %s9360_s14, %s9356_s13 }
   0xa   : > { %s11342_s23 = smov (%p33_p0, %s32_s23), 0  ;;  %s11344_s24 = smov (!%p33_p0, %s35_s24), %s9380_s19 }
   0xb   : > { %11274 = sst [smem:[#allocation10_spill]] %s11342_s23  ;;  %s259_s25 = ssub.s32 %s9376_s18, %s11342_s23 }
   0xc   : > { %p9500_p3 = por %p274_p2, %p273_p1  ;;  %p37_p4 = scmp.ge.s32.totalorder %s11344_s24, 2 }
   0xd   : > { %p280_p6 = scmp.eq.s32.totalorder %s6952_s22, 3  ;;  %p6957_p7 = scmp.ge.s32.totalorder %s9384_s20, 1 }
   0xe   : > { %s11346_s24 = smov (%p37_p4, %s11344_s24), 0  ;;  %p337_p9 = scmp.lt.s32.totalorder %s9384_s20, 5 }
   0xf   : > { %11276 = sst [smem:[#allocation11_spill]] %s11346_s24  ;;  %p9509_p8 = por %p280_p6, %p279_p5 }
  0x10   : > { %s258_s28 = ssub.s32 %s9380_s19, %s11346_s24  ;;  %s263_s29 = sadd.s32 1, %s9364_s15 }
  0x11   : > { %s260_s30 = sor.u32 %s259_s25, %s258_s28  ;;  %p338_p10 = pnand %p6957_p7, %p337_p9 }
  0x12   : > { %p261_p11 = scmp.eq.s32.totalorder %s260_s30, 0 }
  0x13   : > { %341 = sbr.rel (%p338_p10) target bundleno = 1233 (0x4d1), region = 60 }
  0x14   : > { %s9518_s11 = scalar_select %p261_p11, %s9364_s15, %s263_s29  }
  0x16   : > { %11278 = sst [smem:[#allocation12_spill]] %s9518_s11 }
  0x18   : > { %s11270_s12 = sand.u32 1, %s9360_s14   ;;  %v8842_v0 = vld [vmem:[%s11257_s1 + $0x38] sm:$0xff]   ;;  %v8843_v1 = vld [vmem:[%s11257_s1 + $0x30] sm:$0xff]   ;;  %s6959_s25 = sshll.u32 %s9372_s17, 1  ;;  %v8844_v2 = vld [vmem:[%s11257_s1 + $0x28] sm:$0xff]  }
  0x19   : > { %s9526_s23 = sshll.u32 %s11270_s12, 7  ;;  %8707 = vmatprep.subr.bf16.mxu0 %v8842_v0  ;;  %s378_s30 = sadd.s32 %s9368_s16, %s6959_s25  ;;  %v8845_v3 = vld [vmem:[%s11257_s1 + $0x20] sm:$0xff]   ;;  %v8846_v4 = vld [vmem:[%s11257_s1 + $0x18] sm:$0xff]   ;;  %v8847_v6 = vld [vmem:[%s11257_s1 + $0x10] sm:$0xff]  }
  0x1a   : > { %8708 = vmatpush3.bf16.msra.mxu0 %v8842_v0  ;;  %p379_p12 = scmp.lt.s32.totalorder %s378_s30, 3  ;;  %v8848_v7 = vld [vmem:[%s11257_s1 + $0x8] sm:$0xff]   ;;  %v8849_v8 = vld [vmem:[%s11257_s1] sm:$0xff]   ;;  %p6983_p13 = scmp.ne.s32.totalorder %s9368_s16, 0 }
  0x1b   : > { %8709 = vmatprep.subr.bf16.mxu0 %v8843_v1  ;;  %v9571_v20 = vld [vmem:[%s11258_s2] ss:$0 sm:$0xff] }
  0x1c   : > { %s11348_s30 = smov (!%p379_p12, %s378_s30), 3  ;;  %v9576_v22 = vld [vmem:[%s11259_s3] ss:$0 sm:$0xff] }
  0x1d   : > { %s8763_s12 = smul.u32 96, %s11348_s30 }
  0x1e   : > { %8710 = vmatpush3.bf16.msra.mxu0 %v8843_v1 }
  0x1f   : > { %8711 = vmatprep.subr.bf16.mxu0 %v8844_v2  ;;  %s9545_s28 = scalar_lea.vmem %s11256_s0, %s8763_s12 }
  0x20   : > { %v8850_v5 = vld [vmem:[%s9545_s28] sm:$0xff]   ;;  %v8851_v9 = vld [vmem:[%s9545_s28 + $0x8] sm:$0xff]   ;;  %v8852_v10 = vld [vmem:[%s9545_s28 + $0x10] sm:$0xff]  }
  0x21   : > { %8723 = vmatprep.mubr.bf16.mxu0 %v8850_v5  ;;  %v8853_v11 = vld [vmem:[%s9545_s28 + $0x18] sm:$0xff]   ;;  %v8854_v12 = vld [vmem:[%s9545_s28 + $0x20] sm:$0xff]   ;;  %v8855_v13 = vld [vmem:[%s9545_s28 + $0x28] sm:$0xff]  }
  0x22   : > { %8712 = vmatpush3.bf16.msra.mxu0 %v8844_v2  ;;  %v8856_v14 = vld [vmem:[%s9545_s28 + $0x30] sm:$0xff]   ;;  %v8857_v15 = vld [vmem:[%s9545_s28 + $0x38] sm:$0xff]   ;;  %v8858_v16 = vld [vmem:[%s9545_s28 + $0x40] sm:$0xff]  }
  0x23   : > { %8713 = vmatprep.subr.bf16.mxu0 %v8845_v3  ;;  %v8859_v17 = vld [vmem:[%s9545_s28 + $0x48] sm:$0xff]   ;;  %v8860_v18 = vld [vmem:[%s9545_s28 + $0x50] sm:$0xff]   ;;  %v8861_v19 = vld [vmem:[%s9545_s28 + $0x58] sm:$0xff]   ;;  %s9627_s28 = scalar_lea.vmem [#allocation5], %s9526_s23 }
  0x26   : > { %8714 = vmatpush3.bf16.msra.mxu0 %v8845_v3 }
  0x27   : > { %8715 = vmatprep.subr.bf16.mxu0 %v8846_v4 }
  0x2a   : > { %8716 = vmatpush3.bf16.msra.mxu0 %v8846_v4 }
  0x2b   : > { %8717 = vmatprep.subr.bf16.mxu0 %v8847_v6 }
  0x2e   : > { %8718 = vmatpush3.bf16.msra.mxu0 %v8847_v6 }
  0x2f   : > { %8719 = vmatprep.subr.bf16.mxu0 %v8848_v7 }
  0x32   : > { %8720 = vmatpush3.bf16.msra.mxu0 %v8848_v7 }
  0x33   : > { %8721 = vmatprep.subr.bf16.mxu0 %v8849_v8 }
  0x36   : > { %8722 = vmatpush3.bf16.msra.mxu0 %v8849_v8 }
  0x39   : > { %8724 = vmatmul.mubr.bf16.vlgmr.msra.gmra.mxu0 %v8851_v9 }
  0x3a   : > { %8727 = vmatprep.mubr.bf16.mxu0 %v8852_v10 }
  0x41   : > { %8728 = vmatmul.mubr.bf16.gmra.mxu0 %v8853_v11 }
  0x42   : > { %8731 = vmatprep.mubr.bf16.mxu0 %v8854_v12 }
  0x49   : > { %8732 = vmatmul.mubr.bf16.gmra.mxu0 %v8855_v13 }
  0x4a   : > { %8735 = vmatprep.mubr.bf16.mxu0 %v8856_v14 }
  0x51   : > { %8736 = vmatmul.mubr.bf16.gmra.mxu0 %v8857_v15 }
  0x52   : > { %8739 = vmatprep.mubr.bf16.mxu0 %v8858_v16 }
  0x59   : > { %8740 = vmatmul.mubr.bf16.gmra.mxu0 %v8859_v17 }
  0x5a   : > { %8743 = vmatprep.mubr.bf16.mxu0 %v8860_v18 }
  0x61   : > { %8744 = vmatmul.mubr.bf16.gmra.mxu0 %v8861_v19 }
  0xf9   : > { %v8725_v21 = vpop.f32.mrf.mxu0 }
  0xfa   : > { %v686_v23 = vmul.f32 %v8725_v21, %v9571_v20 }
  0xfb   : > { %v582_v24 = vpop.f32.mrf.mxu0 }
  0xfc   : > { %v717_v25 = vadd.f32 %v9576_v22, %v686_v23  ;;  %v684_v26 = vmul.f32 %v9571_v20, %v582_v24 }
  0xfd   : > { %v8726_v27 = vpop.f32.mrf.mxu0 }
  0xfe   : > { %v741_v28 = vmax.f32 %v717_v25, 0.0  ;;  %v715_v29 = vadd.f32 %v9576_v22, %v684_v26  ;;  %v687_v30 = vmul.f32 %v8726_v27, %v9571_v20 }
  0xff   : > { %v585_v31 = vpop.f32.mrf.mxu0 }
 0x100   : > { %765 = vst [vmem:[#allocation2 + $0x10] sm:$0xff] %v741_v28  ;;  %v739_v32 = vmax.f32 %v715_v29, 0.0  ;;  %v718_v33 = vadd.f32 %v9576_v22, %v687_v30  ;;  %v685_v34 = vmul.f32 %v9571_v20, %v585_v31 }
 0x101   : > { %v8729_v35 = vpop.f32.mrf.mxu0 }
 0x102   : > { %763 = vst [vmem:[#allocation2 + $0xb0] sm:$0xff] %v739_v32  ;;  %v742_v36 = vmax.f32 %v718_v33, 0.0  ;;  %v716_v37 = vadd.f32 %v9576_v22, %v685_v34  ;;  %v690_v38 = vmul.f32 %v8729_v35, %v9571_v20 }
 0x103   : > { %v598_v39 = vpop.f32.mrf.mxu0 }
 0x104   : > { %766 = vst [vmem:[#allocation2 + $0x48] sm:$0xff] %v742_v36  ;;  %v740_v40 = vmax.f32 %v716_v37, 0.0  ;;  %v721_v41 = vadd.f32 %v9576_v22, %v690_v38  ;;  %v688_v42 = vmul.f32 %v9571_v20, %v598_v39 }
 0x105   : > { %v8730_v43 = vpop.f32.mrf.mxu0 }
 0x106   : > { %764 = vst [vmem:[#allocation2] sm:$0xff] %v740_v40  ;;  %v745_v44 = vmax.f32 %v721_v41, 0.0  ;;  %v719_v45 = vadd.f32 %v9576_v22, %v688_v42  ;;  %v691_v46 = vmul.f32 %v8730_v43, %v9571_v20 }
 0x107   : > { %v601_v47 = vpop.f32.mrf.mxu0 }
 0x108   : > { %769 = vst [vmem:[#allocation2 + $0x40] sm:$0xff] %v745_v44  ;;  %v743_v48 = vmax.f32 %v719_v45, 0.0  ;;  %v722_v49 = vadd.f32 %v9576_v22, %v691_v46  ;;  %v689_v50 = vmul.f32 %v9571_v20, %v601_v47 }
 0x109   : > { %v8733_v51 = vpop.f32.mrf.mxu0 }
 0x10a   : > { %767 = vst [vmem:[#allocation2 + $0x60] sm:$0xff] %v743_v48  ;;  %v746_v52 = vmax.f32 %v722_v49, 0.0  ;;  %v720_v53 = vadd.f32 %v9576_v22, %v689_v50  ;;  %v694_v54 = vmul.f32 %v8733_v51, %v9571_v20 }
 0x10b   : > { %v614_v55 = vpop.f32.mrf.mxu0 }
 0x10c   : > { %770 = vst [vmem:[#allocation2 + $0x78] sm:$0xff] %v746_v52  ;;  %v744_v56 = vmax.f32 %v720_v53, 0.0  ;;  %v725_v57 = vadd.f32 %v9576_v22, %v694_v54  ;;  %v692_v58 = vmul.f32 %v9571_v20, %v614_v55 }
 0x10d   : > { %v8734_v59 = vpop.f32.mrf.mxu0 }
 0x10e   : > { %768 = vst [vmem:[#allocation2 + $0x28] sm:$0xff] %v744_v56  ;;  %v749_v60 = vmax.f32 %v725_v57, 0.0  ;;  %v723_v61 = vadd.f32 %v9576_v22, %v692_v58  ;;  %v695_v62 = vmul.f32 %v8734_v59, %v9571_v20 }
 0x10f   : > { %v617_v63 = vpop.f32.mrf.mxu0 }
 0x110   : > { %773 = vst [vmem:[#allocation2 + $0x18] sm:$0xff] %v749_v60  ;;  %v747_v0 = vmax.f32 %v723_v61, 0.0  ;;  %v726_v1 = vadd.f32 %v9576_v22, %v695_v62  ;;  %v693_v2 = vmul.f32 %v9571_v20, %v617_v63 }
 0x111   : > { %v8737_v3 = vpop.f32.mrf.mxu0 }
 0x112   : > { %771 = vst [vmem:[#allocation2 + $0x88] sm:$0xff] %v747_v0  ;;  %v750_v4 = vmax.f32 %v726_v1, 0.0  ;;  %v724_v5 = vadd.f32 %v9576_v22, %v693_v2  ;;  %v698_v6 = vmul.f32 %v8737_v3, %v9571_v20 }
 0x113   : > { %v630_v7 = vpop.f32.mrf.mxu0 }
 0x114   : > { %774 = vst [vmem:[#allocation2 + $0x98] sm:$0xff] %v750_v4  ;;  %v748_v8 = vmax.f32 %v724_v5, 0.0  ;;  %v729_v9 = vadd.f32 %v9576_v22, %v698_v6  ;;  %v696_v10 = vmul.f32 %v9571_v20, %v630_v7 }
 0x115   : > { %v8738_v11 = vpop.f32.mrf.mxu0 }
 0x116   : > { %772 = vst [vmem:[#allocation2 + $0x90] sm:$0xff] %v748_v8  ;;  %v753_v12 = vmax.f32 %v729_v9, 0.0  ;;  %v727_v13 = vadd.f32 %v9576_v22, %v696_v10  ;;  %v699_v14 = vmul.f32 %v8738_v11, %v9571_v20 }
 0x117   : > { %v633_v15 = vpop.f32.mrf.mxu0 }
 0x118   : > { %777 = vst [vmem:[#allocation2 + $0x70] sm:$0xff] %v753_v12  ;;  %v751_v16 = vmax.f32 %v727_v13, 0.0  ;;  %v730_v17 = vadd.f32 %v9576_v22, %v699_v14  ;;  %v697_v18 = vmul.f32 %v9571_v20, %v633_v15 }
 0x119   : > { %v8741_v19 = vpop.f32.mrf.mxu0 }
 0x11a   : > { %775 = vst [vmem:[#allocation2 + $0x38] sm:$0xff] %v751_v16  ;;  %v754_v21 = vmax.f32 %v730_v17, 0.0  ;;  %v728_v23 = vadd.f32 %v9576_v22, %v697_v18  ;;  %v702_v24 = vmul.f32 %v8741_v19, %v9571_v20 }
 0x11b   : > { %v646_v25 = vpop.f32.mrf.mxu0 }
 0x11c   : > { %778 = vst [vmem:[#allocation2 + $0xa0] sm:$0xff] %v754_v21  ;;  %v752_v26 = vmax.f32 %v728_v23, 0.0  ;;  %v733_v27 = vadd.f32 %v9576_v22, %v702_v24  ;;  %v700_v28 = vmul.f32 %v9571_v20, %v646_v25 }
 0x11d   : > { %v8742_v29 = vpop.f32.mrf.mxu0 }
 0x11e   : > { %776 = vst [vmem:[#allocation2 + $0x50] sm:$0xff] %v752_v26  ;;  %v757_v30 = vmax.f32 %v733_v27, 0.0  ;;  %v731_v31 = vadd.f32 %v9576_v22, %v700_v28  ;;  %v703_v32 = vmul.f32 %v8742_v29, %v9571_v20 }
 0x11f   : > { %v649_v33 = vpop.f32.mrf.mxu0 }
 0x120   : > { %781 = vst [vmem:[#allocation2 + $0x30] sm:$0xff] %v757_v30  ;;  %v755_v34 = vmax.f32 %v731_v31, 0.0  ;;  %v734_v35 = vadd.f32 %v9576_v22, %v703_v32  ;;  %v701_v36 = vmul.f32 %v9571_v20, %v649_v33 }
 0x121   : > { %v8745_v37 = vpop.f32.mrf.mxu0 }
 0x122   : > { %779 = vst [vmem:[#allocation2 + $0xa8] sm:$0xff] %v755_v34  ;;  %v758_v38 = vmax.f32 %v734_v35, 0.0  ;;  %v732_v39 = vadd.f32 %v9576_v22, %v701_v36  ;;  %v706_v40 = vmul.f32 %v8745_v37, %v9571_v20 }
 0x123   : > { %v662_v41 = vpop.f32.mrf.mxu0 }
 0x124   : > { %782 = vst [vmem:[#allocation2 + $0x58] sm:$0xff] %v758_v38  ;;  %v756_v42 = vmax.f32 %v732_v39, 0.0  ;;  %v737_v43 = vadd.f32 %v9576_v22, %v706_v40  ;;  %v704_v44 = vmul.f32 %v9571_v20, %v662_v41 }
 0x125   : > { %v8746_v45 = vpop.f32.mrf.mxu0 }
 0x126   : > { %780 = vst [vmem:[#allocation2 + $0x68] sm:$0xff] %v756_v42  ;;  %v761_v46 = vmax.f32 %v737_v43, 0.0  ;;  %v735_v47 = vadd.f32 %v9576_v22, %v704_v44  ;;  %v707_v48 = vmul.f32 %v8746_v45, %v9571_v20 }
 0x127   : > { %v665_v49 = vpop.f32.mrf.mxu0 }
 0x128   : > { %785 = vst [vmem:[#allocation2 + $0x20] sm:$0xff] %v761_v46  ;;  %v759_v50 = vmax.f32 %v735_v47, 0.0  ;;  %v738_v51 = vadd.f32 %v9576_v22, %v707_v48  ;;  %v705_v52 = vmul.f32 %v9571_v20, %v665_v49 }
 0x12a   : > { %783 = vst [vmem:[#allocation2 + $0x80] sm:$0xff] %v759_v50  ;;  %v762_v53 = vmax.f32 %v738_v51, 0.0  ;;  %v736_v54 = vadd.f32 %v9576_v22, %v705_v52  ;;  %790 = sbr.rel (%p6983_p13) target bundleno = 306 (0x132), region = 64 }
 0x12c   : > { %786 = vst [vmem:[#allocation2 + $0x8] sm:$0xff] %v762_v53  ;;  %v760_v55 = vmax.f32 %v736_v54, 0.0 }
 0x12e   : > { %784 = vst [vmem:[#allocation2 + $0xb8] sm:$0xff] %v760_v55 }
 0x12f   : > { %v9386_v56 = vmov 0.0  }
 0x130   : > { %791 = vst [vmem:[#allocation2 + $0xb0] sm:$0xff] %v9386_v56  ;;  %792 = vst [vmem:[#allocation2] sm:$0xff] %v9386_v56 }
 0x131   : > { %793 = vst [vmem:[#allocation2 + $0x10] sm:$0xff] %v9386_v56  ;;  %794 = vst [vmem:[#allocation2 + $0x48] sm:$0xff] %v9386_v56 }
 0x132 PF: > { %p6984_p0 = scmp.ne.s32.totalorder %s9368_s16, 1 }
 0x134   : > { %798 = sbr.rel (%p6984_p0) target bundleno = 316 (0x13c), region = 68 }
 0x139   : > { %v9387_v20 = vmov 0.0  }
 0x13a   : > { %800 = vst [vmem:[#allocation2 + $0x80] sm:$0xff] %v9387_v20  ;;  %801 = vst [vmem:[#allocation2 + $0xb8] sm:$0xff] %v9387_v20 }
 0x13b   : > { %802 = vst [vmem:[#allocation2 + $0x20] sm:$0xff] %v9387_v20  ;;  %803 = vst [vmem:[#allocation2 + $0x8] sm:$0xff] %v9387_v20 }
 0x13c PF: > { %v8862_v22 = vld [vmem:[%s11260_s4 + $0x78] sm:$0xff]   ;;  %v8866_v60 = vld [vmem:[%s11260_s4 + $0x70] sm:$0xff]   ;;  %v8870_v0 = vld [vmem:[%s11260_s4 + $0x68] sm:$0xff]   ;;  %v824_v9 = vlaneseq }
 0x13d   : > { %v8863_v57 = vld [vmem:[%s11260_s4 + $0xf8] sm:$0xff]   ;;  %8007 = vmatprep.subr.bf16.mxu1 %v8862_v22  ;;  %v8867_v61 = vld [vmem:[%s11260_s4 + $0xf0] sm:$0xff]   ;;  %v8871_v1 = vld [vmem:[%s11260_s4 + $0xe8] sm:$0xff]  }
 0x13e   : > { %v8864_v58 = vld [vmem:[%s11260_s4 + $0x38] sm:$0xff]   ;;  %8083 = vmatprep.subr.bf16.mxu0 %v8863_v57  ;;  %v8868_v62 = vld [vmem:[%s11260_s4 + $0x30] sm:$0xff]   ;;  %v8872_v2 = vld [vmem:[%s11260_s4 + $0x28] sm:$0xff]   ;;  %v9698_v14 = vshrl.u32 %v824_v9, 7 }
 0x13f   : > { %v8865_v59 = vld [vmem:[%s11260_s4 + $0xb8] sm:$0xff]   ;;  %8008 = vmatpush3.bf16.msra.mxu1 %v8864_v58  ;;  %v8869_v63 = vld [vmem:[%s11260_s4 + $0xb0] sm:$0xff]   ;;  %v8873_v3 = vld [vmem:[%s11260_s4 + $0xa8] sm:$0xff]  }
 0x140   : > { %8084 = vmatpush3.bf16.msra.mxu0 %v8865_v59  ;;  %8009 = vmatprep.subr.bf16.mxu1 %v8866_v60  ;;  %v8874_v4 = vld [vmem:[%s11260_s4 + $0x60] sm:$0xff]   ;;  %v8878_v8 = vld [vmem:[%s11260_s4 + $0x58] sm:$0xff]   ;;  %v8882_v13 = vld [vmem:[%s11260_s4 + $0x50] sm:$0xff]   ;;  %v826_v19 = vadd.s32 8, %v9698_v14  ;;  %v9723_v25 = vadd.s32 4294967295, %v9698_v14  ;;  %vm867_vm0 = vcmp.lt.s32.totalorder %v9698_v14, 1 }
 0x141   : > { %8085 = vmatprep.subr.bf16.mxu0 %v8867_v61  ;;  %v8875_v5 = vld [vmem:[%s11260_s4 + $0xe0] sm:$0xff]   ;;  %v8879_v10 = vld [vmem:[%s11260_s4 + $0xd8] sm:$0xff]   ;;  %v8883_v15 = vld [vmem:[%s11260_s4 + $0xd0] sm:$0xff]   ;;  %vm1140_vm2 = vcmp.lt.s32.totalorder %v9698_v14, 7 }
 0x142   : > { %v8876_v6 = vld [vmem:[%s11260_s4 + $0x20] sm:$0xff]   ;;  %v8880_v11 = vld [vmem:[%s11260_s4 + $0x18] sm:$0xff]   ;;  %v8884_v16 = vld [vmem:[%s11260_s4 + $0x10] sm:$0xff]   ;;  %v9728_v27 = vadd.s32 1, %v826_v19  ;;  %vm890_vm1 = vcmp.ge.s32.totalorder %v9723_v25, 0 }
 0x143   : > { %8010 = vmatpush3.bf16.msra.mxu1 %v8868_v62  ;;  %v8877_v7 = vld [vmem:[%s11260_s4 + $0xa0] sm:$0xff]   ;;  %v8881_v12 = vld [vmem:[%s11260_s4 + $0x98] sm:$0xff]   ;;  %v8885_v17 = vld [vmem:[%s11260_s4 + $0x90] sm:$0xff]  }
 0x144   : > { %8086 = vmatpush3.bf16.msra.mxu0 %v8869_v63  ;;  %8011 = vmatprep.subr.bf16.mxu1 %v8870_v0  ;;  %v8886_v18 = vld [vmem:[%s11260_s4 + $0x48] sm:$0xff]   ;;  %v8890_v26 = vld [vmem:[%s11260_s4 + $0x40] sm:$0xff]   ;;  %v827_v31 = vld [vmem:[#allocation2 + $0xb0] sm:$0xff]  ;;  %vm1166_vm3 = vcmp.lt.s32.totalorder %v9728_v27, 16 }
 0x145   : > { %8087 = vmatprep.subr.bf16.mxu0 %v8871_v1  ;;  %v8887_v21 = vld [vmem:[%s11260_s4 + $0xc8] sm:$0xff]   ;;  %v8891_v28 = vld [vmem:[%s11260_s4 + $0xc0] sm:$0xff]   ;;  %v1294_v33 = vld [vmem:[#allocation2 + $0x10] sm:$0xff]  ;;  %v847_v34 = vrot.slane %v827_v31, 7  ;;  %v7682_v36 = vpack.c.bf16 %v827_v31, %v827_v31  ;;  %v1120_v40 = vrot.slane %v827_v31, 1 }
 0x146   : > { %v8888_v23 = vld [vmem:[%s11260_s4 + $0x8] sm:$0xff]   ;;  %v8892_v29 = vld [vmem:[%s11260_s4] sm:$0xff]   ;;  %v8900_v39 = vld [vmem:[%s11260_s4 + $0x178] sm:$0xff]   ;;  %v1314_v42 = vrot.slane %v1294_v33, 7  ;;  %v9750_v46 = vpack.c.bf16 %v1294_v33, %v1294_v33  ;;  %v1121_v59 = vrot.slane %v1294_v33, 1 }
 0x147   : > { %8012 = vmatpush3.bf16.msra.mxu1 %v8872_v2  ;;  %v8889_v24 = vld [vmem:[%s11260_s4 + $0x88] sm:$0xff]   ;;  %v8893_v30 = vld [vmem:[%s11260_s4 + $0x80] sm:$0xff]   ;;  %1100 = vst [vmem:[#allocation4 + $0x4] sm:$0xf] %v7682_v36  ;;  %v1299_v9 = vld [vmem:[#allocation2 + $0x78] sm:$0xff] }
 0x148   : > { %8088 = vmatpush3.bf16.msra.mxu0 %v8873_v3  ;;  %8013 = vmatprep.subr.bf16.mxu1 %v8874_v4  ;;  %v828_v32 = vld [vmem:[#allocation2] sm:$0xff]  ;;  %v1295_v38 = vld [vmem:[#allocation2 + $0x48] sm:$0xff]  ;;  %1102 = vst [vmem:[#allocation4 + $0x54] sm:$0xf] %v9750_v46  ;;  %v9810_v33 = vld [vmem:[#allocation2 + $0x90] sm:$0xff] }
 0x149   : > { %8089 = vmatprep.subr.bf16.mxu0 %v8875_v5  ;;  %v857_v35 = vrot.slane %v828_v32, 7  ;;  %v7683_v37 = vpack.c.bf16 %v828_v32, %v828_v32  ;;  %v1130_v41 = vrot.slane %v828_v32, 1  ;;  %v1324_v43 = vrot.slane %v1295_v38, 7  ;;  %v1296_v52 = vld [vmem:[#allocation2 + $0x60] sm:$0xff]  ;;  %v1297_v53 = vld [vmem:[#allocation2 + $0x28] sm:$0xff] }
 0x14a   : > { %v9752_v47 = vpack.c.bf16 %v1295_v38, %v1295_v38  ;;  %v1131_v61 = vrot.slane %v1295_v38, 1  ;;  %v1315_v62 = vrot.slane %v1296_v52, 7  ;;  %v1325_v63 = vrot.slane %v1297_v53, 7  ;;  %v1298_v4 = vld [vmem:[#allocation2 + $0x40] sm:$0xff]  ;;  %1554 = vst [vmem:[#allocation4 + $0x10] sm:$0xf] %v9750_v46 }
 0x14b   : > { %8014 = vmatpush3.bf16.msra.mxu1 %v8876_v6  ;;  %v868_v44 = vsel %vm867_vm0, %v847_v34, %v857_v35  ;;  %v878_v45 = vsel %vm867_vm0, %v857_v35, %v847_v34  ;;  %1101 = vst [vmem:[#allocation4 + $0x2c] sm:$0xf] %v7683_v37  ;;  %v1141_v50 = vsel %vm1140_vm2, %v1120_v40, %v1130_v41  ;;  %v1122_v3 = vrot.slane %v1296_v52, 1 }
 0x14c   : > { %8090 = vmatpush3.bf16.msra.mxu0 %v8877_v7  ;;  %8015 = vmatprep.subr.bf16.mxu1 %v8878_v8  ;;  %v900_v48 = vsel %vm890_vm1, %v878_v45, 0.0  ;;  %v7663_v49 = vpack.c.bf16 %v868_v44, %v868_v44  ;;  %v1151_v51 = vsel %vm1140_vm2, %v1130_v41, %v1120_v40  ;;  %v7702_v56 = vpack.c.bf16 %v1141_v50, %v1141_v50  ;;  %v9829_v45 = vld [vmem:[#allocation2 + $0x18] sm:$0xff] }
 0x14d   : > { %8091 = vmatprep.subr.bf16.mxu0 %v8879_v10  ;;  %v7662_v54 = vpack.c.bf16 %v900_v48, %v900_v48  ;;  %v1174_v55 = vsel %vm1166_vm3, %v1151_v51, 0.0  ;;  %v1334_v20 = vsel %vm867_vm0, %v1314_v42, %v1324_v43  ;;  %1103 = vst [vmem:[#allocation4 + $0x7c] sm:$0xf] %v9752_v47  ;;  %v1344_v57 = vsel %vm867_vm0, %v1324_v43, %v1314_v42  ;;  %v8909_v48 = vld [vmem:[%s11260_s4 + $0x130] sm:$0xff]  }
 0x14e   : > { %1001 = vst [vmem:[#allocation4 + $0x28] sm:$0xf] %v7663_v49  ;;  %v7703_v22 = vpack.c.bf16 %v1174_v55, %v1174_v55  ;;  %v7723_v58 = vpack.c.bf16 %v1334_v20, %v1334_v20  ;;  %1273 = vst [vmem:[#allocation4 + $0x8] sm:$0xf] %v7702_v56  ;;  %v1354_v60 = vsel %vm890_vm1, %v1344_v57, 0.0  ;;  %v9770_v1 = vpack.c.bf16 %v1296_v52, %v1296_v52  ;;  %v8916_v56 = vld [vmem:[%s11260_s4 + $0x168] sm:$0xff]  }
 0x14f   : > { %8016 = vmatpush3.bf16.msra.mxu1 %v8880_v11  ;;  %1000 = vst [vmem:[#allocation4] sm:$0xf] %v7662_v54  ;;  %v7722_v0 = vpack.c.bf16 %v1354_v60, %v1354_v60  ;;  %v9772_v2 = vpack.c.bf16 %v1297_v53, %v1297_v53  ;;  %v1142_v5 = vsel %vm1140_vm2, %v1121_v59, %v1131_v61  ;;  %v1316_v19 = vrot.slane %v1298_v4, 7 }
 0x150   : > { %8092 = vmatpush3.bf16.msra.mxu0 %v8881_v12  ;;  %8017 = vmatprep.subr.bf16.mxu1 %v8882_v13  ;;  %1274 = vst [vmem:[#allocation4 + $0x30] sm:$0xf] %v7703_v22  ;;  %1455 = vst [vmem:[#allocation4 + $0x34] sm:$0xf] %v7723_v58  ;;  %v1152_v6 = vsel %vm1140_vm2, %v1131_v61, %v1121_v59  ;;  %v1335_v7 = vsel %vm867_vm0, %v1315_v62, %v1325_v63  ;;  %v1133_v32 = vrot.slane %v1299_v9, 1 }
 0x151   : > { %8093 = vmatprep.subr.bf16.mxu0 %v8883_v15  ;;  %1003 = vst [vmem:[#allocation4 + $0x78] sm:$0xf] %v7723_v58  ;;  %v1345_v8 = vsel %vm867_vm0, %v1325_v63, %v1315_v62  ;;  %1454 = vst [vmem:[#allocation4 + $0xc] sm:$0xf] %v7722_v0  ;;  %v1176_v10 = vsel %vm1166_vm3, %v1152_v6, 0.0  ;;  %v9784_v11 = vpack.c.bf16 %v1142_v5, %v1142_v5  ;;  %v9790_v15 = vld [vmem:[#allocation2 + $0x88] sm:$0xff] }
 0x152   : > { %1002 = vst [vmem:[#allocation4 + $0x50] sm:$0xf] %v7722_v0  ;;  %v1356_v12 = vsel %vm890_vm1, %v1345_v8, 0.0  ;;  %v7725_v13 = vpack.c.bf16 %v1335_v7, %v1335_v7  ;;  %1104 = vst [vmem:[#allocation4 + $0xa4] sm:$0xf] %v9770_v1  ;;  %v1317_v34 = vrot.slane %v9790_v15, 7  ;;  %v9850_v22 = vpack.c.bf16 %v9790_v15, %v9790_v15 }
 0x153   : > { %8018 = vmatpush3.bf16.msra.mxu1 %v8884_v16  ;;  %1105 = vst [vmem:[#allocation4 + $0xcc] sm:$0xf] %v9772_v2  ;;  %v9792_v16 = vpack.c.bf16 %v1176_v10, %v1176_v10  ;;  %1275 = vst [vmem:[#allocation4 + $0x58] sm:$0xf] %v9784_v11  ;;  %v8896_v36 = vld [vmem:[#allocation4 + $0x4] ss:$40 sps:$4 sm:$0xff]   ;;  %v9854_v57 = vpack.c.bf16 %v9810_v33, %v9810_v33  ;;  %v9858_v58 = vpack.c.bf16 %v9829_v45, %v9829_v45 }
 0x154   : > { %8094 = vmatpush3.bf16.msra.mxu0 %v8885_v17  ;;  %8019 = vmatprep.subr.bf16.mxu1 %v8886_v18  ;;  %v7724_v17 = vpack.c.bf16 %v1356_v12, %v1356_v12  ;;  %v1132_v18 = vrot.slane %v1297_v53, 1  ;;  %1457 = vst [vmem:[#allocation4 + $0x84] sm:$0xf] %v7725_v13  ;;  %1005 = vst [vmem:[#allocation4 + $0xc8] sm:$0xf] %v7725_v13  ;;  %v1327_v52 = vrot.slane %v9810_v33, 7 }
 0x155   : > { %8095 = vmatprep.subr.bf16.mxu0 %v8887_v21  ;;  %v8901_v21 = vld [vmem:[%s11260_s4 + $0x138] sm:$0xff]   ;;  %1276 = vst [vmem:[#allocation4 + $0x80] sm:$0xf] %v9792_v16  ;;  %3447 = vmatprep.mubr.bf16.mxu1 %v8896_v36  ;;  %v1124_v63 = vrot.slane %v9790_v15, 1  ;;  %1108 = vst [vmem:[#allocation4 + $0x144] sm:$0xf] %v9850_v22 }
 0x156   : > { %1456 = vst [vmem:[#allocation4 + $0x5c] sm:$0xf] %v7724_v17  ;;  %1004 = vst [vmem:[#allocation4 + $0xa0] sm:$0xf] %v7724_v17  ;;  %v1153_v31 = vsel %vm1140_vm2, %v1132_v18, %v1122_v3  ;;  %v8894_v35 = vld [vmem:[#allocation4] ss:$40 sps:$4 sm:$0xff]   ;;  %v1337_v61 = vsel %vm867_vm0, %v1317_v34, %v1327_v52  ;;  %v1347_v62 = vsel %vm867_vm0, %v1327_v52, %v1317_v34 }
 0x157   : > { %8020 = vmatpush3.bf16.msra.mxu1 %v8888_v23  ;;  %v1326_v23 = vrot.slane %v1299_v9, 7  ;;  %v1178_v37 = vsel %vm1166_vm3, %v1153_v31, 0.0  ;;  %v9840_v53 = vld [vmem:[#allocation2 + $0x98] sm:$0xff]  ;;  %v8897_v54 = vld [vmem:[#allocation4 + $0x8] ss:$40 sps:$4 sm:$0xff]   ;;  %v1134_v5 = vrot.slane %v9810_v33, 1 }
 0x158   : > { %8096 = vmatpush3.bf16.msra.mxu0 %v8889_v24  ;;  %8021 = vmatprep.subr.bf16.mxu1 %v8890_v26  ;;  %v9798_v24 = vpack.c.bf16 %v1298_v4, %v1298_v4  ;;  %v9800_v26 = vpack.c.bf16 %v1299_v9, %v1299_v9  ;;  %v9823_v41 = vpack.c.bf16 %v1178_v37, %v1178_v37  ;;  %v8899_v55 = vld [vmem:[#allocation4 + $0xc] ss:$40 sps:$4 sm:$0xff]   ;;  %v9868_v0 = vld [vmem:[#allocation2 + $0x38] sm:$0xff]  ;;  %v1318_v6 = vrot.slane %v9829_v45, 7  ;;  %v8924_v17 = vld [vmem:[%s11260_s4 + $0x160] sm:$0xff]  }
 0x159   : > { %8097 = vmatprep.subr.bf16.mxu0 %v8891_v28  ;;  %v1123_v28 = vrot.slane %v1298_v4, 1  ;;  %v1346_v40 = vsel %vm867_vm0, %v1326_v23, %v1316_v19  ;;  %v8902_v59 = vld [vmem:[#allocation4 + $0x54] ss:$40 sps:$4 sm:$0xff]   ;;  %3560 = vmatprep.mubr.bf16.mxu0 %v8899_v55  ;;  %v7729_v4 = vpack.c.bf16 %v1337_v61, %v1337_v61  ;;  %1109 = vst [vmem:[#allocation4 + $0x16c] sm:$0xf] %v9854_v57  ;;  %v8917_v8 = vld [vmem:[%s11260_s4 + $0x128] sm:$0xff]  }
 0x15a   : > { %1106 = vst [vmem:[#allocation4 + $0xf4] sm:$0xf] %v9798_v24  ;;  %1107 = vst [vmem:[#allocation4 + $0x11c] sm:$0xf] %v9800_v26  ;;  %v1358_v42 = vsel %vm890_vm1, %v1346_v40, 0.0  ;;  %v1328_v10 = vrot.slane %v9840_v53, 7  ;;  %v9884_v12 = vpack.c.bf16 %v9840_v53, %v9840_v53 }
 0x15b   : > { %8022 = vmatpush3.bf16.msra.mxu1 %v8892_v29  ;;  %v8908_v29 = vld [vmem:[%s11260_s4 + $0x170] sm:$0xff]   ;;  %v1144_v44 = vsel %vm1140_vm2, %v1123_v28, %v1133_v32  ;;  %v7726_v49 = vpack.c.bf16 %v1358_v42, %v1358_v42  ;;  %v1154_v50 = vsel %vm1140_vm2, %v1133_v32, %v1123_v28  ;;  %1278 = vst [vmem:[#allocation4 + $0xd0] sm:$0xf] %v9823_v41  ;;  %1110 = vst [vmem:[#allocation4 + $0x194] sm:$0xf] %v9858_v58  ;;  %v9914_v42 = vld [vmem:[#allocation2 + $0xa0] sm:$0xff] }
 0x15c   : > { %8098 = vmatpush3.bf16.msra.mxu0 %v8893_v30  ;;  %8159 = vmatprep.subr.bf16.mxu1 %v8900_v39  ;;  %v1143_v30 = vsel %vm1140_vm2, %v1122_v3, %v1132_v18  ;;  %v1336_v39 = vsel %vm867_vm0, %v1316_v19, %v1326_v23  ;;  %v9837_v51 = vpack.c.bf16 %v1144_v44, %v1144_v44  ;;  %v1180_v20 = vsel %vm1166_vm3, %v1154_v50, 0.0  ;;  %v8906_v15 = vld [vmem:[#allocation4 + $0x50] ss:$40 sps:$4 sm:$0xff]   ;;  %v8929_v55 = vld [vmem:[%s11260_s4 + $0x120] sm:$0xff]  }
 0x15d   : > { %v9815_v38 = vpack.c.bf16 %v1143_v30, %v1143_v30  ;;  %v7727_v43 = vpack.c.bf16 %v1336_v39, %v1336_v39  ;;  %1458 = vst [vmem:[#allocation4 + $0xac] sm:$0xf] %v7726_v49  ;;  %1006 = vst [vmem:[#allocation4 + $0xf0] sm:$0xf] %v7726_v49  ;;  %v9860_v60 = vpack.c.bf16 %v1180_v20, %v1180_v20  ;;  %v1360_v3 = vsel %vm890_vm1, %v1347_v62, 0.0  ;;  %v1305_v34 = vld [vmem:[#allocation2 + $0x50] sm:$0xff] }
 0x15e   : > { %3448 = vmatmul.mubr.bf16.vlgmr.msra.gmra.mxu1 %v8894_v35  ;;  %1279 = vst [vmem:[#allocation4 + $0xf8] sm:$0xf] %v9837_v51  ;;  %v8904_v7 = vld [vmem:[#allocation4 + $0x5c] ss:$40 sps:$4 sm:$0xff]   ;;  %v7728_v9 = vpack.c.bf16 %v1360_v3, %v1360_v3  ;;  %v1125_v13 = vrot.slane %v9829_v45, 1  ;;  %v1145_v18 = vsel %vm1140_vm2, %v1124_v63, %v1134_v5  ;;  %v1155_v19 = vsel %vm1140_vm2, %v1134_v5, %v1124_v63  ;;  %v9912_v40 = vld [vmem:[#allocation2 + $0x70] sm:$0xff] }
 0x15f   : > { %1277 = vst [vmem:[#allocation4 + $0xa8] sm:$0xf] %v9815_v38  ;;  %1459 = vst [vmem:[#allocation4 + $0xd4] sm:$0xf] %v7727_v43  ;;  %8160 = vmatpush3.bf16.msra.mxu1 %v8901_v21  ;;  %3561 = vmatmul.mubr.bf16.vlgmr.msra.gmra.mxu0 %v8897_v54  ;;  %v1135_v21 = vrot.slane %v9840_v53, 1  ;;  %v7694_v23 = vpack.c.bf16 %v9868_v0, %v9868_v0  ;;  %v1182_v30 = vsel %vm1166_vm3, %v1155_v19, 0.0 }
 0x160   : > { %1007 = vst [vmem:[#allocation4 + $0x118] sm:$0xf] %v7727_v43  ;;  %8161 = vmatprep.subr.bf16.mxu1 %v8908_v29  ;;  %3455 = vmatprep.mubr.bf16.mxu1 %v8902_v59  ;;  %1280 = vst [vmem:[#allocation4 + $0x120] sm:$0xf] %v9860_v60  ;;  %v8907_v28 = vld [vmem:[#allocation4 + $0x58] ss:$40 sps:$4 sm:$0xff]   ;;  %v9899_v31 = vpack.c.bf16 %v1145_v18, %v1145_v18  ;;  %v1338_v32 = vsel %vm867_vm0, %v1318_v6, %v1328_v10 }
 0x161   : > { %1461 = vst [vmem:[#allocation4 + $0x124] sm:$0xf] %v7729_v4  ;;  %1009 = vst [vmem:[#allocation4 + $0x168] sm:$0xf] %v7729_v4  ;;  %3568 = vmatprep.mubr.bf16.mxu0 %v8904_v7  ;;  %v8910_v29 = vld [vmem:[#allocation4 + $0xa4] ss:$40 sps:$4 sm:$0xff]   ;;  %v1348_v33 = vsel %vm867_vm0, %v1328_v10, %v1318_v6  ;;  %v9906_v35 = vpack.c.bf16 %v1182_v30, %v1182_v30  ;;  %v7731_v37 = vpack.c.bf16 %v1338_v32, %v1338_v32 }
 0x162   : > { %1460 = vst [vmem:[#allocation4 + $0xfc] sm:$0xf] %v7728_v9  ;;  %1008 = vst [vmem:[#allocation4 + $0x140] sm:$0xf] %v7728_v9  ;;  %v1362_v36 = vsel %vm890_vm1, %v1348_v33, 0.0  ;;  %v1146_v39 = vsel %vm1140_vm2, %v1125_v13, %v1135_v21  ;;  %v1156_v44 = vsel %vm1140_vm2, %v1135_v21, %v1125_v13  ;;  %v7695_v52 = vpack.c.bf16 %v1305_v34, %v1305_v34  ;;  %v8938_v59 = vld [vmem:[%s11260_s4 + $0x158] sm:$0xff]  }
 0x163   : > { %8162 = vmatpush3.bf16.msra.mxu1 %v8909_v48  ;;  %1111 = vst [vmem:[#allocation4 + $0x1bc] sm:$0xf] %v9884_v12  ;;  %1112 = vst [vmem:[#allocation4 + $0x1e4] sm:$0xf] %v7694_v23  ;;  %v7730_v43 = vpack.c.bf16 %v1362_v36, %v1362_v36  ;;  %v9919_v45 = vpack.c.bf16 %v1146_v39, %v1146_v39  ;;  %v1319_v48 = vrot.slane %v9868_v0, 7  ;;  %v1184_v50 = vsel %vm1166_vm3, %v1156_v44, 0.0 }
 0x164   : > { %8163 = vmatprep.subr.bf16.mxu1 %v8916_v56  ;;  %1564 = vst [vmem:[#allocation4 + $0x1a0] sm:$0xf] %v7694_v23  ;;  %1281 = vst [vmem:[#allocation4 + $0x148] sm:$0xf] %v9899_v31  ;;  %v7696_v53 = vpack.c.bf16 %v9912_v40, %v9912_v40  ;;  %v7697_v54 = vpack.c.bf16 %v9914_v42, %v9914_v42  ;;  %v9932_v56 = vpack.c.bf16 %v1184_v50, %v1184_v50  ;;  %v8947_v4 = vld [vmem:[%s11260_s4 + $0x1f8] sm:$0xff]   ;;  %v8946_v23 = vld [vmem:[%s11260_s4 + $0x150] sm:$0xff]  }
 0x165   : > { %1282 = vst [vmem:[#allocation4 + $0x170] sm:$0xf] %v9906_v35  ;;  %1463 = vst [vmem:[#allocation4 + $0x174] sm:$0xf] %v7731_v37  ;;  %v1329_v20 = vrot.slane %v1305_v34, 7  ;;  %v1126_v61 = vrot.slane %v9868_v0, 1  ;;  %8235 = vmatprep.subr.bf16.mxu0 %v8947_v4 }
 0x166   : > { %3456 = vmatmul.mubr.bf16.gmra.mxu1 %v8906_v15  ;;  %v8912_v49 = vld [vmem:[#allocation4 + $0xac] ss:$40 sps:$4 sm:$0xff]   ;;  %1011 = vst [vmem:[#allocation4 + $0x1b8] sm:$0xf] %v7731_v37  ;;  %1462 = vst [vmem:[#allocation4 + $0x14c] sm:$0xf] %v7730_v43 }
 0x167   : > { %3463 = vmatprep.mubr.bf16.mxu1 %v8910_v29  ;;  %8164 = vmatpush3.bf16.msra.mxu1 %v8917_v8  ;;  %1010 = vst [vmem:[#allocation4 + $0x190] sm:$0xf] %v7730_v43  ;;  %1283 = vst [vmem:[#allocation4 + $0x198] sm:$0xf] %v9919_v45  ;;  %v1136_v62 = vrot.slane %v1305_v34, 1  ;;  %v1320_v63 = vrot.slane %v9912_v40, 7  ;;  %v1339_v0 = vsel %vm867_vm0, %v1319_v48, %v1329_v20 }
 0x168   : > { %8165 = vmatprep.subr.bf16.mxu1 %v8924_v17  ;;  %1113 = vst [vmem:[#allocation4 + $0x20c] sm:$0xf] %v7695_v52  ;;  %v1330_v3 = vrot.slane %v9914_v42, 7  ;;  %1114 = vst [vmem:[#allocation4 + $0x234] sm:$0xf] %v7696_v53  ;;  %3569 = vmatmul.mubr.bf16.gmra.mxu0 %v8907_v28  ;;  %v1349_v5 = vsel %vm867_vm0, %v1329_v20, %v1319_v48  ;;  %v1127_v6 = vrot.slane %v9912_v40, 1 }
 0x169   : > { %1115 = vst [vmem:[#allocation4 + $0x25c] sm:$0xf] %v7697_v54  ;;  %1565 = vst [vmem:[#allocation4 + $0x1c8] sm:$0xf] %v7695_v52  ;;  %v1137_v7 = vrot.slane %v9914_v42, 1  ;;  %3576 = vmatprep.mubr.bf16.mxu0 %v8912_v49  ;;  %v1364_v9 = vsel %vm890_vm1, %v1349_v5, 0.0  ;;  %v7733_v10 = vpack.c.bf16 %v1339_v0, %v1339_v0  ;;  %v1147_v15 = vsel %vm1140_vm2, %v1126_v61, %v1136_v62 }
 0x16a   : > { %1566 = vst [vmem:[#allocation4 + $0x1f0] sm:$0xf] %v7696_v53  ;;  %1567 = vst [vmem:[#allocation4 + $0x218] sm:$0xf] %v7697_v54  ;;  %v8914_v8 = vld [vmem:[#allocation4 + $0xa0] ss:$40 sps:$4 sm:$0xff]   ;;  %v1157_v17 = vsel %vm1140_vm2, %v1136_v62, %v1126_v61  ;;  %v7714_v19 = vpack.c.bf16 %v1147_v15, %v1147_v15  ;;  %v1340_v21 = vsel %vm867_vm0, %v1320_v63, %v1330_v3 }
 0x16b   : > { %1284 = vst [vmem:[#allocation4 + $0x1c0] sm:$0xf] %v9932_v56  ;;  %1555 = vst [vmem:[#allocation4 + $0x38] sm:$0xf] %v9752_v47  ;;  %v8939_v13 = vld [vmem:[%s11260_s4 + $0x118] sm:$0xff]   ;;  %8166 = vmatpush3.bf16.msra.mxu1 %v8929_v55  ;;  %v7732_v47 = vpack.c.bf16 %v1364_v9, %v1364_v9  ;;  %v1186_v18 = vsel %vm1166_vm3, %v1157_v17, 0.0  ;;  %v1350_v29 = vsel %vm867_vm0, %v1330_v3, %v1320_v63 }
 0x16c   : > { %v8918_v46 = vld [vmem:[#allocation4 + $0xf4] ss:$40 sps:$4 sm:$0xff]   ;;  %1465 = vst [vmem:[#allocation4 + $0x1c4] sm:$0xf] %v7733_v10  ;;  %8167 = vmatprep.subr.bf16.mxu1 %v8938_v59  ;;  %1013 = vst [vmem:[#allocation4 + $0x208] sm:$0xf] %v7733_v10  ;;  %v7715_v28 = vpack.c.bf16 %v1186_v18, %v1186_v18  ;;  %v7735_v30 = vpack.c.bf16 %v1340_v21, %v1340_v21  ;;  %v1148_v32 = vsel %vm1140_vm2, %v1127_v6, %v1137_v7 }
 0x16d   : > { %v8915_v33 = vld [vmem:[#allocation4 + $0xa8] ss:$40 sps:$4 sm:$0xff]   ;;  %1464 = vst [vmem:[#allocation4 + $0x19c] sm:$0xf] %v7732_v47  ;;  %1012 = vst [vmem:[#allocation4 + $0x1e0] sm:$0xf] %v7732_v47  ;;  %v1158_v36 = vsel %vm1140_vm2, %v1137_v7, %v1127_v6  ;;  %v7716_v37 = vpack.c.bf16 %v1148_v32, %v1148_v32 }
 0x16e   : > { %1285 = vst [vmem:[#allocation4 + $0x1e8] sm:$0xf] %v7714_v19  ;;  %v1366_v34 = vsel %vm890_vm1, %v1350_v29, 0.0  ;;  %1724 = vst [vmem:[#allocation4 + $0x1a4] sm:$0xf] %v7714_v19  ;;  %3464 = vmatmul.mubr.bf16.gmra.mxu1 %v8914_v8  ;;  %v1188_v42 = vsel %vm1166_vm3, %v1158_v36, 0.0 }
 0x16f   : > { %v8920_v39 = vld [vmem:[#allocation4 + $0xfc] ss:$40 sps:$4 sm:$0xff]   ;;  %1286 = vst [vmem:[#allocation4 + $0x210] sm:$0xf] %v7715_v28  ;;  %v7734_v40 = vpack.c.bf16 %v1366_v34, %v1366_v34  ;;  %1467 = vst [vmem:[#allocation4 + $0x214] sm:$0xf] %v7735_v30  ;;  %3471 = vmatprep.mubr.bf16.mxu1 %v8918_v46  ;;  %8168 = vmatpush3.bf16.msra.mxu1 %v8939_v13  ;;  %v7717_v44 = vpack.c.bf16 %v1188_v42, %v1188_v42 }
 0x170   : > { %1015 = vst [vmem:[#allocation4 + $0x258] sm:$0xf] %v7735_v30  ;;  %1725 = vst [vmem:[#allocation4 + $0x1cc] sm:$0xf] %v7715_v28  ;;  %v8948_v43 = vld [vmem:[%s11260_s4 + $0x110] sm:$0xff]   ;;  %8169 = vmatprep.subr.bf16.mxu1 %v8946_v23  ;;  %v8949_v49 = vld [vmem:[%s11260_s4 + $0x1b8] sm:$0xff]   ;;  %3577 = vmatmul.mubr.bf16.gmra.mxu0 %v8915_v33 }
 0x171   : > { %1287 = vst [vmem:[#allocation4 + $0x238] sm:$0xf] %v7716_v37  ;;  %1726 = vst [vmem:[#allocation4 + $0x1f4] sm:$0xf] %v7716_v37  ;;  %v8922_v48 = vld [vmem:[#allocation4 + $0xf0] ss:$40 sps:$4 sm:$0xff]   ;;  %3584 = vmatprep.mubr.bf16.mxu0 %v8920_v39  ;;  %8236 = vmatpush3.bf16.msra.mxu0 %v8949_v49 }
 0x172   : > { %1466 = vst [vmem:[#allocation4 + $0x1ec] sm:$0xf] %v7734_v40  ;;  %1014 = vst [vmem:[#allocation4 + $0x230] sm:$0xf] %v7734_v40  ;;  %v8925_v50 = vld [vmem:[#allocation4 + $0x144] ss:$40 sps:$4 sm:$0xff]  }
 0x173   : > { %1556 = vst [vmem:[#allocation4 + $0x60] sm:$0xf] %v9770_v1  ;;  %1557 = vst [vmem:[#allocation4 + $0x88] sm:$0xf] %v9772_v2  ;;  %v8950_v52 = vld [vmem:[%s11260_s4 + $0x1f0] sm:$0xff]   ;;  %v1308_v53 = vld [vmem:[#allocation2 + $0xa8] sm:$0xff]  ;;  %8170 = vmatpush3.bf16.msra.mxu1 %v8948_v43 }
 0x174   : > { %1288 = vst [vmem:[#allocation4 + $0x260] sm:$0xf] %v7717_v44  ;;  %1558 = vst [vmem:[#allocation4 + $0xb0] sm:$0xf] %v9798_v24  ;;  %v1309_v54 = vld [vmem:[#allocation2 + $0x68] sm:$0xff]  ;;  %8237 = vmatprep.subr.bf16.mxu0 %v8950_v52  ;;  %v1321_v1 = vrot.slane %v1308_v53, 7  ;;  %v7698_v55 = vpack.c.bf16 %v1308_v53, %v1308_v53 }
 0x175   : > { %1559 = vst [vmem:[#allocation4 + $0xd8] sm:$0xf] %v9800_v26  ;;  %1727 = vst [vmem:[#allocation4 + $0x21c] sm:$0xf] %v7717_v44  ;;  %v1331_v2 = vrot.slane %v1309_v54, 7  ;;  %v7699_v20 = vpack.c.bf16 %v1309_v54, %v1309_v54  ;;  %v1128_v24 = vrot.slane %v1308_v53, 1 }
 0x176   : > { %1560 = vst [vmem:[#allocation4 + $0x100] sm:$0xf] %v9850_v22  ;;  %1561 = vst [vmem:[#allocation4 + $0x128] sm:$0xf] %v9854_v57  ;;  %v8923_v26 = vld [vmem:[#allocation4 + $0xf8] ss:$40 sps:$4 sm:$0xff]   ;;  %3472 = vmatmul.mubr.bf16.gmra.mxu1 %v8922_v48 }
 0x177   : > { %1562 = vst [vmem:[#allocation4 + $0x150] sm:$0xf] %v9858_v58  ;;  %1563 = vst [vmem:[#allocation4 + $0x178] sm:$0xf] %v9884_v12  ;;  %v1341_v59 = vsel %vm867_vm0, %v1321_v1, %v1331_v2  ;;  %v1351_v22 = vsel %vm867_vm0, %v1331_v2, %v1321_v1  ;;  %v1138_v57 = vrot.slane %v1309_v54, 1  ;;  %v8955_v61 = vld [vmem:[%s11260_s4 + $0x1b0] sm:$0xff]   ;;  %3479 = vmatprep.mubr.bf16.mxu1 %v8925_v50 }
 0x178   : > { %1714 = vst [vmem:[#allocation4 + $0x14] sm:$0xf] %v9784_v11  ;;  %1116 = vst [vmem:[#allocation4 + $0x284] sm:$0xf] %v7698_v55  ;;  %v8927_v58 = vld [vmem:[#allocation4 + $0x14c] ss:$40 sps:$4 sm:$0xff]   ;;  %v7737_v11 = vpack.c.bf16 %v1341_v59, %v1341_v59  ;;  %8238 = vmatpush3.bf16.msra.mxu0 %v8955_v61 }
 0x179   : > { %1117 = vst [vmem:[#allocation4 + $0x2ac] sm:$0xf] %v7699_v20  ;;  %2007 = vst [vmem:[#allocation4 + $0x1fc] sm:$0xf] %v7698_v55  ;;  %v1368_v12 = vsel %vm890_vm1, %v1351_v22, 0.0  ;;  %v1149_v63 = vsel %vm1140_vm2, %v1128_v24, %v1138_v57  ;;  %v1159_v3 = vsel %vm1140_vm2, %v1138_v57, %v1128_v24  ;;  %3585 = vmatmul.mubr.bf16.gmra.mxu0 %v8923_v26  ;;  %v8958_v6 = vld [vmem:[%s11260_s4 + $0x1e8] sm:$0xff]  }
 0x17a   : > { %2008 = vst [vmem:[#allocation4 + $0x224] sm:$0xf] %v7699_v20  ;;  %1568 = vst [vmem:[#allocation4 + $0x240] sm:$0xf] %v7698_v55  ;;  %v7736_v62 = vpack.c.bf16 %v1368_v12, %v1368_v12  ;;  %v8930_v4 = vld [vmem:[#allocation4 + $0x140] ss:$40 sps:$4 sm:$0xff]   ;;  %v10013_v5 = vpack.c.bf16 %v1149_v63, %v1149_v63  ;;  %3592 = vmatprep.mubr.bf16.mxu0 %v8927_v58  ;;  %8239 = vmatprep.subr.bf16.mxu0 %v8958_v6 }
 0x17b   : > { %1569 = vst [vmem:[#allocation4 + $0x268] sm:$0xf] %v7699_v20  ;;  %1715 = vst [vmem:[#allocation4 + $0x3c] sm:$0xf] %v9792_v16  ;;  %v1190_v0 = vsel %vm1166_vm3, %v1159_v3, 0.0  ;;  %v8959_v8 = vld [vmem:[%s11260_s4 + $0x1a8] sm:$0xff]  }
 0x17c   : > { %1469 = vst [vmem:[#allocation4 + $0x264] sm:$0xf] %v7737_v11  ;;  %1017 = vst [vmem:[#allocation4 + $0x2a8] sm:$0xf] %v7737_v11  ;;  %v8932_v16 = vld [vmem:[#allocation4 + $0x194] ss:$40 sps:$4 sm:$0xff]   ;;  %v10020_v7 = vpack.c.bf16 %v1190_v0, %v1190_v0  ;;  %8240 = vmatpush3.bf16.msra.mxu0 %v8959_v8 }
 0x17d   : > { %1716 = vst [vmem:[#allocation4 + $0x64] sm:$0xf] %v9815_v38  ;;  %1717 = vst [vmem:[#allocation4 + $0x8c] sm:$0xf] %v9823_v41  ;;  %v8931_v38 = vld [vmem:[#allocation4 + $0x148] ss:$40 sps:$4 sm:$0xff]  }
 0x17e   : > { %1908 = vst [vmem:[#allocation4 + $0x220] sm:$0xf] %v7737_v11  ;;  %1468 = vst [vmem:[#allocation4 + $0x23c] sm:$0xf] %v7736_v62  ;;  %v8960_v41 = vld [vmem:[%s11260_s4 + $0x148] sm:$0xff]   ;;  %v8962_v13 = vld [vmem:[%s11260_s4 + $0x1e0] sm:$0xff]   ;;  %3480 = vmatmul.mubr.bf16.gmra.mxu1 %v8930_v4 }
 0x17f   : > { %1016 = vst [vmem:[#allocation4 + $0x280] sm:$0xf] %v7736_v62  ;;  %1907 = vst [vmem:[#allocation4 + $0x1f8] sm:$0xf] %v7736_v62  ;;  %v8934_v9 = vld [vmem:[#allocation4 + $0x19c] ss:$40 sps:$4 sm:$0xff]   ;;  %8171 = vmatprep.subr.bf16.mxu1 %v8960_v41  ;;  %3487 = vmatprep.mubr.bf16.mxu1 %v8932_v16 }
 0x180   : > { %1289 = vst [vmem:[#allocation4 + $0x288] sm:$0xf] %v10013_v5  ;;  %1728 = vst [vmem:[#allocation4 + $0x244] sm:$0xf] %v10013_v5  ;;  %v8961_v10 = vld [vmem:[%s11260_s4 + $0x108] sm:$0xff]   ;;  %v1310_v15 = vld [vmem:[#allocation2 + $0x30] sm:$0xff]  ;;  %8241 = vmatprep.subr.bf16.mxu0 %v8962_v13 }
 0x181   : > { %1290 = vst [vmem:[#allocation4 + $0x2b0] sm:$0xf] %v10020_v7  ;;  %1729 = vst [vmem:[#allocation4 + $0x26c] sm:$0xf] %v10020_v7  ;;  %v1311_v17 = vld [vmem:[#allocation2 + $0x58] sm:$0xff]  ;;  %8172 = vmatpush3.bf16.msra.mxu1 %v8961_v10  ;;  %v1322_v46 = vrot.slane %v1310_v15, 7  ;;  %v7700_v18 = vpack.c.bf16 %v1310_v15, %v1310_v15  ;;  %3593 = vmatmul.mubr.bf16.gmra.mxu0 %v8931_v38 }
 0x182   : > { %1718 = vst [vmem:[#allocation4 + $0xb4] sm:$0xf] %v9837_v51  ;;  %1719 = vst [vmem:[#allocation4 + $0xdc] sm:$0xf] %v9860_v60  ;;  %v1332_v47 = vrot.slane %v1311_v17, 7  ;;  %v7701_v19 = vpack.c.bf16 %v1311_v17, %v1311_v17  ;;  %v9388_v21 = vmov 0   ;;  %3600 = vmatprep.mubr.bf16.mxu0 %v8934_v9 }
 0x183   : > { %804 = vst [vmem:[#allocation4 + $0x24] sm:$0xf] %v9388_v21  ;;  %805 = vst [vmem:[#allocation4 + $0x4c] sm:$0xf] %v9388_v21  ;;  %v1129_v51 = vrot.slane %v1310_v15, 1  ;;  %v8967_v29 = vld [vmem:[%s11260_s4 + $0x1a0] sm:$0xff]  }
 0x184   : > { %806 = vst [vmem:[#allocation4 + $0x74] sm:$0xf] %v9388_v21  ;;  %807 = vst [vmem:[#allocation4 + $0x9c] sm:$0xf] %v9388_v21  ;;  %v8936_v60 = vld [vmem:[#allocation4 + $0x190] ss:$40 sps:$4 sm:$0xff]   ;;  %v1342_v23 = vsel %vm867_vm0, %v1322_v46, %v1332_v47  ;;  %v1352_v28 = vsel %vm867_vm0, %v1332_v47, %v1322_v46  ;;  %8242 = vmatpush3.bf16.msra.mxu0 %v8967_v29 }
 0x185   : > { %808 = vst [vmem:[#allocation4 + $0xc4] sm:$0xf] %v9388_v21  ;;  %809 = vst [vmem:[#allocation4 + $0xec] sm:$0xf] %v9388_v21  ;;  %v1139_v30 = vrot.slane %v1311_v17, 1  ;;  %v1370_v32 = vsel %vm890_vm1, %v1352_v28, 0.0  ;;  %v7739_v33 = vpack.c.bf16 %v1342_v23, %v1342_v23 }
 0x186   : > { %810 = vst [vmem:[#allocation4 + $0x114] sm:$0xf] %v9388_v21  ;;  %811 = vst [vmem:[#allocation4 + $0x13c] sm:$0xf] %v9388_v21  ;;  %v8970_v34 = vld [vmem:[%s11260_s4 + $0x1d8] sm:$0xff]   ;;  %v7738_v37 = vpack.c.bf16 %v1370_v32, %v1370_v32  ;;  %v8972_v48 = vld [vmem:[%s11260_s4 + $0x140] sm:$0xff]   ;;  %3488 = vmatmul.mubr.bf16.gmra.mxu1 %v8936_v60 }
 0x187   : > { %812 = vst [vmem:[#allocation4 + $0x164] sm:$0xf] %v9388_v21  ;;  %813 = vst [vmem:[#allocation4 + $0x18c] sm:$0xf] %v9388_v21  ;;  %v8937_v36 = vld [vmem:[#allocation4 + $0x198] ss:$40 sps:$4 sm:$0xff]   ;;  %v1150_v39 = vsel %vm1140_vm2, %v1129_v51, %v1139_v30  ;;  %v1160_v40 = vsel %vm1140_vm2, %v1139_v30, %v1129_v51  ;;  %8243 = vmatprep.subr.bf16.mxu0 %v8970_v34  ;;  %8173 = vmatprep.subr.bf16.mxu1 %v8972_v48 }
 0x188   : > { %814 = vst [vmem:[#allocation4 + $0x1b4] sm:$0xf] %v9388_v21  ;;  %815 = vst [vmem:[#allocation4 + $0x1dc] sm:$0xf] %v9388_v21  ;;  %v8942_v42 = vld [vmem:[#allocation4 + $0x1ec] ss:$40 sps:$4 sm:$0xff]   ;;  %v10063_v44 = vpack.c.bf16 %v1150_v39, %v1150_v39 }
 0x189   : > { %816 = vst [vmem:[#allocation4 + $0x204] sm:$0xf] %v9388_v21  ;;  %817 = vst [vmem:[#allocation4 + $0x22c] sm:$0xf] %v9388_v21  ;;  %v8971_v43 = vld [vmem:[%s11260_s4 + $0x198] sm:$0xff]   ;;  %v8973_v50 = vld [vmem:[%s11260_s4 + $0x1d0] sm:$0xff]   ;;  %3601 = vmatmul.mubr.bf16.gmra.mxu0 %v8937_v36 }
 0x18a   : > { %818 = vst [vmem:[#allocation4 + $0x254] sm:$0xf] %v9388_v21  ;;  %819 = vst [vmem:[#allocation4 + $0x27c] sm:$0xf] %v9388_v21  ;;  %v1313_v52 = vld [vmem:[#allocation2 + $0xb8] sm:$0xff]  ;;  %8244 = vmatpush3.bf16.msra.mxu0 %v8971_v43  ;;  %v8978_v55 = vld [vmem:[%s11260_s4 + $0x100] sm:$0xff]   ;;  %3608 = vmatprep.mubr.bf16.mxu0 %v8942_v42 }
 0x18b   : > { %820 = vst [vmem:[#allocation4 + $0x2a4] sm:$0xf] %v9388_v21  ;;  %821 = vst [vmem:[#allocation4 + $0x2cc] sm:$0xf] %v9388_v21  ;;  %v1333_v53 = vrot.slane %v1313_v52, 7  ;;  %v7819_v1 = vpack.c.bf16 %v1313_v52, %v1313_v52  ;;  %8245 = vmatprep.subr.bf16.mxu0 %v8973_v50  ;;  %v8979_v22 = vld [vmem:[%s11260_s4 + $0x190] sm:$0xff]   ;;  %8174 = vmatpush3.bf16.msra.mxu1 %v8978_v55 }
 0x18c   : > { %822 = vst [vmem:[#allocation4 + $0x2f4] sm:$0xf] %v9388_v21  ;;  %823 = vst [vmem:[#allocation4 + $0x31c] sm:$0xf] %v9388_v21  ;;  %v8944_v2 = vld [vmem:[#allocation4 + $0x1e0] ss:$40 sps:$4 sm:$0xff]  }
 0x18d   : > { %1720 = vst [vmem:[#allocation4 + $0x104] sm:$0xf] %v9899_v31  ;;  %1118 = vst [vmem:[#allocation4 + $0x2d4] sm:$0xf] %v7700_v18  ;;  %v8940_v31 = vld [vmem:[#allocation4 + $0x1e4] ss:$40 sps:$4 sm:$0xff]  }
 0x18e   : > { %1119 = vst [vmem:[#allocation4 + $0x2fc] sm:$0xf] %v7701_v19  ;;  %2009 = vst [vmem:[#allocation4 + $0x24c] sm:$0xf] %v7700_v18  ;;  %3495 = vmatprep.mubr.bf16.mxu1 %v8940_v31  ;;  %v8951_v24 = vld [vmem:[#allocation4 + $0x234] ss:$40 sps:$4 sm:$0xff]   ;;  %8246 = vmatpush3.bf16.msra.mxu0 %v8979_v22 }
 0x18f   : > { %2010 = vst [vmem:[#allocation4 + $0x274] sm:$0xf] %v7701_v19  ;;  %1570 = vst [vmem:[#allocation4 + $0x290] sm:$0xf] %v7700_v18  ;;  %v2033_v57 = vrot.slane %v1313_v52, 1  ;;  %v8982_v11 = vld [vmem:[%s11260_s4 + $0x1c8] sm:$0xff]   ;;  %3496 = vmatmul.mubr.bf16.gmra.mxu1 %v8944_v2 }
 0x190   : > { %1571 = vst [vmem:[#allocation4 + $0x2b8] sm:$0xf] %v7701_v19  ;;  %1721 = vst [vmem:[#allocation4 + $0x12c] sm:$0xf] %v9906_v35  ;;  %v1192_v35 = vsel %vm1166_vm3, %v1160_v40, 0.0  ;;  %v8983_v62 = vld [vmem:[%s11260_s4 + $0x188] sm:$0xff]   ;;  %8247 = vmatprep.subr.bf16.mxu0 %v8982_v11  ;;  %3503 = vmatprep.mubr.bf16.mxu1 %v8951_v24 }
 0x191   : > { %1471 = vst [vmem:[#allocation4 + $0x2b4] sm:$0xf] %v7739_v33  ;;  %1019 = vst [vmem:[#allocation4 + $0x2f8] sm:$0xf] %v7739_v33  ;;  %v10070_v49 = vpack.c.bf16 %v1192_v35, %v1192_v35  ;;  %v8945_v16 = vld [vmem:[#allocation4 + $0x1e8] ss:$40 sps:$4 sm:$0xff]  }
 0x192   : > { %1722 = vst [vmem:[#allocation4 + $0x154] sm:$0xf] %v9919_v45  ;;  %1723 = vst [vmem:[#allocation4 + $0x17c] sm:$0xf] %v9932_v56  ;;  %v1312_v45 = vld [vmem:[#allocation2 + $0x80] sm:$0xff]  ;;  %8248 = vmatpush3.bf16.msra.mxu0 %v8983_v62  ;;  %v8989_v13 = vld [vmem:[%s11260_s4 + $0x278] sm:$0xff]  }
 0x193   : > { %1910 = vst [vmem:[#allocation4 + $0x270] sm:$0xf] %v7739_v33  ;;  %1470 = vst [vmem:[#allocation4 + $0x28c] sm:$0xf] %v7738_v37  ;;  %v1323_v56 = vrot.slane %v1312_v45, 7  ;;  %v7818_v54 = vpack.c.bf16 %v1312_v45, %v1312_v45  ;;  %v2023_v20 = vrot.slane %v1312_v45, 1  ;;  %3609 = vmatmul.mubr.bf16.gmra.mxu0 %v8945_v16  ;;  %8311 = vmatprep.subr.bf16.mxu1 %v8989_v13 }
 0x194   : > { %1018 = vst [vmem:[#allocation4 + $0x2d0] sm:$0xf] %v7738_v37  ;;  %1909 = vst [vmem:[#allocation4 + $0x248] sm:$0xf] %v7738_v37  ;;  %v8953_v6 = vld [vmem:[#allocation4 + $0x23c] ss:$40 sps:$4 sm:$0xff]  }
 0x195   : > { %1291 = vst [vmem:[#allocation4 + $0x2d8] sm:$0xf] %v10063_v44  ;;  %1730 = vst [vmem:[#allocation4 + $0x294] sm:$0xf] %v10063_v44  ;;  %v1343_v26 = vsel %vm867_vm0, %v1323_v56, %v1333_v53  ;;  %v1353_v59 = vsel %vm867_vm0, %v1333_v53, %v1323_v56  ;;  %v1603_v63 = vsel %vm1140_vm2, %v2023_v20, %v2033_v57  ;;  %v8984_v38 = vld [vmem:[%s11260_s4 + $0x1c0] sm:$0xff]   ;;  %3616 = vmatprep.mubr.bf16.mxu0 %v8953_v6  ;;  %v1736_v17 = vld [vmem:[#allocation2 + $0x28] sm:$0xff] }
 0x196   : > { %1292 = vst [vmem:[#allocation4 + $0x300] sm:$0xf] %v10070_v49  ;;  %1731 = vst [vmem:[#allocation4 + $0x2bc] sm:$0xf] %v10070_v49  ;;  %v1372_v58 = vsel %vm890_vm1, %v1353_v59, 0.0  ;;  %v7741_v12 = vpack.c.bf16 %v1343_v26, %v1343_v26  ;;  %v1613_v3 = vsel %vm1140_vm2, %v2033_v57, %v2023_v20  ;;  %v10103_v0 = vpack.c.bf16 %v1603_v63, %v1603_v63  ;;  %v8988_v10 = vld [vmem:[%s11260_s4 + $0x180] sm:$0xff]  }
 0x197   : > { %2011 = vst [vmem:[#allocation4 + $0x29c] sm:$0xf] %v7818_v54  ;;  %2012 = vst [vmem:[#allocation4 + $0x2c4] sm:$0xf] %v7819_v1  ;;  %v7740_v61 = vpack.c.bf16 %v1372_v58, %v1372_v58  ;;  %v1633_v4 = vsel %vm1166_vm3, %v1613_v3, 0.0  ;;  %8249 = vmatprep.subr.bf16.mxu0 %v8984_v38  ;;  %v1735_v15 = vld [vmem:[#allocation2 + $0x60] sm:$0xff]  ;;  %v7803_v19 = vpack.c.bf16 %v1736_v17, %v1736_v17 }
 0x198   : > { %1572 = vst [vmem:[#allocation4 + $0x2e0] sm:$0xf] %v7818_v54  ;;  %1573 = vst [vmem:[#allocation4 + $0x308] sm:$0xf] %v7819_v1  ;;  %v10105_v8 = vpack.c.bf16 %v1633_v4, %v1633_v4  ;;  %v8956_v41 = vld [vmem:[#allocation4 + $0x230] ss:$40 sps:$4 sm:$0xff]   ;;  %8250 = vmatpush3.bf16.msra.mxu0 %v8988_v10  ;;  %v7802_v18 = vpack.c.bf16 %v1735_v15, %v1735_v15 }
 0x199   : > { %1473 = vst [vmem:[#allocation4 + $0x304] sm:$0xf] %v7741_v12  ;;  %1912 = vst [vmem:[#allocation4 + $0x2c0] sm:$0xf] %v7741_v12  ;;  %v8963_v9 = vld [vmem:[#allocation4 + $0x284] ss:$40 sps:$4 sm:$0xff]   ;;  %3504 = vmatmul.mubr.bf16.gmra.mxu1 %v8956_v41 }
 0x19a   : > { %1472 = vst [vmem:[#allocation4 + $0x2dc] sm:$0xf] %v7740_v61  ;;  %1911 = vst [vmem:[#allocation4 + $0x298] sm:$0xf] %v7740_v61  ;;  %v1755_v46 = vrot.slane %v1735_v15, 7  ;;  %v1765_v47 = vrot.slane %v1736_v17, 7  ;;  %3511 = vmatprep.mubr.bf16.mxu1 %v8963_v9 }
 0x19b   : > { %1732 = vst [vmem:[#allocation4 + $0x2e4] sm:$0xf] %v10103_v0  ;;  %1733 = vst [vmem:[#allocation4 + $0x30c] sm:$0xf] %v10105_v8  ;;  %v8957_v21 = vld [vmem:[#allocation4 + $0x238] ss:$40 sps:$4 sm:$0xff]  }
 0x19c   : > { %v2015_v51 = vrot.slane %v1735_v15, 1  ;;  %v1775_v60 = vsel %vm867_vm0, %v1755_v46, %v1765_v47  ;;  %v1785_v23 = vsel %vm867_vm0, %v1765_v47, %v1755_v46  ;;  %1995 = vst [vmem:[#allocation4 + $0x1c] sm:$0xf] %v7802_v18  ;;  %1996 = vst [vmem:[#allocation4 + $0x44] sm:$0xf] %v7803_v19  ;;  %v2025_v28 = vrot.slane %v1736_v17, 1  ;;  %3617 = vmatmul.mubr.bf16.gmra.mxu0 %v8957_v21 }
 0x19d   : > { %v8965_v29 = vld [vmem:[#allocation4 + $0x28c] ss:$40 sps:$4 sm:$0xff]   ;;  %v1795_v30 = vsel %vm890_vm1, %v1785_v23, 0.0  ;;  %v7783_v31 = vpack.c.bf16 %v1775_v60, %v1775_v60  ;;  %v1737_v32 = vld [vmem:[#allocation2 + $0x40] sm:$0xff]  ;;  %v1738_v34 = vld [vmem:[#allocation2 + $0x78] sm:$0xff] }
 0x19e   : > { %v7782_v33 = vpack.c.bf16 %v1795_v30, %v1795_v30  ;;  %v1756_v36 = vrot.slane %v1737_v32, 7  ;;  %v7804_v37 = vpack.c.bf16 %v1737_v32, %v1737_v32  ;;  %v2016_v39 = vrot.slane %v1737_v32, 1  ;;  %3624 = vmatprep.mubr.bf16.mxu0 %v8965_v29  ;;  %v8968_v45 = vld [vmem:[#allocation4 + $0x280] ss:$40 sps:$4 sm:$0xff]   ;;  %v8974_v52 = vld [vmem:[#allocation4 + $0x2d4] ss:$40 sps:$4 sm:$0xff]  }
 0x19f   : > { %1896 = vst [vmem:[#allocation4 + $0x40] sm:$0xf] %v7783_v31  ;;  %v1766_v40 = vrot.slane %v1738_v34, 7  ;;  %v7805_v42 = vpack.c.bf16 %v1738_v34, %v1738_v34  ;;  %v2026_v43 = vrot.slane %v1738_v34, 1  ;;  %v2035_v35 = vsel %vm1140_vm2, %v2015_v51, %v2025_v28  ;;  %v1739_v20 = vld [vmem:[#allocation2 + $0x88] sm:$0xff]  ;;  %v1740_v24 = vld [vmem:[#allocation2 + $0x90] sm:$0xff] }
 0x1a0   : > { %1895 = vst [vmem:[#allocation4 + $0x18] sm:$0xf] %v7782_v33  ;;  %1997 = vst [vmem:[#allocation4 + $0x6c] sm:$0xf] %v7804_v37  ;;  %v2045_v48 = vsel %vm1140_vm2, %v2025_v28, %v2015_v51  ;;  %v7822_v50 = vpack.c.bf16 %v2035_v35, %v2035_v35  ;;  %v8969_v22 = vld [vmem:[#allocation4 + $0x288] ss:$40 sps:$4 sm:$0xff]   ;;  %v7806_v11 = vpack.c.bf16 %v1739_v20, %v1739_v20 }
 0x1a1   : > { %v1776_v56 = vsel %vm867_vm0, %v1756_v36, %v1766_v40  ;;  %v1786_v53 = vsel %vm867_vm0, %v1766_v40, %v1756_v36  ;;  %1998 = vst [vmem:[#allocation4 + $0x94] sm:$0xf] %v7805_v42  ;;  %v2056_v54 = vsel %vm1166_vm3, %v2045_v48, 0.0  ;;  %v2036_v1 = vsel %vm1140_vm2, %v2016_v39, %v2026_v43  ;;  %3512 = vmatmul.mubr.bf16.gmra.mxu1 %v8968_v45  ;;  %v8976_v4 = vld [vmem:[#allocation4 + $0x2dc] ss:$40 sps:$4 sm:$0xff]   ;;  %v1744_v45 = vld [vmem:[#allocation2 + $0x50] sm:$0xff] }
 0x1a2   : > { %v1797_v2 = vsel %vm890_vm1, %v1786_v53, 0.0  ;;  %v7785_v55 = vpack.c.bf16 %v1776_v56, %v1776_v56  ;;  %v7823_v26 = vpack.c.bf16 %v2056_v54, %v2056_v54  ;;  %2155 = vst [vmem:[#allocation4 + $0x20] sm:$0xf] %v7822_v50  ;;  %v2046_v59 = vsel %vm1140_vm2, %v2026_v43, %v2016_v39  ;;  %1999 = vst [vmem:[#allocation4 + $0xbc] sm:$0xf] %v7806_v11  ;;  %v1741_v10 = vld [vmem:[#allocation2 + $0x18] sm:$0xff] }
 0x1a3   : > { %v7784_v57 = vpack.c.bf16 %v1797_v2, %v1797_v2  ;;  %v1757_v58 = vrot.slane %v1739_v20, 7  ;;  %v1767_v12 = vrot.slane %v1740_v24, 7  ;;  %v7807_v61 = vpack.c.bf16 %v1740_v24, %v1740_v24  ;;  %3519 = vmatprep.mubr.bf16.mxu1 %v8974_v52  ;;  %v8980_v17 = vld [vmem:[#allocation4 + $0x2d0] ss:$40 sps:$4 sm:$0xff]   ;;  %v8987_v31 = vld [vmem:[#allocation4 + $0x14] ss:$40 sps:$4 sm:$0xff]  }
 0x1a4   : > { %1898 = vst [vmem:[#allocation4 + $0x90] sm:$0xf] %v7785_v55  ;;  %v2017_v62 = vrot.slane %v1739_v20, 1  ;;  %v2027_v63 = vrot.slane %v1740_v24, 1  ;;  %2156 = vst [vmem:[#allocation4 + $0x48] sm:$0xf] %v7823_v26  ;;  %v7824_v3 = vpack.c.bf16 %v2036_v1, %v2036_v1  ;;  %v7808_v18 = vpack.c.bf16 %v1741_v10, %v1741_v10  ;;  %3625 = vmatmul.mubr.bf16.gmra.mxu0 %v8969_v22 }
 0x1a5   : > { %1897 = vst [vmem:[#allocation4 + $0x68] sm:$0xf] %v7784_v57  ;;  %v1777_v16 = vsel %vm867_vm0, %v1757_v58, %v1767_v12  ;;  %v1787_v6 = vsel %vm867_vm0, %v1767_v12, %v1757_v58  ;;  %v2058_v38 = vsel %vm1166_vm3, %v2046_v59, 0.0  ;;  %2000 = vst [vmem:[#allocation4 + $0xe4] sm:$0xf] %v7807_v61  ;;  %v1758_v47 = vrot.slane %v1741_v10, 7  ;;  %3632 = vmatprep.mubr.bf16.mxu0 %v8976_v4 }
 0x1a6   : > { %v1799_v41 = vsel %vm890_vm1, %v1787_v6, 0.0  ;;  %v7787_v9 = vpack.c.bf16 %v1777_v16, %v1777_v16  ;;  %v7825_v13 = vpack.c.bf16 %v2058_v38, %v2058_v38  ;;  %2157 = vst [vmem:[#allocation4 + $0x70] sm:$0xf] %v7824_v3  ;;  %v2037_v15 = vsel %vm1140_vm2, %v2017_v62, %v2027_v63  ;;  %v1742_v21 = vld [vmem:[#allocation2 + $0x98] sm:$0xff]  ;;  %2001 = vst [vmem:[#allocation4 + $0x10c] sm:$0xf] %v7808_v18 }
 0x1a7   : > { %v7786_v46 = vpack.c.bf16 %v1799_v41, %v1799_v41  ;;  %v2047_v19 = vsel %vm1140_vm2, %v2027_v63, %v2017_v62  ;;  %v2018_v51 = vrot.slane %v1741_v10, 1  ;;  %v7826_v60 = vpack.c.bf16 %v2037_v15, %v2037_v15  ;;  %v8981_v39 = vld [vmem:[#allocation4 + $0x2d8] ss:$40 sps:$4 sm:$0xff]   ;;  %v8992_v40 = vld [vmem:[#allocation4 + $0x1c] ss:$40 sps:$4 sm:$0xff]   ;;  %v1745_v24 = vld [vmem:[#allocation2 + $0x70] sm:$0xff] }
 0x1a8   : > { %1900 = vst [vmem:[#allocation4 + $0xe0] sm:$0xf] %v7787_v9  ;;  %2158 = vst [vmem:[#allocation4 + $0x98] sm:$0xf] %v7825_v13  ;;  %v1768_v23 = vrot.slane %v1742_v21, 7  ;;  %v7809_v28 = vpack.c.bf16 %v1742_v21, %v1742_v21  ;;  %v2028_v29 = vrot.slane %v1742_v21, 1  ;;  %v7811_v1 = vpack.c.bf16 %v1744_v45, %v1744_v45 }
 0x1a9   : > { %1899 = vst [vmem:[#allocation4 + $0xb8] sm:$0xf] %v7786_v46  ;;  %v2060_v30 = vsel %vm1166_vm3, %v2047_v19, 0.0  ;;  %2159 = vst [vmem:[#allocation4 + $0xc0] sm:$0xf] %v7826_v60  ;;  %3520 = vmatmul.mubr.bf16.gmra.mxu1 %v8980_v17  ;;  %v1743_v50 = vld [vmem:[#allocation2 + $0x38] sm:$0xff]  ;;  %v7812_v11 = vpack.c.bf16 %v1745_v24, %v1745_v24 }
 0x1aa   : > { %v7827_v32 = vpack.c.bf16 %v2060_v30, %v2060_v30  ;;  %v1778_v33 = vsel %vm867_vm0, %v1758_v47, %v1768_v23  ;;  %v1788_v34 = vsel %vm867_vm0, %v1768_v23, %v1758_v47  ;;  %2002 = vst [vmem:[#allocation4 + $0x134] sm:$0xf] %v7809_v28  ;;  %v2038_v36 = vsel %vm1140_vm2, %v2018_v51, %v2028_v29  ;;  %v8985_v2 = vld [vmem:[#allocation4 + $0x10] ss:$40 sps:$4 sm:$0xff]   ;;  %v8994_v22 = vld [vmem:[#allocation4 + $0x64] ss:$40 sps:$4 sm:$0xff]  }
 0x1ab   : > { %v2048_v37 = vsel %vm1140_vm2, %v2028_v29, %v2018_v51  ;;  %v1801_v42 = vsel %vm890_vm1, %v1788_v34, 0.0  ;;  %v7789_v43 = vpack.c.bf16 %v1778_v33, %v1778_v33  ;;  %v7828_v35 = vpack.c.bf16 %v2038_v36, %v2038_v36  ;;  %3673 = vmatprep.mubr.bf16.mxu1 %v8987_v31  ;;  %2167 = vst [vmem:[#allocation4 + $0x200] sm:$0xf] %v10013_v5  ;;  %v8993_v59 = vld [vmem:[%s11260_s4 + $0x238] sm:$0xff]   ;;  %v1746_v62 = vld [vmem:[#allocation2 + $0xa0] sm:$0xff]  ;;  %v9000_v41 = vld [vmem:[%s11260_s4 + $0x270] sm:$0xff]  }
 0x1ac   : > { %2160 = vst [vmem:[#allocation4 + $0xe8] sm:$0xf] %v7827_v32  ;;  %v7788_v48 = vpack.c.bf16 %v1801_v42, %v1801_v42  ;;  %v2062_v52 = vsel %vm1166_vm3, %v2048_v37, 0.0  ;;  %v1759_v56 = vrot.slane %v1743_v50, 7  ;;  %v1769_v53 = vrot.slane %v1744_v45, 7  ;;  %3633 = vmatmul.mubr.bf16.gmra.mxu0 %v8981_v39  ;;  %v9001_v60 = vld [vmem:[%s11260_s4 + $0x230] sm:$0xff]  }
 0x1ad   : > { %1902 = vst [vmem:[#allocation4 + $0x130] sm:$0xf] %v7789_v43  ;;  %v7810_v54 = vpack.c.bf16 %v1743_v50, %v1743_v50  ;;  %2161 = vst [vmem:[#allocation4 + $0x110] sm:$0xf] %v7828_v35  ;;  %v2019_v55 = vrot.slane %v1743_v50, 1  ;;  %v2029_v20 = vrot.slane %v1744_v45, 1  ;;  %v7829_v26 = vpack.c.bf16 %v2062_v52, %v2062_v52  ;;  %3786 = vmatprep.mubr.bf16.mxu0 %v8992_v40 }
 0x1ae   : > { %1901 = vst [vmem:[#allocation4 + $0x108] sm:$0xf] %v7788_v48  ;;  %v1779_v57 = vsel %vm867_vm0, %v1759_v56, %v1769_v53  ;;  %v1789_v58 = vsel %vm867_vm0, %v1769_v53, %v1759_v56  ;;  %2004 = vst [vmem:[#allocation4 + $0x184] sm:$0xf] %v7811_v1  ;;  %v1760_v12 = vrot.slane %v1745_v24, 7  ;;  %v1770_v16 = vrot.slane %v1746_v62, 7 }
 0x1af   : > { %2003 = vst [vmem:[#allocation4 + $0x15c] sm:$0xf] %v7810_v54  ;;  %v1803_v5 = vsel %vm890_vm1, %v1789_v58, 0.0  ;;  %v7791_v61 = vpack.c.bf16 %v1779_v57, %v1779_v57  ;;  %2162 = vst [vmem:[#allocation4 + $0x138] sm:$0xf] %v7829_v26  ;;  %v2039_v63 = vsel %vm1140_vm2, %v2019_v55, %v2029_v20  ;;  %v2049_v3 = vsel %vm1140_vm2, %v2029_v20, %v2019_v55  ;;  %v9008_v30 = vld [vmem:[%s11260_s4 + $0x268] sm:$0xff]  }
 0x1b0   : > { %2168 = vst [vmem:[#allocation4 + $0x228] sm:$0xf] %v10020_v7  ;;  %v7790_v4 = vpack.c.bf16 %v1803_v5, %v1803_v5  ;;  %v7813_v6 = vpack.c.bf16 %v1746_v62, %v1746_v62  ;;  %2005 = vst [vmem:[#allocation4 + $0x1ac] sm:$0xf] %v7812_v11  ;;  %v2020_v38 = vrot.slane %v1745_v24, 1  ;;  %v2030_v9 = vrot.slane %v1746_v62, 1 }
 0x1b1   : > { %1904 = vst [vmem:[#allocation4 + $0x180] sm:$0xf] %v7791_v61  ;;  %v2064_v10 = vsel %vm1166_vm3, %v2049_v3, 0.0  ;;  %v7830_v13 = vpack.c.bf16 %v2039_v63, %v2039_v63  ;;  %v8990_v15 = vld [vmem:[#allocation4 + $0x18] ss:$40 sps:$4 sm:$0xff]   ;;  %v1780_v7 = vsel %vm867_vm0, %v1760_v12, %v1770_v16  ;;  %v1790_v17 = vsel %vm867_vm0, %v1770_v16, %v1760_v12  ;;  %3674 = vmatmul.mubr.bf16.vlgmr.msra.gmra.mxu1 %v8985_v2  ;;  %v9009_v34 = vld [vmem:[%s11260_s4 + $0x228] sm:$0xff]  }
 0x1b2   : > { %1903 = vst [vmem:[#allocation4 + $0x158] sm:$0xf] %v7790_v4  ;;  %2006 = vst [vmem:[#allocation4 + $0x1d4] sm:$0xf] %v7813_v6  ;;  %v7831_v46 = vpack.c.bf16 %v2064_v10, %v2064_v10  ;;  %v8997_v47 = vld [vmem:[#allocation4 + $0x6c] ss:$40 sps:$4 sm:$0xff]   ;;  %v7793_v19 = vpack.c.bf16 %v1780_v7, %v1780_v7  ;;  %v2040_v21 = vsel %vm1140_vm2, %v2020_v38, %v2030_v9  ;;  %8312 = vmatpush3.bf16.msra.mxu1 %v8993_v59 }
 0x1b3   : > { %v1805_v18 = vsel %vm890_vm1, %v1790_v17, 0.0  ;;  %2163 = vst [vmem:[#allocation4 + $0x160] sm:$0xf] %v7830_v13  ;;  %v2050_v51 = vsel %vm1140_vm2, %v2030_v9, %v2020_v38  ;;  %3681 = vmatprep.mubr.bf16.mxu1 %v8994_v22  ;;  %v7832_v29 = vpack.c.bf16 %v2040_v21, %v2040_v21  ;;  %8313 = vmatprep.subr.bf16.mxu1 %v9000_v41  ;;  %2169 = vst [vmem:[#allocation4 + $0x250] sm:$0xf] %v10063_v44  ;;  %v9016_v36 = vld [vmem:[%s11260_s4 + $0x260] sm:$0xff]  }
 0x1b4   : > { %v7792_v23 = vpack.c.bf16 %v1805_v18, %v1805_v18  ;;  %2164 = vst [vmem:[#allocation4 + $0x188] sm:$0xf] %v7831_v46  ;;  %v2066_v28 = vsel %vm1166_vm3, %v2050_v51, 0.0  ;;  %1906 = vst [vmem:[#allocation4 + $0x1d0] sm:$0xf] %v7793_v19  ;;  %3787 = vmatmul.mubr.bf16.vlgmr.msra.gmra.mxu0 %v8990_v15  ;;  %v9019_v44 = vld [vmem:[%s11260_s4 + $0x220] sm:$0xff]  }
 0x1b5   : > { %v7833_v31 = vpack.c.bf16 %v2066_v28, %v2066_v28  ;;  %2165 = vst [vmem:[#allocation4 + $0x1b0] sm:$0xf] %v7832_v29  ;;  %v8996_v32 = vld [vmem:[#allocation4 + $0x60] ss:$40 sps:$4 sm:$0xff]   ;;  %3794 = vmatprep.mubr.bf16.mxu0 %v8997_v47  ;;  %v9002_v33 = vld [vmem:[#allocation4 + $0xb4] ss:$40 sps:$4 sm:$0xff]  }
 0x1b6   : > { %1905 = vst [vmem:[#allocation4 + $0x1a8] sm:$0xf] %v7792_v23  ;;  %8314 = vmatpush3.bf16.msra.mxu1 %v9001_v60  ;;  %2170 = vst [vmem:[#allocation4 + $0x278] sm:$0xf] %v10070_v49  ;;  %v8999_v37 = vld [vmem:[#allocation4 + $0x68] ss:$40 sps:$4 sm:$0xff]  }
 0x1b7   : > { %2166 = vst [vmem:[#allocation4 + $0x1d8] sm:$0xf] %v7833_v31  ;;  %8315 = vmatprep.subr.bf16.mxu1 %v9008_v30  ;;  %v9005_v39 = vld [vmem:[#allocation4 + $0xbc] ss:$40 sps:$4 sm:$0xff]   ;;  %2171 = vst [vmem:[#allocation4 + $0x2a0] sm:$0xf] %v10103_v0 }
 0x1b8   : > { %2172 = vst [vmem:[#allocation4 + $0x2c8] sm:$0xf] %v10105_v8  ;;  %v9027_v40 = vld [vmem:[%s11260_s4 + $0x258] sm:$0xff]   ;;  %v9010_v42 = vld [vmem:[#allocation4 + $0x104] ss:$40 sps:$4 sm:$0xff]   ;;  %v9038_v0 = vld [vmem:[%s11260_s4 + $0x250] sm:$0xff]  }
 0x1b9   : > { %3682 = vmatmul.mubr.bf16.gmra.mxu1 %v8996_v32  ;;  %v9004_v49 = vld [vmem:[#allocation4 + $0xb0] ss:$40 sps:$4 sm:$0xff]   ;;  %v9013_v35 = vld [vmem:[#allocation4 + $0x10c] ss:$40 sps:$4 sm:$0xff]   ;;  %v1753_v45 = vld [vmem:[#allocation2 + $0x20] sm:$0xff] }
 0x1ba   : > { %3689 = vmatprep.mubr.bf16.mxu1 %v9002_v33  ;;  %8316 = vmatpush3.bf16.msra.mxu1 %v9009_v34  ;;  %v9030_v43 = vld [vmem:[%s11260_s4 + $0x218] sm:$0xff]   ;;  %v9039_v48 = vld [vmem:[%s11260_s4 + $0x210] sm:$0xff]   ;;  %v9046_v50 = vld [vmem:[%s11260_s4 + $0x248] sm:$0xff]   ;;  %v1764_v56 = vrot.slane %v1753_v45, 7  ;;  %v7820_v53 = vpack.c.bf16 %v1753_v45, %v1753_v45  ;;  %v2024_v54 = vrot.slane %v1753_v45, 1 }
 0x1bb   : > { %8317 = vmatprep.subr.bf16.mxu1 %v9016_v36  ;;  %v9007_v8 = vld [vmem:[#allocation4 + $0xb8] ss:$40 sps:$4 sm:$0xff]   ;;  %v1754_v52 = vld [vmem:[#allocation2 + $0x8] sm:$0xff]  ;;  %v9017_v24 = vld [vmem:[#allocation4 + $0x154] ss:$40 sps:$4 sm:$0xff]  }
 0x1bc   : > { %3795 = vmatmul.mubr.bf16.gmra.mxu0 %v8999_v37  ;;  %v9012_v1 = vld [vmem:[#allocation4 + $0x100] ss:$40 sps:$4 sm:$0xff]   ;;  %v1774_v2 = vrot.slane %v1754_v52, 7  ;;  %v7821_v55 = vpack.c.bf16 %v1754_v52, %v1754_v52  ;;  %v2034_v20 = vrot.slane %v1754_v52, 1  ;;  %2013 = vst [vmem:[#allocation4 + $0x2ec] sm:$0xf] %v7820_v53 }
 0x1bd   : > { %3802 = vmatprep.mubr.bf16.mxu0 %v9005_v39  ;;  %v9047_v26 = vld [vmem:[%s11260_s4 + $0x208] sm:$0xff]   ;;  %v9054_v12 = vld [vmem:[%s11260_s4 + $0x240] sm:$0xff]   ;;  %v9020_v38 = vld [vmem:[#allocation4 + $0x150] ss:$40 sps:$4 sm:$0xff]  }
 0x1be   : > { %8318 = vmatpush3.bf16.msra.mxu1 %v9019_v44  ;;  %v1784_v59 = vsel %vm867_vm0, %v1764_v56, %v1774_v2  ;;  %v1794_v22 = vsel %vm867_vm0, %v1774_v2, %v1764_v56  ;;  %2014 = vst [vmem:[#allocation4 + $0x314] sm:$0xf] %v7821_v55  ;;  %v2044_v57 = vsel %vm1140_vm2, %v2024_v54, %v2034_v20  ;;  %v9015_v62 = vld [vmem:[#allocation4 + $0x108] ss:$40 sps:$4 sm:$0xff]   ;;  %v9021_v4 = vld [vmem:[#allocation4 + $0x15c] ss:$40 sps:$4 sm:$0xff]  }
 0x1bf   : > { %8319 = vmatprep.subr.bf16.mxu1 %v9027_v40  ;;  %v2054_v58 = vsel %vm1140_vm2, %v2034_v20, %v2024_v54  ;;  %v1813_v11 = vsel %vm890_vm1, %v1794_v22, 0.0  ;;  %v7801_v5 = vpack.c.bf16 %v1784_v59, %v1784_v59  ;;  %v7840_v61 = vpack.c.bf16 %v2044_v57, %v2044_v57  ;;  %v9057_v6 = vld [vmem:[%s11260_s4 + $0x200] sm:$0xff]   ;;  %v9028_v10 = vld [vmem:[#allocation4 + $0x1ac] ss:$40 sps:$4 sm:$0xff]   ;;  %v9031_v7 = vld [vmem:[#allocation4 + $0x1a8] ss:$40 sps:$4 sm:$0xff]  }
 0x1c0   : > { %v7800_v63 = vpack.c.bf16 %v1813_v11, %v1813_v11  ;;  %v2074_v3 = vsel %vm1166_vm3, %v2054_v58, 0.0  ;;  %v9024_v41 = vld [vmem:[#allocation4 + $0x1a4] ss:$40 sps:$4 sm:$0xff]   ;;  %v9023_v9 = vld [vmem:[#allocation4 + $0x158] ss:$40 sps:$4 sm:$0xff]  }
 0x1c1   : > { %3690 = vmatmul.mubr.bf16.gmra.mxu1 %v9004_v49  ;;  %1914 = vst [vmem:[#allocation4 + $0x310] sm:$0xf] %v7801_v5  ;;  %v7841_v16 = vpack.c.bf16 %v2074_v3, %v2074_v3  ;;  %2173 = vst [vmem:[#allocation4 + $0x2f0] sm:$0xf] %v7840_v61  ;;  %v9026_v13 = vld [vmem:[#allocation4 + $0x1a0] ss:$40 sps:$4 sm:$0xff]  }
 0x1c2   : > { %3697 = vmatprep.mubr.bf16.mxu1 %v9010_v42  ;;  %8320 = vmatpush3.bf16.msra.mxu1 %v9030_v43  ;;  %1913 = vst [vmem:[#allocation4 + $0x2e8] sm:$0xf] %v7800_v63  ;;  %v9032_v15 = vld [vmem:[#allocation4 + $0x1f4] ss:$40 sps:$4 sm:$0xff]   ;;  %v9034_v46 = vld [vmem:[#allocation4 + $0x1f0] ss:$40 sps:$4 sm:$0xff]  }
 0x1c3   : > { %8321 = vmatprep.subr.bf16.mxu1 %v9038_v0  ;;  %2174 = vst [vmem:[#allocation4 + $0x318] sm:$0xf] %v7841_v16  ;;  %v9035_v17 = vld [vmem:[#allocation4 + $0x1fc] ss:$40 sps:$4 sm:$0xff]   ;;  %v9037_v18 = vld [vmem:[#allocation4 + $0x1f8] ss:$40 sps:$4 sm:$0xff]  }
 0x1c4   : > { %3803 = vmatmul.mubr.bf16.gmra.mxu0 %v9007_v8  ;;  %v9040_v47 = vld [vmem:[#allocation4 + $0x244] ss:$40 sps:$4 sm:$0xff]   ;;  %v9042_v21 = vld [vmem:[#allocation4 + $0x240] ss:$40 sps:$4 sm:$0xff]   ;;  %v9048_v51 = vld [vmem:[#allocation4 + $0x294] ss:$40 sps:$4 sm:$0xff]  }
 0x1c5   : > { %3810 = vmatprep.mubr.bf16.mxu0 %v9013_v35  ;;  %v9043_v19 = vld [vmem:[#allocation4 + $0x24c] ss:$40 sps:$4 sm:$0xff]   ;;  %v9045_v60 = vld [vmem:[#allocation4 + $0x248] ss:$40 sps:$4 sm:$0xff]   ;;  %v9051_v23 = vld [vmem:[#allocation4 + $0x29c] ss:$40 sps:$4 sm:$0xff]  }
 0x1c6   : > { %8322 = vmatpush3.bf16.msra.mxu1 %v9039_v48  ;;  %v9050_v28 = vld [vmem:[#allocation4 + $0x290] ss:$40 sps:$4 sm:$0xff]   ;;  %v9055_v29 = vld [vmem:[#allocation4 + $0x2e4] ss:$40 sps:$4 sm:$0xff]   ;;  %v9058_v32 = vld [vmem:[#allocation4 + $0x2e0] ss:$40 sps:$4 sm:$0xff]  }
 0x1c7   : > { %8323 = vmatprep.subr.bf16.mxu1 %v9046_v50  ;;  %v9053_v30 = vld [vmem:[#allocation4 + $0x298] ss:$40 sps:$4 sm:$0xff]   ;;  %v9059_v31 = vld [vmem:[#allocation4 + $0x2ec] ss:$40 sps:$4 sm:$0xff]  }
 0x1c8   : > { %v9064_v33 = vld [vmem:[#allocation4 + $0x24] ss:$40 sps:$4 sm:$0xff]   ;;  %v9062_v36 = vld [vmem:[#allocation4 + $0x20] ss:$40 sps:$4 sm:$0xff]   ;;  %v9065_v37 = vld [vmem:[#allocation4 + $0x74] ss:$40 sps:$4 sm:$0xff]  }
 0x1c9   : > { %3698 = vmatmul.mubr.bf16.gmra.mxu1 %v9012_v1  ;;  %v9061_v34 = vld [vmem:[#allocation4 + $0x2e8] ss:$40 sps:$4 sm:$0xff]   ;;  %v9068_v44 = vld [vmem:[#allocation4 + $0xc4] ss:$40 sps:$4 sm:$0xff]   ;;  %v9071_v49 = vld [vmem:[#allocation4 + $0x114] ss:$40 sps:$4 sm:$0xff]  }
 0x1ca   : > { %3705 = vmatprep.mubr.bf16.mxu1 %v9017_v24  ;;  %8324 = vmatpush3.bf16.msra.mxu1 %v9047_v26  ;;  %v9067_v39 = vld [vmem:[#allocation4 + $0x70] ss:$40 sps:$4 sm:$0xff]   ;;  %v9070_v40 = vld [vmem:[#allocation4 + $0xc0] ss:$40 sps:$4 sm:$0xff]   ;;  %v9074_v43 = vld [vmem:[#allocation4 + $0x164] ss:$40 sps:$4 sm:$0xff]  }
 0x1cb   : > { %8325 = vmatprep.subr.bf16.mxu1 %v9054_v12  ;;  %v9073_v42 = vld [vmem:[#allocation4 + $0x110] ss:$40 sps:$4 sm:$0xff]   ;;  %v9076_v0 = vld [vmem:[#allocation4 + $0x160] ss:$40 sps:$4 sm:$0xff]   ;;  %v9077_v8 = vld [vmem:[#allocation4 + $0x1b4] ss:$40 sps:$4 sm:$0xff]  }
 0x1cc   : > { %3811 = vmatmul.mubr.bf16.gmra.mxu0 %v9015_v62  ;;  %v9079_v56 = vld [vmem:[#allocation4 + $0x1b0] ss:$40 sps:$4 sm:$0xff]   ;;  %v9080_v54 = vld [vmem:[#allocation4 + $0x204] ss:$40 sps:$4 sm:$0xff]   ;;  %v9082_v61 = vld [vmem:[#allocation4 + $0x200] ss:$40 sps:$4 sm:$0xff]  }
 0x1cd   : > { %3818 = vmatprep.mubr.bf16.mxu0 %v9021_v4  ;;  %v9083_v63 = vld [vmem:[#allocation4 + $0x254] ss:$40 sps:$4 sm:$0xff]  }
 0x1ce   : > { %8326 = vmatpush3.bf16.msra.mxu1 %v9057_v6 }
 0x1d1   : > { %3706 = vmatmul.mubr.bf16.gmra.mxu1 %v9020_v38 }
 0x1d2   : > { %3713 = vmatprep.mubr.bf16.mxu1 %v9024_v41 }
 0x1d4   : > { %3819 = vmatmul.mubr.bf16.gmra.mxu0 %v9023_v9 }
 0x1d5   : > { %3826 = vmatprep.mubr.bf16.mxu0 %v9028_v10 }
 0x1d9   : > { %3714 = vmatmul.mubr.bf16.gmra.mxu1 %v9026_v13 }
 0x1da   : > { %3721 = vmatprep.mubr.bf16.mxu1 %v9032_v15 }
 0x1dc   : > { %3827 = vmatmul.mubr.bf16.gmra.mxu0 %v9031_v7 }
 0x1dd   : > { %3834 = vmatprep.mubr.bf16.mxu0 %v9035_v17 }
 0x1e1   : > { %3722 = vmatmul.mubr.bf16.gmra.mxu1 %v9034_v46 }
 0x1e2   : > { %3729 = vmatprep.mubr.bf16.mxu1 %v9040_v47  ;;  %v9085_v47 = vld [vmem:[#allocation4 + $0x250] ss:$40 sps:$4 sm:$0xff]  }
 0x1e4   : > { %3835 = vmatmul.mubr.bf16.gmra.mxu0 %v9037_v18 }
 0x1e5   : > { %3842 = vmatprep.mubr.bf16.mxu0 %v9043_v19  ;;  %v9088_v19 = vld [vmem:[#allocation4 + $0x2a4] ss:$40 sps:$4 sm:$0xff]  }
 0x1e9   : > { %3730 = vmatmul.mubr.bf16.gmra.mxu1 %v9042_v21 }
 0x1ea   : > { %3737 = vmatprep.mubr.bf16.mxu1 %v9048_v51 }
 0x1ec   : > { %3843 = vmatmul.mubr.bf16.gmra.mxu0 %v9045_v60 }
 0x1ed   : > { %3850 = vmatprep.mubr.bf16.mxu0 %v9051_v23 }
 0x1f1   : > { %3738 = vmatmul.mubr.bf16.gmra.mxu1 %v9050_v28 }
 0x1f2   : > { %3745 = vmatprep.mubr.bf16.mxu1 %v9055_v29 }
 0x1f4   : > { %3851 = vmatmul.mubr.bf16.gmra.mxu0 %v9053_v30 }
 0x1f5   : > { %3858 = vmatprep.mubr.bf16.mxu0 %v9059_v31 }
 0x1f9   : > { %3746 = vmatmul.mubr.bf16.gmra.mxu1 %v9058_v32 }
 0x1fa   : > { %3899 = vmatprep.mubr.bf16.mxu1 %v9064_v33 }
 0x1fc   : > { %3859 = vmatmul.mubr.bf16.gmra.mxu0 %v9061_v34 }
 0x201   : > { %3900 = vmatmul.mubr.bf16.vlgmr.msra.gmra.mxu1 %v9062_v36 }
 0x202   : > { %3907 = vmatprep.mubr.bf16.mxu1 %v9065_v37 }
 0x209   : > { %3908 = vmatmul.mubr.bf16.gmra.mxu1 %v9067_v39  ;;  %v9086_v39 = vld [vmem:[#allocation4 + $0x2a0] ss:$40 sps:$4 sm:$0xff]  }
 0x20a   : > { %3915 = vmatprep.mubr.bf16.mxu1 %v9068_v44 }
 0x211   : > { %3916 = vmatmul.mubr.bf16.gmra.mxu1 %v9070_v40  ;;  %v9091_v40 = vld [vmem:[#allocation4 + $0x2f4] ss:$40 sps:$4 sm:$0xff]  }
 0x212   : > { %3923 = vmatprep.mubr.bf16.mxu1 %v9071_v49 }
 0x219   : > { %3924 = vmatmul.mubr.bf16.gmra.mxu1 %v9073_v42 }
 0x21a   : > { %3931 = vmatprep.mubr.bf16.mxu1 %v9074_v43 }
 0x21e   : > { %v8023_v35 = vpop.f32.mrf.mxu1 }
 0x21f   : > { %v8099_v50 = vpop.f32.mrf.mxu0 }
 0x220   : > { %v8024_v48 = vpop.f32.mrf.mxu1 }
 0x221   : > { %3932 = vmatmul.mubr.bf16.gmra.mxu1 %v9076_v0  ;;  %v8025_v45 = vadd.f32 %v8024_v48, %v8023_v35  ;;  %v8100_v53 = vpop.f32.mrf.mxu0 }
 0x222   : > { %3939 = vmatprep.mubr.bf16.mxu1 %v9077_v8  ;;  %v8026_v52 = vpop.f32.mrf.mxu1  ;;  %v8101_v1 = vadd.f32 %v8100_v53, %v8099_v50 }
 0x223   : > { %v8102_v55 = vpop.f32.mrf.mxu0 }
 0x224   : > { %v8027_v2 = vpop.f32.mrf.mxu1  ;;  %v10253_v24 = vadd.f32 %v8101_v1, %v8025_v45  ;;  %v9089_v1 = vld [vmem:[#allocation4 + $0x2f0] ss:$40 sps:$4 sm:$0xff]  }
 0x225   : > { %v8028_v20 = vadd.f32 %v8027_v2, %v8026_v52  ;;  %v8103_v59 = vpop.f32.mrf.mxu0 }
 0x226   : > { %v8029_v26 = vpop.f32.mrf.mxu1  ;;  %v8104_v22 = vadd.f32 %v8103_v59, %v8102_v55 }
 0x228   : > { %v8030_v57 = vpop.f32.mrf.mxu1  ;;  %v8105_v58 = vpop.f32.mrf.mxu0  ;;  %v10255_v11 = vadd.f32 %v8104_v22, %v8028_v20 }
 0x229   : > { %3940 = vmatmul.mubr.bf16.gmra.mxu1 %v9079_v56  ;;  %v8031_v12 = vadd.f32 %v8030_v57, %v8029_v26 }
 0x22a   : > { %3947 = vmatprep.mubr.bf16.mxu1 %v9080_v54  ;;  %v8032_v5 = vpop.f32.mrf.mxu1  ;;  %v8106_v62 = vpop.f32.mrf.mxu0 }
 0x22b   : > { %v8107_v3 = vadd.f32 %v8106_v62, %v8105_v58 }
 0x22c   : > { %v8033_v4 = vpop.f32.mrf.mxu1  ;;  %v8108_v16 = vpop.f32.mrf.mxu0 }
 0x22d   : > { %v8034_v6 = vadd.f32 %v8033_v4, %v8032_v5  ;;  %v10257_v38 = vadd.f32 %v8107_v3, %v8031_v12 }
 0x22e   : > { %v8035_v41 = vpop.f32.mrf.mxu1  ;;  %v8109_v9 = vpop.f32.mrf.mxu0 }
 0x22f   : > { %v8110_v10 = vadd.f32 %v8109_v9, %v8108_v16 }
 0x230   : > { %v8036_v13 = vpop.f32.mrf.mxu1  ;;  %v8111_v15 = vpop.f32.mrf.mxu0 }
 0x231   : > { %3948 = vmatmul.mubr.bf16.gmra.mxu1 %v9082_v61  ;;  %v8037_v7 = vadd.f32 %v8036_v13, %v8035_v41  ;;  %v10259_v17 = vadd.f32 %v8110_v10, %v8034_v6 }
 0x232   : > { %3955 = vmatprep.mubr.bf16.mxu1 %v9083_v63  ;;  %v8038_v46 = vpop.f32.mrf.mxu1  ;;  %v8112_v18 = vpop.f32.mrf.mxu0 }
 0x233   : > { %v8113_v21 = vadd.f32 %v8112_v18, %v8111_v15 }
 0x234   : > { %v8039_v51 = vpop.f32.mrf.mxu1  ;;  %v8114_v60 = vpop.f32.mrf.mxu0 }
 0x235   : > { %v8040_v23 = vadd.f32 %v8039_v51, %v8038_v46  ;;  %v10261_v28 = vadd.f32 %v8113_v21, %v8037_v7 }
 0x236   : > { %v8041_v29 = vpop.f32.mrf.mxu1  ;;  %v8115_v30 = vpop.f32.mrf.mxu0 }
 0x237   : > { %v8116_v31 = vadd.f32 %v8115_v30, %v8114_v60 }
 0x238   : > { %v8042_v32 = vpop.f32.mrf.mxu1 }
 0x239   : > { %3956 = vmatmul.mubr.bf16.gmra.mxu1 %v9085_v47  ;;  %v8117_v33 = vpop.f32.mrf.mxu0  ;;  %v8043_v34 = vadd.f32 %v8042_v32, %v8041_v29  ;;  %v10263_v36 = vadd.f32 %v8116_v31, %v8040_v23 }
 0x23a   : > { %3963 = vmatprep.mubr.bf16.mxu1 %v9088_v19  ;;  %v8044_v37 = vpop.f32.mrf.mxu1 }
 0x23b   : > { %v8118_v44 = vpop.f32.mrf.mxu0 }
 0x23c   : > { %v8119_v49 = vadd.f32 %v8118_v44, %v8117_v33  ;;  %v8045_v42 = vpop.f32.mrf.mxu1 }
 0x23d   : > { %v8120_v43 = vpop.f32.mrf.mxu0  ;;  %v8046_v0 = vadd.f32 %v8045_v42, %v8044_v37 }
 0x23e   : > { %v10265_v8 = vadd.f32 %v8119_v49, %v8043_v34  ;;  %v8047_v35 = vpop.f32.mrf.mxu1 }
 0x23f   : > { %v8121_v48 = vpop.f32.mrf.mxu0 }
 0x240   : > { %v8122_v50 = vadd.f32 %v8121_v48, %v8120_v43  ;;  %v8048_v45 = vpop.f32.mrf.mxu1 }
 0x241   : > { %3964 = vmatmul.mubr.bf16.gmra.mxu1 %v9086_v39  ;;  %v8123_v52 = vpop.f32.mrf.mxu0  ;;  %v8049_v56 = vadd.f32 %v8048_v45, %v8047_v35 }
 0x242   : > { %3971 = vmatprep.mubr.bf16.mxu1 %v9091_v40  ;;  %v10267_v53 = vadd.f32 %v8122_v50, %v8046_v0  ;;  %v8050_v54 = vpop.f32.mrf.mxu1 }
 0x243   : > { %v8124_v2 = vpop.f32.mrf.mxu0 }
 0x244   : > { %v8125_v55 = vadd.f32 %v8124_v2, %v8123_v52  ;;  %v8051_v20 = vpop.f32.mrf.mxu1 }
 0x245   : > { %v8126_v26 = vpop.f32.mrf.mxu0  ;;  %v8052_v59 = vadd.f32 %v8051_v20, %v8050_v54 }
 0x246   : > { %v10269_v22 = vadd.f32 %v8125_v55, %v8049_v56  ;;  %v8053_v57 = vpop.f32.mrf.mxu1 }
 0x247   : > { %v8127_v58 = vpop.f32.mrf.mxu0 }
 0x248   : > { %v8128_v12 = vadd.f32 %v8127_v58, %v8126_v26  ;;  %v8054_v5 = vpop.f32.mrf.mxu1 }
 0x249   : > { %3972 = vmatmul.mubr.bf16.gmra.mxu1 %v9089_v1  ;;  %v8129_v61 = vpop.f32.mrf.mxu0  ;;  %v8055_v62 = vadd.f32 %v8054_v5, %v8053_v57 }
 0x24a   : > { %v10271_v63 = vadd.f32 %v8128_v12, %v8052_v59  ;;  %v8056_v3 = vpop.f32.mrf.mxu1 }
 0x24b   : > { %v8130_v4 = vpop.f32.mrf.mxu0 }
 0x24c   : > { %v8131_v16 = vadd.f32 %v8130_v4, %v8129_v61  ;;  %v8057_v6 = vpop.f32.mrf.mxu1 }
 0x24d   : > { %v8132_v41 = vpop.f32.mrf.mxu0  ;;  %v8058_v9 = vadd.f32 %v8057_v6, %v8056_v3 }
 0x24e   : > { %v10273_v10 = vadd.f32 %v8131_v16, %v8055_v62 }
 0x24f   : > { %v8059_v13 = vpop.f32.mrf.mxu1  ;;  %v8133_v15 = vpop.f32.mrf.mxu0 }
 0x250   : > { %v8134_v7 = vadd.f32 %v8133_v15, %v8132_v41 }
 0x251   : > { %v8060_v46 = vpop.f32.mrf.mxu1 }
 0x252   : > { %v8061_v18 = vadd.f32 %v8060_v46, %v8059_v13  ;;  %v10275_v19 = vadd.f32 %v8134_v7, %v8058_v9 }
 0x253   : > { %v8135_v47 = vpop.f32.mrf.mxu0  ;;  %v8062_v21 = vpop.f32.mrf.mxu1 }
 0x255   : > { %v8136_v51 = vpop.f32.mrf.mxu0  ;;  %v8063_v23 = vpop.f32.mrf.mxu1 }
 0x256   : > { %v8137_v60 = vadd.f32 %v8136_v51, %v8135_v47  ;;  %v8064_v30 = vadd.f32 %v8063_v23, %v8062_v21 }
 0x257   : > { %v8138_v29 = vpop.f32.mrf.mxu0 }
 0x258   : > { %v10277_v31 = vadd.f32 %v8137_v60, %v8061_v18 }
 0x259   : > { %v8065_v32 = vpop.f32.mrf.mxu1  ;;  %v8139_v33 = vpop.f32.mrf.mxu0 }
 0x25a   : > { %v8140_v34 = vadd.f32 %v8139_v33, %v8138_v29 }
 0x25b   : > { %v8066_v37 = vpop.f32.mrf.mxu1 }
 0x25c   : > { %v8141_v39 = vpop.f32.mrf.mxu0  ;;  %v8067_v44 = vadd.f32 %v8066_v37, %v8065_v32  ;;  %v10279_v40 = vadd.f32 %v8140_v34, %v8064_v30 }
 0x25d   : > { %v8068_v49 = vpop.f32.mrf.mxu1 }
 0x25e   : > { %v8142_v42 = vpop.f32.mrf.mxu0 }
 0x25f   : > { %v8143_v43 = vadd.f32 %v8142_v42, %v8141_v39  ;;  %v8069_v0 = vpop.f32.mrf.mxu1 }
 0x260   : > { %v8144_v35 = vpop.f32.mrf.mxu0  ;;  %v8070_v48 = vadd.f32 %v8069_v0, %v8068_v49 }
 0x261   : > { %v10281_v50 = vadd.f32 %v8143_v43, %v8067_v44  ;;  %v8071_v45 = vpop.f32.mrf.mxu1 }
 0x262   : > { %v8145_v52 = vpop.f32.mrf.mxu0 }
 0x263   : > { %v8146_v56 = vadd.f32 %v8145_v52, %v8144_v35  ;;  %v8072_v54 = vpop.f32.mrf.mxu1 }
 0x264   : > { %v8147_v1 = vpop.f32.mrf.mxu0  ;;  %v8073_v2 = vadd.f32 %v8072_v54, %v8071_v45 }
 0x265   : > { %v10283_v55 = vadd.f32 %v8146_v56, %v8070_v48  ;;  %v8074_v20 = vpop.f32.mrf.mxu1 }
 0x266   : > { %v8148_v26 = vpop.f32.mrf.mxu0 }
 0x267   : > { %v8149_v59 = vadd.f32 %v8148_v26, %v8147_v1  ;;  %v8075_v57 = vpop.f32.mrf.mxu1 }
 0x268   : > { %v8150_v58 = vpop.f32.mrf.mxu0  ;;  %v8076_v12 = vadd.f32 %v8075_v57, %v8074_v20 }
 0x269   : > { %v10285_v5 = vadd.f32 %v8149_v59, %v8073_v2  ;;  %v8077_v61 = vpop.f32.mrf.mxu1 }
 0x26a   : > { %v8151_v62 = vpop.f32.mrf.mxu0 }
 0x26b   : > { %v8152_v3 = vadd.f32 %v8151_v62, %v8150_v58  ;;  %v8078_v4 = vpop.f32.mrf.mxu1 }
 0x26c   : > { %v8153_v16 = vpop.f32.mrf.mxu0  ;;  %v8079_v6 = vadd.f32 %v8078_v4, %v8077_v61 }
 0x26d   : > { %v10287_v41 = vadd.f32 %v8152_v3, %v8076_v12  ;;  %v8080_v9 = vpop.f32.mrf.mxu1 }
 0x26e   : > { %v8154_v13 = vpop.f32.mrf.mxu0 }
 0x26f   : > { %v8155_v15 = vadd.f32 %v8154_v13, %v8153_v16  ;;  %v8081_v7 = vpop.f32.mrf.mxu1 }
 0x270   : > { %v8156_v46 = vpop.f32.mrf.mxu0  ;;  %v8082_v47 = vadd.f32 %v8081_v7, %v8080_v9 }
 0x271   : > { %v10289_v18 = vadd.f32 %v8155_v15, %v8079_v6  ;;  %v8175_v21 = vpop.f32.mrf.mxu1 }
 0x272   : > { %v8157_v51 = vpop.f32.mrf.mxu0 }
 0x273   : > { %v8158_v60 = vadd.f32 %v8157_v51, %v8156_v46  ;;  %v8176_v23 = vpop.f32.mrf.mxu1 }
 0x274   : > { %v8177_v29 = vadd.f32 %v8176_v23, %v8175_v21  ;;  %v10291_v30 = vpop.f32.mrf.mxu0 }
 0x275   : > { %v10293_v32 = vadd.f32 %v8158_v60, %v8082_v47  ;;  %v8178_v33 = vpop.f32.mrf.mxu1 }
 0x276   : > { %v10296_v34 = vadd.f32 %v8177_v29, %v10253_v24  ;;  %v10298_v37 = vpop.f32.mrf.mxu0 }
 0x277   : > { %v8179_v39 = vpop.f32.mrf.mxu1 }
 0x278   : > { %v8180_v44 = vadd.f32 %v8179_v39, %v8178_v33  ;;  %v10300_v49 = vpop.f32.mrf.mxu0 }
 0x279   : > { %v8181_v42 = vpop.f32.mrf.mxu1 }
 0x27a   : > { %v10303_v43 = vadd.f32 %v8180_v44, %v10255_v11  ;;  %v10305_v0 = vpop.f32.mrf.mxu0 }
 0x27b   : > { %v8182_v35 = vpop.f32.mrf.mxu1 }
 0x27c   : > { %v8183_v48 = vadd.f32 %v8182_v35, %v8181_v42  ;;  %v10307_v45 = vpop.f32.mrf.mxu0 }
 0x27d   : > { %v8184_v52 = vpop.f32.mrf.mxu1 }
 0x27e   : > { %v10310_v24 = vadd.f32 %v8183_v48, %v10257_v38  ;;  %v10312_v1 = vpop.f32.mrf.mxu0 }
 0x27f   : > { %v8185_v56 = vpop.f32.mrf.mxu1 }
 0x280   : > { %v8186_v54 = vadd.f32 %v8185_v56, %v8184_v52  ;;  %v10317_v59 = vpop.f32.mrf.mxu0 }
 0x281   : > { %v8187_v2 = vpop.f32.mrf.mxu1 }
 0x282   : > { %v10315_v20 = vadd.f32 %v8186_v54, %v10259_v17  ;;  %v10322_v38 = vpop.f32.mrf.mxu0 }
 0x283   : > { %v8188_v11 = vpop.f32.mrf.mxu1 }
 0x284   : > { %v8189_v26 = vadd.f32 %v8188_v11, %v8187_v2  ;;  %v10327_v17 = vpop.f32.mrf.mxu0 }
 0x285   : > { %v8190_v57 = vpop.f32.mrf.mxu1 }
 0x286   : > { %v10320_v58 = vadd.f32 %v8189_v26, %v10261_v28  ;;  %v10332_v28 = vpop.f32.mrf.mxu0 }
 0x287   : > { %v8191_v12 = vpop.f32.mrf.mxu1 }
 0x288   : > { %v8192_v61 = vadd.f32 %v8191_v12, %v8190_v57 }
 0x289   : > { %v8193_v62 = vpop.f32.mrf.mxu1 }
 0x28a   : > { %v10325_v3 = vadd.f32 %v8192_v61, %v10263_v36  ;;  %v10337_v36 = vpop.f32.mrf.mxu0 }
 0x28b   : > { %v8194_v4 = vpop.f32.mrf.mxu1 }
 0x28c   : > { %v8195_v16 = vadd.f32 %v8194_v4, %v8193_v62 }
 0x28d   : > { %v8196_v6 = vpop.f32.mrf.mxu1 }
 0x28e   : > { %v10330_v9 = vadd.f32 %v8195_v16, %v10265_v8  ;;  %v10342_v8 = vpop.f32.mrf.mxu0 }
 0x28f   : > { %v8197_v13 = vpop.f32.mrf.mxu1 }
 0x290   : > { %v8198_v15 = vadd.f32 %v8197_v13, %v8196_v6 }
 0x291   : > { %v8199_v7 = vpop.f32.mrf.mxu1 }
 0x292   : > { %v10335_v46 = vadd.f32 %v8198_v15, %v10267_v53  ;;  %v10347_v53 = vpop.f32.mrf.mxu0 }
 0x293   : > { %v8200_v47 = vpop.f32.mrf.mxu1 }
 0x294   : > { %v8201_v21 = vadd.f32 %v8200_v47, %v8199_v7 }
 0x295   : > { %v8202_v51 = vpop.f32.mrf.mxu1 }
 0x296   : > { %v10340_v60 = vadd.f32 %v8201_v21, %v10269_v22  ;;  %v10352_v22 = vpop.f32.mrf.mxu0 }
 0x297   : > { %v8203_v23 = vpop.f32.mrf.mxu1 }
 0x298   : > { %v8204_v29 = vadd.f32 %v8203_v23, %v8202_v51 }
 0x299   : > { %v8205_v33 = vpop.f32.mrf.mxu1 }
 0x29a   : > { %v10345_v39 = vadd.f32 %v8204_v29, %v10271_v63  ;;  %v10357_v63 = vpop.f32.mrf.mxu0 }
 0x29b   : > { %v8206_v44 = vpop.f32.mrf.mxu1 }
 0x29c   : > { %v8207_v42 = vadd.f32 %v8206_v44, %v8205_v33 }
 0x29d   : > { %v8208_v35 = vpop.f32.mrf.mxu1 }
 0x29e   : > { %v10350_v48 = vadd.f32 %v8207_v42, %v10273_v10  ;;  %v10362_v10 = vpop.f32.mrf.mxu0 }
 0x29f   : > { %v8209_v52 = vpop.f32.mrf.mxu1 }
 0x2a0   : > { %v8210_v56 = vadd.f32 %v8209_v52, %v8208_v35 }
 0x2a1   : > { %v8211_v54 = vpop.f32.mrf.mxu1 }
 0x2a2   : > { %v10355_v2 = vadd.f32 %v8210_v56, %v10275_v19  ;;  %v10367_v19 = vpop.f32.mrf.mxu0 }
 0x2a3   : > { %v8212_v11 = vpop.f32.mrf.mxu1 }
 0x2a4   : > { %v8213_v26 = vadd.f32 %v8212_v11, %v8211_v54 }
 0x2a5   : > { %v8214_v57 = vpop.f32.mrf.mxu1 }
 0x2a6   : > { %v10360_v12 = vadd.f32 %v8213_v26, %v10277_v31  ;;  %v10372_v31 = vpop.f32.mrf.mxu0 }
 0x2a7   : > { %v8215_v61 = vpop.f32.mrf.mxu1 }
 0x2a8   : > { %v8216_v62 = vadd.f32 %v8215_v61, %v8214_v57 }
 0x2a9   : > { %v8217_v4 = vpop.f32.mrf.mxu1 }
 0x2aa   : > { %v10365_v16 = vadd.f32 %v8216_v62, %v10279_v40  ;;  %v10377_v40 = vpop.f32.mrf.mxu0 }
 0x2ab   : > { %v8218_v6 = vpop.f32.mrf.mxu1 }
 0x2ac   : > { %v8219_v13 = vadd.f32 %v8218_v6, %v8217_v4 }
 0x2ad   : > { %v8220_v15 = vpop.f32.mrf.mxu1 }
 0x2ae   : > { %v10370_v7 = vadd.f32 %v8219_v13, %v10281_v50  ;;  %v10382_v50 = vpop.f32.mrf.mxu0 }
 0x2af   : > { %v8221_v47 = vpop.f32.mrf.mxu1 }
 0x2b0   : > { %v8222_v21 = vadd.f32 %v8221_v47, %v8220_v15 }
 0x2b1   : > { %v8223_v51 = vpop.f32.mrf.mxu1 }
 0x2b2   : > { %v10375_v23 = vadd.f32 %v8222_v21, %v10283_v55  ;;  %v10387_v55 = vpop.f32.mrf.mxu0  ;;  %v8256_v21 = vadd.f32 %v10305_v0, %v10300_v49 }
 0x2b3   : > { %v8224_v29 = vpop.f32.mrf.mxu1 }
 0x2b4   : > { %v8225_v33 = vadd.f32 %v8224_v29, %v8223_v51  ;;  %v10394_v6 = vpop.f32.mrf.mxu0  ;;  %v3792_v49 = vadd.f32 %v8256_v21, %v10303_v43 }
 0x2b5   : > { %v8226_v44 = vpop.f32.mrf.mxu1 }
 0x2b6   : > { %v10380_v42 = vadd.f32 %v8225_v33, %v10285_v5  ;;  %v8253_v5 = vadd.f32 %v10298_v37, %v10291_v30  ;;  %v10407_v30 = vld [vmem:[%s11261_s5] ss:$0 sm:$0xff] }
 0x2b7   : > { %v8227_v35 = vpop.f32.mrf.mxu1 }
 0x2b8   : > { %v8228_v52 = vadd.f32 %v8227_v35, %v8226_v44  ;;  %v3789_v47 = vadd.f32 %v8253_v5, %v10296_v34  ;;  %v10414_v34 = vld [vmem:[%s11262_s6] ss:$0 sm:$0xff] }
 0x2b9   : > { %v8229_v56 = vpop.f32.mrf.mxu1 }
 0x2ba   : > { %v10385_v54 = vadd.f32 %v8228_v52, %v10287_v41 }
 0x2bb   : > { %v8230_v11 = vpop.f32.mrf.mxu1 }
 0x2bc   : > { %v8231_v26 = vadd.f32 %v8230_v11, %v8229_v56 }
 0x2bd   : > { %v8232_v57 = vpop.f32.mrf.mxu1 }
 0x2be   : > { %v10390_v61 = vadd.f32 %v8231_v26, %v10289_v18  ;;  %v10402_v18 = vpop.f32.mrf.mxu0 }
 0x2bf   : > { %v8233_v62 = vpop.f32.mrf.mxu1 }
 0x2c0   : > { %v8234_v4 = vadd.f32 %v8233_v62, %v8232_v57  ;;  %v10418_v35 = vpop.f32.mrf.mxu0 }
 0x2c1   : > { %v8327_v13 = vpop.f32.mrf.mxu1 }
 0x2c2   : > { %v10397_v15 = vadd.f32 %v8234_v4, %v10293_v32  ;;  %v8259_v32 = vadd.f32 %v10312_v1, %v10307_v45  ;;  %v8262_v1 = vadd.f32 %v10322_v38, %v10317_v59  ;;  %v10425_v43 = vpop.f32.mrf.mxu0 }
 0x2c3   : > { %v8328_v41 = vpop.f32.mrf.mxu1 }
 0x2c4   : > { %v8329_v51 = vadd.f32 %v8328_v41, %v8327_v13  ;;  %v3797_v26 = vadd.f32 %v8259_v32, %v10310_v24  ;;  %v3800_v24 = vadd.f32 %v8262_v1, %v10315_v20 }
 0x2c5   : > { %v8330_v37 = vpop.f32.mrf.mxu1 }
 0x2c6   : > { %v3902_v29 = vadd.f32 %v8329_v51, %v3789_v47  ;;  %v8265_v47 = vadd.f32 %v10332_v28, %v10327_v17  ;;  %v8268_v17 = vadd.f32 %v10342_v8, %v10337_v36 }
 0x2c7   : > { %v8331_v33 = vpop.f32.mrf.mxu1 }
 0x2c8   : > { %v3987_v0 = vmul.f32 %v10407_v30, %v3902_v29  ;;  %v8332_v44 = vadd.f32 %v8331_v33, %v8330_v37  ;;  %v10432_v37 = vpop.f32.mrf.mxu0 }
 0x2c9   : > { %v8333_v52 = vpop.f32.mrf.mxu1 }
 0x2ca   : > { %v4014_v56 = vadd.f32 %v10414_v34, %v3987_v0  ;;  %v3905_v11 = vadd.f32 %v8332_v44, %v3792_v49  ;;  %v3805_v49 = vadd.f32 %v8265_v47, %v10320_v58  ;;  %v3808_v58 = vadd.f32 %v8268_v17, %v10325_v3 }
 0x2cb   : > { %v8334_v45 = vpop.f32.mrf.mxu1 }
 0x2cc   : > { %v4034_v57 = vmax.f32 %v4014_v56, 0.0  ;;  %v3988_v62 = vmul.f32 %v10407_v30, %v3905_v11  ;;  %v8335_v5 = vadd.f32 %v8334_v45, %v8333_v52  ;;  %v10439_v52 = vpop.f32.mrf.mxu0  ;;  %v8271_v45 = vadd.f32 %v10352_v22, %v10347_v53 }
 0x2cd   : > { %v8336_v4 = vpop.f32.mrf.mxu1  ;;  %v8274_v53 = vadd.f32 %v10362_v10, %v10357_v63 }
 0x2ce   : > { %4054 = vst [vmem:[#allocation3 + $0x30] sm:$0xff] %v4034_v57  ;;  %v4015_v13 = vadd.f32 %v10414_v34, %v3988_v62  ;;  %v3910_v41 = vadd.f32 %v8335_v5, %v3797_v26  ;;  %v10446_v62 = vpop.f32.mrf.mxu0 }
 0x2cf   : > { %v8337_v21 = vpop.f32.mrf.mxu1 }
 0x2d0   : > { %v4035_v51 = vmax.f32 %v4015_v13, 0.0  ;;  %v3989_v59 = vmul.f32 %v10407_v30, %v3910_v41  ;;  %v8338_v38 = vadd.f32 %v8337_v21, %v8336_v4  ;;  %v3813_v41 = vadd.f32 %v8271_v45, %v10330_v9 }
 0x2d1   : > { %v8339_v29 = vpop.f32.mrf.mxu1  ;;  %v3816_v9 = vadd.f32 %v8274_v53, %v10335_v46  ;;  %v8286_v53 = vadd.f32 %v10418_v35, %v10402_v18 }
 0x2d2   : > { %4055 = vst [vmem:[#allocation3 + $0x98] sm:$0xff] %v4035_v51  ;;  %v4016_v32 = vadd.f32 %v10414_v34, %v3989_v59  ;;  %v3913_v33 = vadd.f32 %v8338_v38, %v3800_v24  ;;  %v10453_v24 = vpop.f32.mrf.mxu0 }
 0x2d3   : > { %v8340_v0 = vpop.f32.mrf.mxu1 }
 0x2d4   : > { %v4036_v28 = vmax.f32 %v4016_v32, 0.0  ;;  %v3990_v20 = vmul.f32 %v10407_v30, %v3913_v33  ;;  %v8341_v44 = vadd.f32 %v8340_v0, %v8339_v29  ;;  %v8277_v29 = vadd.f32 %v10372_v31, %v10367_v19 }
 0x2d5   : > { %v8342_v56 = vpop.f32.mrf.mxu1 }
 0x2d6   : > { %4056 = vst [vmem:[#allocation3 + $0x68] sm:$0xff] %v4036_v28  ;;  %v4017_v11 = vadd.f32 %v10414_v34, %v3990_v20  ;;  %v3918_v26 = vadd.f32 %v8341_v44, %v3805_v49  ;;  %v8294_v49 = vpop.f32.mrf.mxu0  ;;  %v3821_v20 = vadd.f32 %v8277_v29, %v10340_v60 }
 0x2d7   : > { %v8343_v1 = vpop.f32.mrf.mxu1 }
 0x2d8   : > { %v4037_v57 = vmax.f32 %v4017_v11, 0.0  ;;  %v3991_v36 = vmul.f32 %v10407_v30, %v3918_v26  ;;  %v8344_v8 = vadd.f32 %v8343_v1, %v8342_v56  ;;  %v8280_v56 = vadd.f32 %v10382_v50, %v10377_v40  ;;  %v8296_v11 = vpop.f32.mrf.mxu0 }
 0x2d9   : > { %v8345_v5 = vpop.f32.mrf.mxu1 }
 0x2da   : > { %4057 = vst [vmem:[#allocation3 + $0x18] sm:$0xff] %v4037_v57  ;;  %v4018_v4 = vadd.f32 %v10414_v34, %v3991_v36  ;;  %v3921_v13 = vadd.f32 %v8344_v8, %v3808_v58  ;;  %v8283_v58 = vadd.f32 %v10394_v6, %v10387_v55  ;;  %v3824_v60 = vadd.f32 %v8280_v56, %v10345_v39  ;;  %v8297_v50 = vpop.f32.mrf.mxu0 }
 0x2db   : > { %v8346_v47 = vpop.f32.mrf.mxu1 }
 0x2dc   : > { %v4038_v22 = vmax.f32 %v4018_v4, 0.0  ;;  %v3992_v3 = vmul.f32 %v10407_v30, %v3921_v13  ;;  %v8347_v21 = vadd.f32 %v8346_v47, %v8345_v5 }
 0x2dd   : > { %v8348_v51 = vpop.f32.mrf.mxu1 }
 0x2de   : > { %4058 = vst [vmem:[#allocation3 + $0x70] sm:$0xff] %v4038_v22  ;;  %v4019_v59 = vadd.f32 %v10414_v34, %v3992_v3  ;;  %v3926_v38 = vadd.f32 %v8347_v21, %v3813_v41  ;;  %v3829_v41 = vadd.f32 %v8283_v58, %v10350_v48  ;;  %v8299_v22 = vpop.f32.mrf.mxu0  ;;  %v3832_v48 = vadd.f32 %v8286_v53, %v10355_v2 }
 0x2df   : > { %v8349_v32 = vpop.f32.mrf.mxu1 }
 0x2e0   : > { %v4039_v33 = vmax.f32 %v4019_v59, 0.0  ;;  %v3993_v63 = vmul.f32 %v10407_v30, %v3926_v38  ;;  %v8350_v10 = vadd.f32 %v8349_v32, %v8348_v51  ;;  %v8289_v59 = vadd.f32 %v10432_v37, %v10425_v43  ;;  %v8300_v35 = vpop.f32.mrf.mxu0 }
 0x2e1   : > { %v8351_v0 = vpop.f32.mrf.mxu1 }
 0x2e2   : > { %4059 = vst [vmem:[#allocation3] sm:$0xff] %v4039_v33  ;;  %v4020_v17 = vadd.f32 %v10414_v34, %v3993_v63  ;;  %v3929_v28 = vadd.f32 %v8350_v10, %v3816_v9  ;;  %v3837_v10 = vadd.f32 %v8289_v59, %v10360_v12 }
 0x2e3   : > { %v8352_v44 = vpop.f32.mrf.mxu1 }
 0x2e4   : > { %v4040_v19 = vmax.f32 %v4020_v17, 0.0  ;;  %v3994_v31 = vmul.f32 %v10407_v30, %v3929_v28  ;;  %v8353_v46 = vadd.f32 %v8352_v44, %v8351_v0  ;;  %v8292_v17 = vadd.f32 %v10446_v62, %v10439_v52  ;;  %v8302_v28 = vpop.f32.mrf.mxu0 }
 0x2e5   : > { %v8354_v26 = vpop.f32.mrf.mxu1 }
 0x2e6   : > { %4060 = vst [vmem:[#allocation3 + $0x28] sm:$0xff] %v4040_v19  ;;  %v4021_v45 = vadd.f32 %v10414_v34, %v3994_v31  ;;  %v3934_v1 = vadd.f32 %v8353_v46, %v3821_v20  ;;  %v8295_v19 = vadd.f32 %v8294_v49, %v10453_v24  ;;  %v3840_v46 = vadd.f32 %v8292_v17, %v10365_v16  ;;  %v8303_v52 = vpop.f32.mrf.mxu0 }
 0x2e7   : > { %v8355_v57 = vpop.f32.mrf.mxu1 }
 0x2e8   : > { %v4041_v36 = vmax.f32 %v4021_v45, 0.0  ;;  %v3995_v8 = vmul.f32 %v10407_v30, %v3934_v1  ;;  %v8356_v40 = vadd.f32 %v8355_v57, %v8354_v26  ;;  %v3845_v57 = vadd.f32 %v8295_v19, %v10370_v7 }
 0x2e9   : > { %v8357_v5 = vpop.f32.mrf.mxu1 }
 0x2ea   : > { %4061 = vst [vmem:[#allocation3 + $0x20] sm:$0xff] %v4041_v36  ;;  %v4022_v4 = vadd.f32 %v10414_v34, %v3995_v8  ;;  %v3937_v13 = vadd.f32 %v8356_v40, %v3824_v60  ;;  %v8298_v36 = vadd.f32 %v8297_v50, %v8296_v11  ;;  %v8305_v40 = vpop.f32.mrf.mxu0 }
 0x2eb   : > { %v8358_v47 = vpop.f32.mrf.mxu1 }
 0x2ec   : > { %v4042_v55 = vmax.f32 %v4022_v4, 0.0  ;;  %v3996_v6 = vmul.f32 %v10407_v30, %v3937_v13  ;;  %v8359_v39 = vadd.f32 %v8358_v47, %v8357_v5  ;;  %v8301_v13 = vadd.f32 %v8300_v35, %v8299_v22 }
 0x2ed   : > { %v8360_v3 = vpop.f32.mrf.mxu1  ;;  %v3848_v47 = vadd.f32 %v8298_v36, %v10375_v23 }
 0x2ee   : > { %4062 = vst [vmem:[#allocation3 + $0x88] sm:$0xff] %v4042_v55  ;;  %v4023_v21 = vadd.f32 %v10414_v34, %v3996_v6  ;;  %v3942_v51 = vadd.f32 %v8359_v39, %v3829_v41  ;;  %v8306_v6 = vpop.f32.mrf.mxu0 }
 0x2ef   : > { %v8361_v38 = vpop.f32.mrf.mxu1 }
 0x2f0   : > { %v4043_v29 = vmax.f32 %v4023_v21, 0.0  ;;  %v3997_v32 = vmul.f32 %v10407_v30, %v3942_v51  ;;  %v8362_v18 = vadd.f32 %v8361_v38, %v8360_v3  ;;  %v3853_v3 = vadd.f32 %v8301_v13, %v10380_v42 }
 0x2f1   : > { %v8363_v9 = vpop.f32.mrf.mxu1  ;;  %v8304_v51 = vadd.f32 %v8303_v52, %v8302_v28 }
 0x2f2   : > { %4063 = vst [vmem:[#allocation3 + $0x90] sm:$0xff] %v4043_v29  ;;  %v4024_v33 = vadd.f32 %v10414_v34, %v3997_v32  ;;  %v3945_v63 = vadd.f32 %v8362_v18, %v3832_v48  ;;  %v8308_v48 = vpop.f32.mrf.mxu0  ;;  %v8307_v18 = vadd.f32 %v8306_v6, %v8305_v40 }
 0x2f3   : > { %v8364_v0 = vpop.f32.mrf.mxu1 }
 0x2f4   : > { %v4044_v43 = vmax.f32 %v4024_v33, 0.0  ;;  %v3998_v37 = vmul.f32 %v10407_v30, %v3945_v63  ;;  %v8365_v2 = vadd.f32 %v8364_v0, %v8363_v9  ;;  %v3856_v9 = vadd.f32 %v8304_v51, %v10385_v54 }
 0x2f5   : > { %v8366_v20 = vpop.f32.mrf.mxu1 }
 0x2f6   : > { %4064 = vst [vmem:[#allocation3 + $0x40] sm:$0xff] %v4044_v43  ;;  %v4025_v44 = vadd.f32 %v10414_v34, %v3998_v37  ;;  %v3950_v56 = vadd.f32 %v8365_v2, %v3837_v10  ;;  %v8309_v10 = vpop.f32.mrf.mxu0  ;;  %v3861_v37 = vadd.f32 %v8307_v18, %v10390_v61 }
 0x2f7   : > { %v8367_v31 = vpop.f32.mrf.mxu1  ;;  %v8310_v28 = vadd.f32 %v8309_v10, %v8308_v48 }
 0x2f8   : > { %v4045_v12 = vmax.f32 %v4025_v44, 0.0  ;;  %v3999_v26 = vmul.f32 %v10407_v30, %v3950_v56  ;;  %v8368_v45 = vadd.f32 %v8367_v31, %v8366_v20 }
 0x2f9   : > { %v8369_v62 = vpop.f32.mrf.mxu1 }
 0x2fa   : > { %4065 = vst [vmem:[#allocation3 + $0x38] sm:$0xff] %v4045_v12  ;;  %v4026_v1 = vadd.f32 %v10414_v34, %v3999_v26  ;;  %v3953_v58 = vadd.f32 %v8368_v45, %v3840_v46  ;;  %v3864_v12 = vadd.f32 %v8310_v28, %v10397_v15 }
 0x2fb   : > { %v8370_v60 = vpop.f32.mrf.mxu1 }
 0x2fc   : > { %v4046_v8 = vmax.f32 %v4026_v1, 0.0  ;;  %v4000_v24 = vmul.f32 %v10407_v30, %v3953_v58  ;;  %v8371_v49 = vadd.f32 %v8370_v60, %v8369_v62 }
 0x2fd   : > { %v8372_v16 = vpop.f32.mrf.mxu1 }
 0x2fe   : > { %4066 = vst [vmem:[#allocation3 + $0x80] sm:$0xff] %v4046_v8  ;;  %v4027_v5 = vadd.f32 %v10414_v34, %v4000_v24  ;;  %v3958_v4 = vadd.f32 %v8371_v49, %v3845_v57 }
 0x2ff   : > { %v8373_v41 = vpop.f32.mrf.mxu1 }
 0x300   : > { %v4047_v53 = vmax.f32 %v4027_v5, 0.0  ;;  %v4001_v55 = vmul.f32 %v10407_v30, %v3958_v4  ;;  %v8374_v7 = vadd.f32 %v8373_v41, %v8372_v16 }
 0x301   : > { %v8375_v11 = vpop.f32.mrf.mxu1 }
 0x302   : > { %4067 = vst [vmem:[#allocation3 + $0x78] sm:$0xff] %v4047_v53  ;;  %v4028_v50 = vadd.f32 %v10414_v34, %v4001_v55  ;;  %v3961_v39 = vadd.f32 %v8374_v7, %v3848_v47 }
 0x303   : > { %v8376_v21 = vpop.f32.mrf.mxu1 }
 0x304   : > { %v4048_v59 = vmax.f32 %v4028_v50, 0.0  ;;  %v4002_v22 = vmul.f32 %v10407_v30, %v3961_v39  ;;  %v8377_v38 = vadd.f32 %v8376_v21, %v8375_v11 }
 0x305   : > { %v8378_v23 = vpop.f32.mrf.mxu1 }
 0x306   : > { %4068 = vst [vmem:[#allocation3 + $0x50] sm:$0xff] %v4048_v59  ;;  %v4029_v29 = vadd.f32 %v10414_v34, %v4002_v22  ;;  %v3966_v32 = vadd.f32 %v8377_v38, %v3853_v3 }
 0x307   : > { %v8379_v35 = vpop.f32.mrf.mxu1 }
 0x308   : > { %v4049_v33 = vmax.f32 %v4029_v29, 0.0  ;;  %v4003_v63 = vmul.f32 %v10407_v30, %v3966_v32  ;;  %v8380_v42 = vadd.f32 %v8379_v35, %v8378_v23 }
 0x309   : > { %v8381_v0 = vpop.f32.mrf.mxu1 }
 0x30a   : > { %4069 = vst [vmem:[#allocation3 + $0x10] sm:$0xff] %v4049_v33  ;;  %v4030_v17 = vadd.f32 %v10414_v34, %v4003_v63  ;;  %v3969_v43 = vadd.f32 %v8380_v42, %v3856_v9 }
 0x30b   : > { %v8382_v2 = vpop.f32.mrf.mxu1 }
 0x30c   : > { %v4050_v20 = vmax.f32 %v4030_v17, 0.0  ;;  %v4004_v44 = vmul.f32 %v10407_v30, %v3969_v43  ;;  %v8383_v56 = vadd.f32 %v8382_v2, %v8381_v0 }
 0x30d   : > { %v8384_v19 = vpop.f32.mrf.mxu1 }
 0x30e   : > { %4070 = vst [vmem:[#allocation3 + $0x60] sm:$0xff] %v4050_v20  ;;  %v4031_v54 = vadd.f32 %v10414_v34, %v4004_v44  ;;  %v3974_v31 = vadd.f32 %v8383_v56, %v3861_v37 }
 0x30f   : > { %v8385_v46 = vpop.f32.mrf.mxu1 }
 0x310   : > { %v4051_v26 = vmax.f32 %v4031_v54, 0.0  ;;  %v4005_v45 = vmul.f32 %v10407_v30, %v3974_v31  ;;  %v8386_v52 = vadd.f32 %v8385_v46, %v8384_v19 }
 0x312   : > { %4071 = vst [vmem:[#allocation3 + $0x58] sm:$0xff] %v4051_v26  ;;  %v4032_v61 = vadd.f32 %v10414_v34, %v4005_v45  ;;  %v3977_v62 = vadd.f32 %v8386_v52, %v3864_v12 }
 0x314   : > { %v4052_v1 = vmax.f32 %v4032_v61, 0.0  ;;  %v4006_v58 = vmul.f32 %v10407_v30, %v3977_v62 }
 0x316   : > { %4072 = vst [vmem:[#allocation3 + $0x8] sm:$0xff] %v4052_v1  ;;  %v4033_v57 = vadd.f32 %v10414_v34, %v4006_v58  ;;  %4076 = sbr.rel (%p6983_p13) target bundleno = 797 (0x31d), region = 72 }
 0x318   : > { %v4053_v60 = vmax.f32 %v4033_v57, 0.0 }
 0x31a   : > { %4073 = vst [vmem:[#allocation3 + $0x48] sm:$0xff] %v4053_v60 }
 0x31b   : > { %v9389_v15 = vmov 0.0  }
 0x31c   : > { %4077 = vst [vmem:[#allocation3 + $0x30] sm:$0xff] %v9389_v15  ;;  %4078 = vst [vmem:[#allocation3 + $0x98] sm:$0xff] %v9389_v15 }
 0x31d PF: > { %4081 = sbr.rel (%p6984_p0) target bundleno = 804 (0x324), region = 76 }
 0x322   : > { %v9390_v36 = vmov 0.0  }
 0x323   : > { %4083 = vst [vmem:[#allocation3 + $0x8] sm:$0xff] %v9390_v36  ;;  %4084 = vst [vmem:[#allocation3 + $0x48] sm:$0xff] %v9390_v36 }
 0x324 PF: > { %v9092_v30 = vld [vmem:[%s11263_s7 + $0x78] sm:$0xff]   ;;  %v9096_v49 = vld [vmem:[%s11263_s7 + $0x70] sm:$0xff]   ;;  %v9100_v4 = vld [vmem:[%s11263_s7 + $0x68] sm:$0xff]   ;;  %s7986_s19 = sshll.u32 %s9368_s16, 4  ;;  %s7658_s24 = sshll.u32 %s9372_s17, 5 }
 0x325   : > { %v9093_v34 = vld [vmem:[%s11263_s7 + $0xf8] sm:$0xff]   ;;  %8387 = vmatprep.subr.bf16.mxu0 %v9092_v30  ;;  %v9097_v40 = vld [vmem:[%s11263_s7 + $0xf0] sm:$0xff]   ;;  %v9101_v13 = vld [vmem:[%s11263_s7 + $0xe8] sm:$0xff]   ;;  %s6872_s23 = sadd.s32 %s7986_s19, %s7658_s24  ;;  %s6875_s25 = sshll.u32 %s9627_s28, 4  ;;  %s11195_s25 = int_to_ptr.vmem [resolvable:$true] %s6875_s25 }
 0x326   : > { %v9094_v8 = vld [vmem:[%s11263_s7 + $0x38] sm:$0xff]   ;;  %8451 = vmatprep.subr.bf16.mxu1 %v9093_v34  ;;  %v9098_v16 = vld [vmem:[%s11263_s7 + $0x30] sm:$0xff]   ;;  %v9102_v41 = vld [vmem:[%s11263_s7 + $0x28] sm:$0xff]   ;;  %s7659_s29 = sshll.u32 %s6872_s23, 7  ;;  %s11331_s18 = sand.u32 1, %s9360_s14  }
 0x327   : > { %v9095_v24 = vld [vmem:[%s11263_s7 + $0xb8] sm:$0xff]   ;;  %8388 = vmatpush3.bf16.msra.mxu0 %v9094_v8  ;;  %v9099_v5 = vld [vmem:[%s11263_s7 + $0xb0] sm:$0xff]   ;;  %v9103_v47 = vld [vmem:[%s11263_s7 + $0xa8] sm:$0xff]   ;;  %s11200_s30 = scalar_lea.hbm %s11266_s10, %s7659_s29  ;;  %s11205_s11 = scalar_lea.sflag [#allocation6], %s11331_s18 }
 0x328   : > { %8452 = vmatpush3.bf16.msra.mxu1 %v9095_v24  ;;  %8389 = vmatprep.subr.bf16.mxu0 %v9096_v49  ;;  %v9104_v53 = vld [vmem:[%s11263_s7 + $0x60] sm:$0xff]   ;;  %v9108_v11 = vld [vmem:[%s11263_s7 + $0x58] sm:$0xff]   ;;  %v9112_v21 = vld [vmem:[%s11263_s7 + $0x50] sm:$0xff]   ;;  %s9292_s12 = scalar_lea.vmem %s11195_s25, 2048  ;;  %s9391_s21 = smov [#allocation5]  }
 0x329   : > { %8453 = vmatprep.subr.bf16.mxu1 %v9097_v40  ;;  %v9105_v55 = vld [vmem:[%s11263_s7 + $0xe0] sm:$0xff]   ;;  %v9109_v50 = vld [vmem:[%s11263_s7 + $0xd8] sm:$0xff]   ;;  %v9113_v51 = vld [vmem:[%s11263_s7 + $0xd0] sm:$0xff]   ;;  %p9293_p1 = scmp.ne.s32.totalorder %s11195_s25, %s9292_s12  ;;  %s9296_s22 = sshll.u32 %s9391_s21, 4  ;;  %s9297_s22 = int_to_ptr.vmem [resolvable:$false] %s9296_s22 }
 0x32a   : > { %v9106_v7 = vld [vmem:[%s11263_s7 + $0x20] sm:$0xff]   ;;  %v9110_v39 = vld [vmem:[%s11263_s7 + $0x18] sm:$0xff]   ;;  %v9114_v59 = vld [vmem:[%s11263_s7 + $0x10] sm:$0xff]   ;;  %s9298_s19 = scalar_lea.vmem %s9297_s22, 4096  ;;  %p9299_p5 = scmp.lt.s32.totalorder %s11195_s25, %s9297_s22 }
 0x32b   : > { %8390 = vmatpush3.bf16.msra.mxu0 %v9098_v16  ;;  %v9107_v6 = vld [vmem:[%s11263_s7 + $0xa0] sm:$0xff]   ;;  %v9111_v3 = vld [vmem:[%s11263_s7 + $0x98] sm:$0xff]   ;;  %v9115_v22 = vld [vmem:[%s11263_s7 + $0x90] sm:$0xff]   ;;  %p9294_p2 = pnand %p9293_p1, %p9500_p3  ;;  %p9300_p6 = scmp.lt.s32.totalorder %s9298_s19, %s9292_s12 }
 0x32c   : > { %8454 = vmatpush3.bf16.msra.mxu1 %v9099_v5  ;;  %8391 = vmatprep.subr.bf16.mxu0 %v9100_v4  ;;  %v9116_v38 = vld [vmem:[%s11263_s7 + $0x48] sm:$0xff]   ;;  %v9120_v32 = vld [vmem:[%s11263_s7 + $0x40] sm:$0xff]   ;;  %v4085_v33 = vld [vmem:[#allocation3 + $0x30] sm:$0xff] }
 0x32d   : > { %8455 = vmatprep.subr.bf16.mxu1 %v9101_v13  ;;  %v9117_v48 = vld [vmem:[%s11263_s7 + $0xc8] sm:$0xff]   ;;  %v9121_v18 = vld [vmem:[%s11263_s7 + $0xc0] sm:$0xff]   ;;  %v4086_v63 = vld [vmem:[#allocation3 + $0x98] sm:$0xff]  ;;  %v4101_v10 = vrot.slane %v4085_v33, 7  ;;  %v7858_v17 = vpack.c.bf16 %v4085_v33, %v4085_v33  ;;  %v4309_v28 = vrot.slane %v4085_v33, 1  ;;  %p9295_p4 = pneg %p9294_p2  ;;  %p9301_p7 = por %p9300_p6, %p9299_p5 }
 0x32e   : > { %v9118_v23 = vld [vmem:[%s11263_s7 + $0x8] sm:$0xff]   ;;  %v9122_v35 = vld [vmem:[%s11263_s7] sm:$0xff]   ;;  %v4109_v0 = vrot.slane %v4086_v63, 7  ;;  %v7859_v43 = vpack.c.bf16 %v4086_v63, %v4086_v63  ;;  %v4439_v37 = vld [vmem:[#allocation3 + $0x18] sm:$0xff]  ;;  %v4317_v20 = vrot.slane %v4086_v63, 1 }
 0x32f   : > { %8392 = vmatpush3.bf16.msra.mxu0 %v9102_v41  ;;  %v9119_v29 = vld [vmem:[%s11263_s7 + $0x88] sm:$0xff]   ;;  %v9123_v9 = vld [vmem:[%s11263_s7 + $0x80] sm:$0xff]   ;;  %v9130_v2 = vld [vmem:[%s11263_s7 + $0x178] sm:$0xff]   ;;  %v4462_v56 = vrot.slane %v4439_v37, 7  ;;  %4293 = vst [vmem:[#allocation4 + $0x4] sm:$0xf] %v7858_v17  ;;  %v7861_v46 = vpack.c.bf16 %v4439_v37, %v4439_v37  ;;  %p9302_p9 = pnand %p9301_p7, %p9295_p4 }
 0x330   : > { %8456 = vmatpush3.bf16.msra.mxu1 %v9103_v47  ;;  %8393 = vmatprep.subr.bf16.mxu0 %v9104_v53  ;;  %v4438_v42 = vld [vmem:[#allocation3 + $0x68] sm:$0xff]  ;;  %v4117_v19 = vsel %vm867_vm0, %v4101_v10, %v4109_v0  ;;  %v4125_v54 = vsel %vm867_vm0, %v4109_v0, %v4101_v10  ;;  %4294 = vst [vmem:[#allocation4 + $0x2c] sm:$0xf] %v7859_v43  ;;  %v10623_v61 = vld [vmem:[#allocation3 + $0x70] sm:$0xff]  ;;  %v10625_v62 = vld [vmem:[#allocation3] sm:$0xff]  ;;  %v4318_v24 = vrot.slane %v4439_v37, 1 }
 0x331   : > { %8457 = vmatprep.subr.bf16.mxu1 %v9105_v55  ;;  %v4454_v44 = vrot.slane %v4438_v42, 7  ;;  %v7860_v31 = vpack.c.bf16 %v4438_v42, %v4438_v42  ;;  %v4133_v12 = vsel %vm890_vm1, %v4125_v54, 0.0  ;;  %v7843_v26 = vpack.c.bf16 %v4117_v19, %v4117_v19  ;;  %4296 = vst [vmem:[#allocation4 + $0x7c] sm:$0xf] %v7861_v46  ;;  %4647 = vst [vmem:[#allocation4 + $0x38] sm:$0xf] %v7861_v46 }
 0x332   : > { %v4325_v45 = vsel %vm1140_vm2, %v4309_v28, %v4317_v20  ;;  %v4333_v52 = vsel %vm1140_vm2, %v4317_v20, %v4309_v28  ;;  %v7842_v1 = vpack.c.bf16 %v4133_v12, %v4133_v12  ;;  %v4310_v34 = vrot.slane %v4438_v42, 1  ;;  %v10642_v41 = vld [vmem:[#allocation3 + $0x28] sm:$0xff]  ;;  %v10673_v42 = vld [vmem:[#allocation3 + $0x90] sm:$0xff]  ;;  %v10684_v20 = vld [vmem:[#allocation3 + $0x40] sm:$0xff] }
 0x333   : > { %8394 = vmatpush3.bf16.msra.mxu0 %v9106_v7  ;;  %v4342_v58 = vsel %vm1166_vm3, %v4333_v52, 0.0  ;;  %v7874_v57 = vpack.c.bf16 %v4325_v45, %v4325_v45  ;;  %v4470_v60 = vsel %vm867_vm0, %v4454_v44, %v4462_v56  ;;  %4295 = vst [vmem:[#allocation4 + $0x54] sm:$0xf] %v7860_v31  ;;  %4646 = vst [vmem:[#allocation4 + $0x10] sm:$0xf] %v7860_v31  ;;  %v4455_v49 = vrot.slane %v10623_v61, 7 }
 0x334   : > { %8458 = vmatpush3.bf16.msra.mxu1 %v9107_v6  ;;  %8395 = vmatprep.subr.bf16.mxu0 %v9108_v11  ;;  %4214 = vst [vmem:[#allocation4 + $0x28] sm:$0xf] %v7843_v26  ;;  %v7875_v15 = vpack.c.bf16 %v4342_v58, %v4342_v58  ;;  %v4478_v36 = vsel %vm867_vm0, %v4462_v56, %v4454_v44  ;;  %4213 = vst [vmem:[#allocation4] sm:$0xf] %v7842_v1  ;;  %v4463_v40 = vrot.slane %v10625_v62, 7  ;;  %v4443_v6 = vld [vmem:[#allocation3 + $0x20] sm:$0xff] }
 0x335   : > { %8459 = vmatprep.subr.bf16.mxu1 %v9109_v50  ;;  %v7891_v30 = vpack.c.bf16 %v4470_v60, %v4470_v60  ;;  %4421 = vst [vmem:[#allocation4 + $0x8] sm:$0xf] %v7874_v57  ;;  %v4486_v8 = vsel %vm890_vm1, %v4478_v36, 0.0  ;;  %v7862_v5 = vpack.c.bf16 %v10623_v61, %v10623_v61  ;;  %v7863_v4 = vpack.c.bf16 %v10625_v62, %v10625_v62  ;;  %v10698_v45 = vld [vmem:[#allocation3 + $0x38] sm:$0xff]  ;;  %v9266_v14 = vld [vmem:[%s11263_s7 + $0x240] sm:$0xff]  }
 0x336   : > { %4422 = vst [vmem:[#allocation4 + $0x30] sm:$0xf] %v7875_v15  ;;  %v7890_v16 = vpack.c.bf16 %v4486_v8, %v4486_v8  ;;  %v4311_v13 = vrot.slane %v10623_v61, 1  ;;  %v4326_v47 = vsel %vm1140_vm2, %v4310_v34, %v4318_v24  ;;  %v4334_v53 = vsel %vm1140_vm2, %v4318_v24, %v4310_v34  ;;  %v9139_v15 = vld [vmem:[%s11263_s7 + $0x130] sm:$0xff]   ;;  %v9146_v24 = vld [vmem:[%s11263_s7 + $0x168] sm:$0xff]  }
 0x337   : > { %8396 = vmatpush3.bf16.msra.mxu0 %v9110_v39  ;;  %4567 = vst [vmem:[#allocation4 + $0x34] sm:$0xf] %v7891_v30  ;;  %4216 = vst [vmem:[#allocation4 + $0x78] sm:$0xf] %v7891_v30  ;;  %v4471_v55 = vsel %vm867_vm0, %v4455_v49, %v4463_v40  ;;  %v4479_v7 = vsel %vm867_vm0, %v4463_v40, %v4455_v49  ;;  %v4344_v11 = vsel %vm1166_vm3, %v4334_v53, 0.0  ;;  %v4320_v63 = vrot.slane %v4443_v6, 1 }
 0x338   : > { %8460 = vmatpush3.bf16.msra.mxu1 %v9111_v3  ;;  %8397 = vmatprep.subr.bf16.mxu0 %v9112_v21  ;;  %4566 = vst [vmem:[#allocation4 + $0xc] sm:$0xf] %v7890_v16  ;;  %4215 = vst [vmem:[#allocation4 + $0x50] sm:$0xf] %v7890_v16  ;;  %v7876_v50 = vpack.c.bf16 %v4326_v47, %v4326_v47  ;;  %v4488_v39 = vsel %vm890_vm1, %v4479_v7, 0.0  ;;  %v7893_v3 = vpack.c.bf16 %v4471_v55, %v4471_v55  ;;  %v10656_v21 = vld [vmem:[#allocation3 + $0x88] sm:$0xff] }
 0x339   : > { %8461 = vmatprep.subr.bf16.mxu1 %v9113_v51  ;;  %4297 = vst [vmem:[#allocation4 + $0xa4] sm:$0xf] %v7862_v5  ;;  %4298 = vst [vmem:[#allocation4 + $0xcc] sm:$0xf] %v7863_v4  ;;  %v7877_v51 = vpack.c.bf16 %v4344_v11, %v4344_v11  ;;  %v4457_v10 = vrot.slane %v10656_v21, 7  ;;  %v4465_v26 = vrot.slane %v10673_v42, 7  ;;  %v7866_v1 = vpack.c.bf16 %v10656_v21, %v10656_v21 }
 0x33a   : > { %4999 = vst [vmem:[#allocation4 + $0x1c] sm:$0xf] %v7862_v5  ;;  %5000 = vst [vmem:[#allocation4 + $0x44] sm:$0xf] %v7863_v4  ;;  %v9126_v17 = vld [vmem:[#allocation4 + $0x4] ss:$40 sps:$4 sm:$0xff]   ;;  %v7867_v58 = vpack.c.bf16 %v10673_v42, %v10673_v42  ;;  %v7868_v57 = vpack.c.bf16 %v10684_v20, %v10684_v20  ;;  %v7869_v55 = vpack.c.bf16 %v10698_v45, %v10698_v45 }
 0x33b   : > { %8398 = vmatpush3.bf16.msra.mxu0 %v9114_v59  ;;  %4648 = vst [vmem:[#allocation4 + $0x60] sm:$0xf] %v7862_v5  ;;  %4649 = vst [vmem:[#allocation4 + $0x88] sm:$0xf] %v7863_v4  ;;  %v7892_v59 = vpack.c.bf16 %v4488_v39, %v4488_v39  ;;  %v9124_v0 = vld [vmem:[#allocation4] ss:$40 sps:$4 sm:$0xff]   ;;  %6295 = vmatprep.mubr.bf16.mxu0 %v9126_v17  ;;  %v4473_v30 = vsel %vm867_vm0, %v4457_v10, %v4465_v26 }
 0x33c   : > { %8462 = vmatpush3.bf16.msra.mxu1 %v9115_v22  ;;  %8399 = vmatprep.subr.bf16.mxu0 %v9116_v38  ;;  %v4319_v22 = vrot.slane %v10625_v62, 1  ;;  %v4456_v38 = vrot.slane %v10642_v41, 7  ;;  %4423 = vst [vmem:[#allocation4 + $0x58] sm:$0xf] %v7876_v50  ;;  %4569 = vst [vmem:[#allocation4 + $0x84] sm:$0xf] %v7893_v3  ;;  %v4481_v34 = vsel %vm867_vm0, %v4465_v26, %v4457_v10 }
 0x33d   : > { %8463 = vmatprep.subr.bf16.mxu1 %v9117_v48  ;;  %v9131_v48 = vld [vmem:[%s11263_s7 + $0x138] sm:$0xff]   ;;  %4218 = vst [vmem:[#allocation4 + $0xc8] sm:$0xf] %v7893_v3  ;;  %4774 = vst [vmem:[#allocation4 + $0x14] sm:$0xf] %v7876_v50  ;;  %v4313_v8 = vrot.slane %v10656_v21, 1  ;;  %v7897_v40 = vpack.c.bf16 %v4473_v30, %v4473_v30 }
 0x33e   : > { %4920 = vst [vmem:[#allocation4 + $0x40] sm:$0xf] %v7893_v3  ;;  %4424 = vst [vmem:[#allocation4 + $0x80] sm:$0xf] %v7877_v51  ;;  %v4335_v33 = vsel %vm1140_vm2, %v4319_v22, %v4311_v13  ;;  %v9127_v52 = vld [vmem:[#allocation4 + $0x8] ss:$40 sps:$4 sm:$0xff]  }
 0x33f   : > { %8400 = vmatpush3.bf16.msra.mxu0 %v9118_v23  ;;  %v4464_v23 = vrot.slane %v4443_v6, 7  ;;  %4568 = vst [vmem:[#allocation4 + $0x5c] sm:$0xf] %v7892_v59  ;;  %4217 = vst [vmem:[#allocation4 + $0xa0] sm:$0xf] %v7892_v59  ;;  %v4346_v43 = vsel %vm1166_vm3, %v4335_v33, 0.0 }
 0x340   : > { %8464 = vmatpush3.bf16.msra.mxu1 %v9119_v29  ;;  %8401 = vmatprep.subr.bf16.mxu0 %v9120_v32  ;;  %v7864_v29 = vpack.c.bf16 %v10642_v41, %v10642_v41  ;;  %v7865_v32 = vpack.c.bf16 %v4443_v6, %v4443_v6  ;;  %4775 = vst [vmem:[#allocation4 + $0x3c] sm:$0xf] %v7877_v51  ;;  %4919 = vst [vmem:[#allocation4 + $0x18] sm:$0xf] %v7892_v59  ;;  %v9129_v61 = vld [vmem:[#allocation4 + $0xc] ss:$40 sps:$4 sm:$0xff]  }
 0x341   : > { %8465 = vmatprep.subr.bf16.mxu1 %v9121_v18  ;;  %v4312_v18 = vrot.slane %v10642_v41, 1  ;;  %v4480_v28 = vsel %vm867_vm0, %v4464_v23, %v4456_v38  ;;  %v10686_v44 = vpack.c.bf16 %v4346_v43, %v4346_v43  ;;  %v9132_v60 = vld [vmem:[#allocation4 + $0x54] ss:$40 sps:$4 sm:$0xff]   ;;  %6392 = vmatprep.mubr.bf16.mxu1 %v9129_v61  ;;  %v4492_v49 = vsel %vm890_vm1, %v4481_v34, 0.0  ;;  %4301 = vst [vmem:[#allocation4 + $0x144] sm:$0xf] %v7866_v1 }
 0x342   : > { %4299 = vst [vmem:[#allocation4 + $0xf4] sm:$0xf] %v7864_v29  ;;  %4300 = vst [vmem:[#allocation4 + $0x11c] sm:$0xf] %v7865_v32  ;;  %v4490_v56 = vsel %vm890_vm1, %v4480_v28, 0.0  ;;  %v4321_v16 = vrot.slane %v10673_v42, 1  ;;  %v7896_v47 = vpack.c.bf16 %v4492_v49, %v4492_v49 }
 0x343   : > { %8402 = vmatpush3.bf16.msra.mxu0 %v9122_v35  ;;  %v9138_v35 = vld [vmem:[%s11263_s7 + $0x170] sm:$0xff]   ;;  %5001 = vst [vmem:[#allocation4 + $0x6c] sm:$0xf] %v7864_v29  ;;  %5002 = vst [vmem:[#allocation4 + $0x94] sm:$0xf] %v7865_v32  ;;  %v4328_v54 = vsel %vm1140_vm2, %v4312_v18, %v4320_v63  ;;  %v7894_v31 = vpack.c.bf16 %v4490_v56, %v4490_v56  ;;  %v4336_v46 = vsel %vm1140_vm2, %v4320_v63, %v4312_v18  ;;  %v9163_v4 = vld [vmem:[%s11263_s7 + $0x1f8] sm:$0xff]  }
 0x344   : > { %8466 = vmatpush3.bf16.msra.mxu1 %v9123_v9  ;;  %8515 = vmatprep.subr.bf16.mxu0 %v9130_v2  ;;  %v4327_v9 = vsel %vm1140_vm2, %v4311_v13, %v4319_v22  ;;  %v4472_v2 = vsel %vm867_vm0, %v4456_v38, %v4464_v23  ;;  %4650 = vst [vmem:[#allocation4 + $0xb0] sm:$0xf] %v7864_v29  ;;  %4651 = vst [vmem:[#allocation4 + $0xd8] sm:$0xf] %v7865_v32  ;;  %v4348_v62 = vsel %vm1166_vm3, %v4336_v46, 0.0  ;;  %v9147_v41 = vld [vmem:[%s11263_s7 + $0x128] sm:$0xff]  }
 0x345   : > { %v10678_v37 = vpack.c.bf16 %v4327_v9, %v4327_v9  ;;  %v7895_v19 = vpack.c.bf16 %v4472_v2, %v4472_v2  ;;  %v10695_v12 = vpack.c.bf16 %v4328_v54, %v4328_v54  ;;  %4426 = vst [vmem:[#allocation4 + $0xd0] sm:$0xf] %v10686_v44  ;;  %4777 = vst [vmem:[#allocation4 + $0x8c] sm:$0xf] %v10686_v44  ;;  %v4458_v5 = vrot.slane %v10684_v20, 7  ;;  %v9154_v11 = vld [vmem:[%s11263_s7 + $0x160] sm:$0xff]  }
 0x346   : > { %6296 = vmatmul.mubr.bf16.vlgmr.msra.gmra.mxu0 %v9124_v0  ;;  %4570 = vst [vmem:[#allocation4 + $0xac] sm:$0xf] %v7894_v31  ;;  %4219 = vst [vmem:[#allocation4 + $0xf0] sm:$0xf] %v7894_v31  ;;  %v10714_v36 = vpack.c.bf16 %v4348_v62, %v4348_v62  ;;  %v9134_v13 = vld [vmem:[#allocation4 + $0x5c] ss:$40 sps:$4 sm:$0xff]   ;;  %v4329_v50 = vsel %vm1140_vm2, %v4313_v8, %v4321_v16  ;;  %v4337_v39 = vsel %vm1140_vm2, %v4321_v16, %v4313_v8 }
 0x347   : > { %4425 = vst [vmem:[#allocation4 + $0xa8] sm:$0xf] %v10678_v37  ;;  %4776 = vst [vmem:[#allocation4 + $0x64] sm:$0xf] %v10678_v37  ;;  %8516 = vmatpush3.bf16.msra.mxu0 %v9131_v48  ;;  %6393 = vmatmul.mubr.bf16.vlgmr.msra.gmra.mxu1 %v9127_v52  ;;  %v4466_v53 = vrot.slane %v10698_v45, 7  ;;  %v4314_v7 = vrot.slane %v10684_v20, 1  ;;  %v10752_v22 = vpack.c.bf16 %v4329_v50, %v4329_v50 }
 0x348   : > { %4571 = vst [vmem:[#allocation4 + $0xd4] sm:$0xf] %v7895_v19  ;;  %4220 = vst [vmem:[#allocation4 + $0x118] sm:$0xf] %v7895_v19  ;;  %8517 = vmatprep.subr.bf16.mxu0 %v9138_v35  ;;  %6303 = vmatprep.mubr.bf16.mxu0 %v9132_v60  ;;  %v9136_v6 = vld [vmem:[#allocation4 + $0x50] ss:$40 sps:$4 sm:$0xff]  }
 0x349   : > { %4922 = vst [vmem:[#allocation4 + $0x90] sm:$0xf] %v7895_v19  ;;  %4427 = vst [vmem:[#allocation4 + $0xf8] sm:$0xf] %v10695_v12  ;;  %8579 = vmatprep.subr.bf16.mxu1 %v9163_v4  ;;  %v4322_v3 = vrot.slane %v10698_v45, 1  ;;  %6400 = vmatprep.mubr.bf16.mxu1 %v9134_v13  ;;  %v4350_v59 = vsel %vm1166_vm3, %v4337_v39, 0.0  ;;  %v4474_v38 = vsel %vm867_vm0, %v4458_v5, %v4466_v53 }
 0x34a   : > { %4921 = vst [vmem:[#allocation4 + $0x68] sm:$0xf] %v7894_v31  ;;  %4778 = vst [vmem:[#allocation4 + $0xb4] sm:$0xf] %v10695_v12  ;;  %v9137_v21 = vld [vmem:[#allocation4 + $0x58] ss:$40 sps:$4 sm:$0xff]   ;;  %v4482_v48 = vsel %vm867_vm0, %v4466_v53, %v4458_v5  ;;  %v10761_v29 = vpack.c.bf16 %v4350_v59, %v4350_v59  ;;  %v7899_v18 = vpack.c.bf16 %v4474_v38, %v4474_v38 }
 0x34b   : > { %4302 = vst [vmem:[#allocation4 + $0x16c] sm:$0xf] %v7867_v58  ;;  %4303 = vst [vmem:[#allocation4 + $0x194] sm:$0xf] %v7868_v57  ;;  %8518 = vmatpush3.bf16.msra.mxu0 %v9139_v15  ;;  %v9140_v51 = vld [vmem:[#allocation4 + $0xa4] ss:$40 sps:$4 sm:$0xff]   ;;  %v4330_v9 = vsel %vm1140_vm2, %v4314_v7, %v4322_v3  ;;  %v4338_v63 = vsel %vm1140_vm2, %v4322_v3, %v4314_v7 }
 0x34c   : > { %5003 = vst [vmem:[#allocation4 + $0xbc] sm:$0xf] %v7866_v1  ;;  %5004 = vst [vmem:[#allocation4 + $0xe4] sm:$0xf] %v7867_v58  ;;  %v9165_v23 = vld [vmem:[%s11263_s7 + $0x1b8] sm:$0xff]   ;;  %8519 = vmatprep.subr.bf16.mxu0 %v9146_v24  ;;  %v4494_v32 = vsel %vm890_vm1, %v4482_v48, 0.0  ;;  %v10773_v42 = vpack.c.bf16 %v4330_v9, %v4330_v9 }
 0x34d   : > { %4652 = vst [vmem:[#allocation4 + $0x100] sm:$0xf] %v7866_v1  ;;  %4653 = vst [vmem:[#allocation4 + $0x128] sm:$0xf] %v7867_v58  ;;  %v9166_v35 = vld [vmem:[%s11263_s7 + $0x1f0] sm:$0xff]   ;;  %v7898_v33 = vpack.c.bf16 %v4494_v32, %v4494_v32  ;;  %8580 = vmatpush3.bf16.msra.mxu1 %v9165_v23  ;;  %v4352_v0 = vsel %vm1166_vm3, %v4338_v63, 0.0 }
 0x34e   : > { %5005 = vst [vmem:[#allocation4 + $0x10c] sm:$0xf] %v7868_v57  ;;  %4654 = vst [vmem:[#allocation4 + $0x150] sm:$0xf] %v7868_v57  ;;  %6304 = vmatmul.mubr.bf16.gmra.mxu0 %v9136_v6  ;;  %8581 = vmatprep.subr.bf16.mxu1 %v9166_v35  ;;  %v9155_v17 = vld [vmem:[%s11263_s7 + $0x120] sm:$0xff]   ;;  %v9162_v43 = vld [vmem:[%s11263_s7 + $0x158] sm:$0xff]   ;;  %v10786_v2 = vpack.c.bf16 %v4352_v0, %v4352_v0 }
 0x34f   : > { %4428 = vst [vmem:[#allocation4 + $0x120] sm:$0xf] %v10714_v36  ;;  %4779 = vst [vmem:[#allocation4 + $0xdc] sm:$0xf] %v10714_v36  ;;  %v9142_v10 = vld [vmem:[#allocation4 + $0xac] ss:$40 sps:$4 sm:$0xff]   ;;  %6311 = vmatprep.mubr.bf16.mxu0 %v9140_v51  ;;  %8520 = vmatpush3.bf16.msra.mxu0 %v9147_v41 }
 0x350   : > { %4573 = vst [vmem:[#allocation4 + $0x124] sm:$0xf] %v7897_v40  ;;  %4222 = vst [vmem:[#allocation4 + $0x168] sm:$0xf] %v7897_v40  ;;  %8521 = vmatprep.subr.bf16.mxu0 %v9154_v11  ;;  %6401 = vmatmul.mubr.bf16.gmra.mxu1 %v9137_v21  ;;  %v9144_v28 = vld [vmem:[#allocation4 + $0xa0] ss:$40 sps:$4 sm:$0xff]  }
 0x351   : > { %4924 = vst [vmem:[#allocation4 + $0xe0] sm:$0xf] %v7897_v40  ;;  %4572 = vst [vmem:[#allocation4 + $0xfc] sm:$0xf] %v7896_v47  ;;  %6408 = vmatprep.mubr.bf16.mxu1 %v9142_v10  ;;  %v9164_v20 = vld [vmem:[%s11263_s7 + $0x118] sm:$0xff]   ;;  %v9167_v54 = vld [vmem:[%s11263_s7 + $0x1b0] sm:$0xff]  }
 0x352   : > { %4221 = vst [vmem:[#allocation4 + $0x140] sm:$0xf] %v7896_v47  ;;  %4304 = vst [vmem:[#allocation4 + $0x1bc] sm:$0xf] %v7869_v55  ;;  %v9145_v56 = vld [vmem:[#allocation4 + $0xa8] ss:$40 sps:$4 sm:$0xff]   ;;  %8582 = vmatpush3.bf16.msra.mxu1 %v9167_v54 }
 0x353   : > { %4923 = vst [vmem:[#allocation4 + $0xb8] sm:$0xf] %v7896_v47  ;;  %5006 = vst [vmem:[#allocation4 + $0x134] sm:$0xf] %v7869_v55  ;;  %v9148_v19 = vld [vmem:[#allocation4 + $0xf4] ss:$40 sps:$4 sm:$0xff]   ;;  %8522 = vmatpush3.bf16.msra.mxu0 %v9155_v17 }
 0x354   : > { %4655 = vst [vmem:[#allocation4 + $0x178] sm:$0xf] %v7869_v55  ;;  %4429 = vst [vmem:[#allocation4 + $0x148] sm:$0xf] %v10752_v22  ;;  %8523 = vmatprep.subr.bf16.mxu0 %v9162_v43  ;;  %v4448_v31 = vld [vmem:[#allocation3 + $0x80] sm:$0xff]  ;;  %v4449_v46 = vld [vmem:[#allocation3 + $0x78] sm:$0xff] }
 0x355   : > { %4780 = vst [vmem:[#allocation4 + $0x104] sm:$0xf] %v10752_v22  ;;  %4430 = vst [vmem:[#allocation4 + $0x170] sm:$0xf] %v10761_v29  ;;  %v4459_v26 = vrot.slane %v4448_v31, 7  ;;  %v4467_v45 = vrot.slane %v4449_v46, 7  ;;  %v7870_v52 = vpack.c.bf16 %v4448_v31, %v4448_v31  ;;  %v7871_v61 = vpack.c.bf16 %v4449_v46, %v4449_v46 }
 0x356   : > { %4575 = vst [vmem:[#allocation4 + $0x174] sm:$0xf] %v7899_v18  ;;  %4224 = vst [vmem:[#allocation4 + $0x1b8] sm:$0xf] %v7899_v18  ;;  %6312 = vmatmul.mubr.bf16.gmra.mxu0 %v9144_v28  ;;  %v4315_v1 = vrot.slane %v4448_v31, 1  ;;  %v4323_v57 = vrot.slane %v4449_v46, 1 }
 0x357   : > { %4781 = vst [vmem:[#allocation4 + $0x12c] sm:$0xf] %v10761_v29  ;;  %4926 = vst [vmem:[#allocation4 + $0x130] sm:$0xf] %v7899_v18  ;;  %6319 = vmatprep.mubr.bf16.mxu0 %v9148_v19  ;;  %8524 = vmatpush3.bf16.msra.mxu0 %v9164_v20  ;;  %v4475_v58 = vsel %vm867_vm0, %v4459_v26, %v4467_v45  ;;  %v9174_v15 = vld [vmem:[%s11263_s7 + $0x150] sm:$0xff]   ;;  %v9175_v8 = vld [vmem:[%s11263_s7 + $0x1e8] sm:$0xff]  }
 0x358   : > { %4574 = vst [vmem:[#allocation4 + $0x14c] sm:$0xf] %v7898_v33  ;;  %4223 = vst [vmem:[#allocation4 + $0x190] sm:$0xf] %v7898_v33  ;;  %v9150_v62 = vld [vmem:[#allocation4 + $0xfc] ss:$40 sps:$4 sm:$0xff]   ;;  %6409 = vmatmul.mubr.bf16.gmra.mxu1 %v9145_v56  ;;  %v4331_v24 = vsel %vm1140_vm2, %v4315_v1, %v4323_v57  ;;  %v4339_v49 = vsel %vm1140_vm2, %v4323_v57, %v4315_v1  ;;  %8525 = vmatprep.subr.bf16.mxu0 %v9174_v15 }
 0x359   : > { %4431 = vst [vmem:[#allocation4 + $0x198] sm:$0xf] %v10773_v42  ;;  %4925 = vst [vmem:[#allocation4 + $0x108] sm:$0xf] %v7898_v33  ;;  %v9156_v30 = vld [vmem:[#allocation4 + $0x144] ss:$40 sps:$4 sm:$0xff]   ;;  %6416 = vmatprep.mubr.bf16.mxu1 %v9150_v62  ;;  %v7886_v16 = vpack.c.bf16 %v4331_v24, %v4331_v24  ;;  %8583 = vmatprep.subr.bf16.mxu1 %v9175_v8 }
 0x35a   : > { %4782 = vst [vmem:[#allocation4 + $0x154] sm:$0xf] %v10773_v42  ;;  %4432 = vst [vmem:[#allocation4 + $0x1c0] sm:$0xf] %v10786_v2  ;;  %v4354_v40 = vsel %vm1166_vm3, %v4339_v49, 0.0  ;;  %v9177_v4 = vld [vmem:[%s11263_s7 + $0x1a8] sm:$0xff]  }
 0x35b   : > { %4783 = vst [vmem:[#allocation4 + $0x17c] sm:$0xf] %v10786_v2  ;;  %5127 = vst [vmem:[#allocation4 + $0x20] sm:$0xf] %v10678_v37  ;;  %v4483_v37 = vsel %vm867_vm0, %v4467_v45, %v4459_v26  ;;  %v9153_v5 = vld [vmem:[#allocation4 + $0xf8] ss:$40 sps:$4 sm:$0xff]   ;;  %v10827_v13 = vpack.c.bf16 %v4354_v40, %v4354_v40  ;;  %8584 = vmatpush3.bf16.msra.mxu1 %v9177_v4 }
 0x35c   : > { %5128 = vst [vmem:[#allocation4 + $0x48] sm:$0xf] %v10686_v44  ;;  %5129 = vst [vmem:[#allocation4 + $0x70] sm:$0xf] %v10695_v12  ;;  %v9152_v44 = vld [vmem:[#allocation4 + $0xf0] ss:$40 sps:$4 sm:$0xff]   ;;  %v7901_v12 = vpack.c.bf16 %v4475_v58, %v4475_v58 }
 0x35d   : > { %4305 = vst [vmem:[#allocation4 + $0x1e4] sm:$0xf] %v7870_v52  ;;  %4306 = vst [vmem:[#allocation4 + $0x20c] sm:$0xf] %v7871_v61  ;;  %v4496_v60 = vsel %vm890_vm1, %v4483_v37, 0.0  ;;  %v9178_v47 = vld [vmem:[%s11263_s7 + $0x1e0] sm:$0xff]  }
 0x35e   : > { %5007 = vst [vmem:[#allocation4 + $0x15c] sm:$0xf] %v7870_v52  ;;  %5008 = vst [vmem:[#allocation4 + $0x184] sm:$0xf] %v7871_v61  ;;  %v7900_v34 = vpack.c.bf16 %v4496_v60, %v4496_v60  ;;  %v9179_v53 = vld [vmem:[%s11263_s7 + $0x1a0] sm:$0xff]   ;;  %v4450_v55 = vld [vmem:[#allocation3 + $0x50] sm:$0xff]  ;;  %6320 = vmatmul.mubr.bf16.gmra.mxu0 %v9152_v44  ;;  %8585 = vmatprep.subr.bf16.mxu1 %v9178_v47 }
 0x35f   : > { %4656 = vst [vmem:[#allocation4 + $0x1a0] sm:$0xf] %v7870_v52  ;;  %4657 = vst [vmem:[#allocation4 + $0x1c8] sm:$0xf] %v7871_v61  ;;  %v9158_v41 = vld [vmem:[#allocation4 + $0x14c] ss:$40 sps:$4 sm:$0xff]   ;;  %v7872_v11 = vpack.c.bf16 %v4450_v55, %v4450_v55  ;;  %6327 = vmatprep.mubr.bf16.mxu0 %v9156_v30  ;;  %8586 = vmatpush3.bf16.msra.mxu1 %v9179_v53 }
 0x360   : > { %5130 = vst [vmem:[#allocation4 + $0x98] sm:$0xf] %v10714_v36  ;;  %5131 = vst [vmem:[#allocation4 + $0xc0] sm:$0xf] %v10752_v22  ;;  %v9176_v36 = vld [vmem:[%s11263_s7 + $0x110] sm:$0xff]   ;;  %v4460_v6 = vrot.slane %v4450_v55, 7  ;;  %6417 = vmatmul.mubr.bf16.gmra.mxu1 %v9153_v5 }
 0x361   : > { %4577 = vst [vmem:[#allocation4 + $0x1c4] sm:$0xf] %v7901_v12  ;;  %4226 = vst [vmem:[#allocation4 + $0x208] sm:$0xf] %v7901_v12  ;;  %8526 = vmatpush3.bf16.msra.mxu0 %v9176_v36  ;;  %v4451_v7 = vld [vmem:[#allocation3 + $0x10] sm:$0xff]  ;;  %v9186_v39 = vld [vmem:[%s11263_s7 + $0x148] sm:$0xff]   ;;  %6424 = vmatprep.mubr.bf16.mxu1 %v9158_v41 }
 0x362   : > { %4928 = vst [vmem:[#allocation4 + $0x180] sm:$0xf] %v7901_v12  ;;  %4576 = vst [vmem:[#allocation4 + $0x19c] sm:$0xf] %v7900_v34  ;;  %v4468_v50 = vrot.slane %v4451_v7, 7  ;;  %v7873_v3 = vpack.c.bf16 %v4451_v7, %v4451_v7  ;;  %v9187_v21 = vld [vmem:[%s11263_s7 + $0x1d8] sm:$0xff]   ;;  %8527 = vmatprep.subr.bf16.mxu0 %v9186_v39 }
 0x363   : > { %4225 = vst [vmem:[#allocation4 + $0x1e0] sm:$0xf] %v7900_v34  ;;  %4927 = vst [vmem:[#allocation4 + $0x158] sm:$0xf] %v7900_v34  ;;  %v4316_v51 = vrot.slane %v4450_v55, 1  ;;  %v9188_v38 = vld [vmem:[%s11263_s7 + $0x108] sm:$0xff]   ;;  %8587 = vmatprep.subr.bf16.mxu1 %v9187_v21 }
 0x364   : > { %4433 = vst [vmem:[#allocation4 + $0x1e8] sm:$0xf] %v7886_v16  ;;  %4784 = vst [vmem:[#allocation4 + $0x1a4] sm:$0xf] %v7886_v16  ;;  %v4476_v59 = vsel %vm867_vm0, %v4460_v6, %v4468_v50  ;;  %v4484_v22 = vsel %vm867_vm0, %v4468_v50, %v4460_v6  ;;  %v4324_v48 = vrot.slane %v4451_v7, 1  ;;  %v9189_v10 = vld [vmem:[%s11263_s7 + $0x198] sm:$0xff]  }
 0x365   : > { %5132 = vst [vmem:[#allocation4 + $0xe8] sm:$0xf] %v10761_v29  ;;  %4434 = vst [vmem:[#allocation4 + $0x210] sm:$0xf] %v10827_v13  ;;  %v9160_v23 = vld [vmem:[#allocation4 + $0x140] ss:$40 sps:$4 sm:$0xff]   ;;  %v7903_v32 = vpack.c.bf16 %v4476_v59, %v4476_v59  ;;  %8528 = vmatpush3.bf16.msra.mxu0 %v9188_v38  ;;  %8588 = vmatpush3.bf16.msra.mxu1 %v9189_v10 }
 0x366   : > { %4785 = vst [vmem:[#allocation4 + $0x1cc] sm:$0xf] %v10827_v13  ;;  %4307 = vst [vmem:[#allocation4 + $0x234] sm:$0xf] %v7872_v11  ;;  %v4498_v29 = vsel %vm890_vm1, %v4484_v22, 0.0  ;;  %v4332_v33 = vsel %vm1140_vm2, %v4316_v51, %v4324_v48  ;;  %v4340_v63 = vsel %vm1140_vm2, %v4324_v48, %v4316_v51  ;;  %v9190_v43 = vld [vmem:[%s11263_s7 + $0x1d0] sm:$0xff]   ;;  %6328 = vmatmul.mubr.bf16.gmra.mxu0 %v9160_v23 }
 0x367   : > { %5009 = vst [vmem:[#allocation4 + $0x1ac] sm:$0xf] %v7872_v11  ;;  %4658 = vst [vmem:[#allocation4 + $0x1f0] sm:$0xf] %v7872_v11  ;;  %v9161_v18 = vld [vmem:[#allocation4 + $0x148] ss:$40 sps:$4 sm:$0xff]   ;;  %v7902_v9 = vpack.c.bf16 %v4498_v29, %v4498_v29  ;;  %v7888_v17 = vpack.c.bf16 %v4332_v33, %v4332_v33  ;;  %8589 = vmatprep.subr.bf16.mxu1 %v9190_v43 }
 0x368   : > { %5133 = vst [vmem:[#allocation4 + $0x110] sm:$0xf] %v10773_v42  ;;  %4308 = vst [vmem:[#allocation4 + $0x25c] sm:$0xf] %v7873_v3  ;;  %v9168_v35 = vld [vmem:[#allocation4 + $0x194] ss:$40 sps:$4 sm:$0xff]   ;;  %6425 = vmatmul.mubr.bf16.gmra.mxu1 %v9161_v18 }
 0x369   : > { %5010 = vst [vmem:[#allocation4 + $0x1d4] sm:$0xf] %v7873_v3  ;;  %4659 = vst [vmem:[#allocation4 + $0x218] sm:$0xf] %v7873_v3  ;;  %v9170_v42 = vld [vmem:[#allocation4 + $0x19c] ss:$40 sps:$4 sm:$0xff]   ;;  %6335 = vmatprep.mubr.bf16.mxu0 %v9168_v35 }
 0x36a   : > { %5135 = vst [vmem:[#allocation4 + $0x160] sm:$0xf] %v7886_v16  ;;  %4579 = vst [vmem:[#allocation4 + $0x214] sm:$0xf] %v7903_v32  ;;  %v4356_v0 = vsel %vm1166_vm3, %v4340_v63, 0.0  ;;  %v9191_v20 = vld [vmem:[%s11263_s7 + $0x190] sm:$0xff]   ;;  %6432 = vmatprep.mubr.bf16.mxu1 %v9170_v42 }
 0x36b   : > { %4228 = vst [vmem:[#allocation4 + $0x258] sm:$0xf] %v7903_v32  ;;  %4930 = vst [vmem:[#allocation4 + $0x1d0] sm:$0xf] %v7903_v32  ;;  %v7889_v28 = vpack.c.bf16 %v4356_v0, %v4356_v0  ;;  %v4453_v56 = vld [vmem:[#allocation3 + $0x58] sm:$0xff]  ;;  %v9198_v46 = vld [vmem:[%s11263_s7 + $0x140] sm:$0xff]   ;;  %8590 = vmatpush3.bf16.msra.mxu1 %v9191_v20 }
 0x36c   : > { %5134 = vst [vmem:[#allocation4 + $0x138] sm:$0xf] %v10786_v2  ;;  %4578 = vst [vmem:[#allocation4 + $0x1ec] sm:$0xf] %v7902_v9  ;;  %v4452_v2 = vld [vmem:[#allocation3 + $0x60] sm:$0xff]  ;;  %v4469_v31 = vrot.slane %v4453_v56, 7  ;;  %v7967_v52 = vpack.c.bf16 %v4453_v56, %v4453_v56  ;;  %8529 = vmatprep.subr.bf16.mxu0 %v9198_v46 }
 0x36d   : > { %4227 = vst [vmem:[#allocation4 + $0x230] sm:$0xf] %v7902_v9  ;;  %4929 = vst [vmem:[#allocation4 + $0x1a8] sm:$0xf] %v7902_v9  ;;  %v9172_v19 = vld [vmem:[#allocation4 + $0x190] ss:$40 sps:$4 sm:$0xff]   ;;  %v7966_v45 = vpack.c.bf16 %v4452_v2, %v4452_v2 }
 0x36e   : > { %4435 = vst [vmem:[#allocation4 + $0x238] sm:$0xf] %v7888_v17  ;;  %4786 = vst [vmem:[#allocation4 + $0x1f4] sm:$0xf] %v7888_v17  ;;  %v4461_v54 = vrot.slane %v4452_v2, 7  ;;  %v9199_v26 = vld [vmem:[%s11263_s7 + $0x1c8] sm:$0xff]   ;;  %6336 = vmatmul.mubr.bf16.gmra.mxu0 %v9172_v19 }
 0x36f   : > { %5136 = vst [vmem:[#allocation4 + $0x188] sm:$0xf] %v10827_v13  ;;  %4436 = vst [vmem:[#allocation4 + $0x260] sm:$0xf] %v7889_v28  ;;  %v9180_v61 = vld [vmem:[#allocation4 + $0x1e4] ss:$40 sps:$4 sm:$0xff]   ;;  %8591 = vmatprep.subr.bf16.mxu1 %v9199_v26 }
 0x370   : > { %4787 = vst [vmem:[#allocation4 + $0x21c] sm:$0xf] %v7889_v28  ;;  %v4477_v62 = vsel %vm867_vm0, %v4461_v54, %v4469_v31  ;;  %v4485_v1 = vsel %vm867_vm0, %v4469_v31, %v4461_v54  ;;  %v9200_v58 = vld [vmem:[%s11263_s7 + $0x100] sm:$0xff]   ;;  %5011 = vst [vmem:[#allocation4 + $0x1fc] sm:$0xf] %v7966_v45  ;;  %v4669_v37 = vrot.slane %v4452_v2, 1  ;;  %6343 = vmatprep.mubr.bf16.mxu0 %v9180_v61 }
 0x371   : > { %5012 = vst [vmem:[#allocation4 + $0x224] sm:$0xf] %v7967_v52  ;;  %4660 = vst [vmem:[#allocation4 + $0x240] sm:$0xf] %v7966_v45  ;;  %v4500_v57 = vsel %vm890_vm1, %v4485_v1, 0.0  ;;  %v7905_v44 = vpack.c.bf16 %v4477_v62, %v4477_v62  ;;  %v4677_v60 = vrot.slane %v4453_v56, 1  ;;  %8530 = vmatpush3.bf16.msra.mxu0 %v9200_v58 }
 0x372   : > { %4661 = vst [vmem:[#allocation4 + $0x268] sm:$0xf] %v7967_v52  ;;  %v7904_v12 = vpack.c.bf16 %v4500_v57, %v4500_v57  ;;  %5137 = vst [vmem:[#allocation4 + $0x1b0] sm:$0xf] %v7888_v17  ;;  %v9173_v15 = vld [vmem:[#allocation4 + $0x198] ss:$40 sps:$4 sm:$0xff]  }
 0x373   : > { %v9182_v30 = vld [vmem:[#allocation4 + $0x1ec] ss:$40 sps:$4 sm:$0xff]   ;;  %4581 = vst [vmem:[#allocation4 + $0x264] sm:$0xf] %v7905_v44  ;;  %4932 = vst [vmem:[#allocation4 + $0x220] sm:$0xf] %v7905_v44  ;;  %v4685_v34 = vsel %vm1140_vm2, %v4669_v37, %v4677_v60  ;;  %v4693_v8 = vsel %vm1140_vm2, %v4677_v60, %v4669_v37  ;;  %6433 = vmatmul.mubr.bf16.gmra.mxu1 %v9173_v15 }
 0x374   : > { %4580 = vst [vmem:[#allocation4 + $0x23c] sm:$0xf] %v7904_v12  ;;  %v9201_v24 = vld [vmem:[%s11263_s7 + $0x188] sm:$0xff]   ;;  %4931 = vst [vmem:[#allocation4 + $0x1f8] sm:$0xf] %v7904_v12  ;;  %v4709_v49 = vsel %vm1166_vm3, %v4693_v8, 0.0  ;;  %v7936_v36 = vpack.c.bf16 %v4685_v34, %v4685_v34  ;;  %6440 = vmatprep.mubr.bf16.mxu1 %v9182_v30 }
 0x375   : > { %v9202_v40 = vld [vmem:[%s11263_s7 + $0x1c0] sm:$0xff]   ;;  %v7937_v16 = vpack.c.bf16 %v4709_v49, %v4709_v49  ;;  %5138 = vst [vmem:[#allocation4 + $0x1d8] sm:$0xf] %v7889_v28  ;;  %8592 = vmatpush3.bf16.msra.mxu1 %v9201_v24  ;;  %v9192_v13 = vld [vmem:[#allocation4 + $0x234] ss:$40 sps:$4 sm:$0xff]   ;;  %v9226_v38 = vld [vmem:[%s11263_s7 + $0x268] sm:$0xff]  }
 0x376   : > { %v9203_v5 = vld [vmem:[%s11263_s7 + $0x180] sm:$0xff]   ;;  %4788 = vst [vmem:[#allocation4 + $0x244] sm:$0xf] %v7936_v36  ;;  %5139 = vst [vmem:[#allocation4 + $0x200] sm:$0xf] %v7936_v36  ;;  %8593 = vmatprep.subr.bf16.mxu1 %v9202_v40  ;;  %v9210_v41 = vld [vmem:[%s11263_s7 + $0x278] sm:$0xff]  }
 0x377   : > { %4789 = vst [vmem:[#allocation4 + $0x26c] sm:$0xf] %v7937_v16  ;;  %5140 = vst [vmem:[#allocation4 + $0x228] sm:$0xf] %v7937_v16  ;;  %v9184_v4 = vld [vmem:[#allocation4 + $0x1e0] ss:$40 sps:$4 sm:$0xff]   ;;  %8643 = vmatprep.subr.bf16.mxu0 %v9210_v41 }
 0x378   : > { %v9185_v47 = vld [vmem:[#allocation4 + $0x1e8] ss:$40 sps:$4 sm:$0xff]   ;;  %6344 = vmatmul.mubr.bf16.gmra.mxu0 %v9184_v4  ;;  %v9206_v7 = vld [vmem:[#allocation4 + $0x14] ss:$40 sps:$4 sm:$0xff]   ;;  %v9197_v6 = vld [vmem:[#allocation4 + $0x238] ss:$40 sps:$4 sm:$0xff]  }
 0x379   : > { %8594 = vmatpush3.bf16.msra.mxu1 %v9203_v5  ;;  %6351 = vmatprep.mubr.bf16.mxu0 %v9192_v13  ;;  %v9196_v55 = vld [vmem:[#allocation4 + $0x230] ss:$40 sps:$4 sm:$0xff]   ;;  %v9209_v11 = vld [vmem:[#allocation4 + $0x1c] ss:$40 sps:$4 sm:$0xff]   ;;  %v9214_v59 = vld [vmem:[#allocation4 + $0x6c] ss:$40 sps:$4 sm:$0xff]  }
 0x37a   : > { %8747 = vmatprep.subr.bf16.mxu1 %v9210_v41  ;;  %v9204_v50 = vld [vmem:[#allocation4 + $0x10] ss:$40 sps:$4 sm:$0xff]   ;;  %v9212_v3 = vld [vmem:[#allocation4 + $0x64] ss:$40 sps:$4 sm:$0xff]   ;;  %v9216_v48 = vld [vmem:[#allocation4 + $0x60] ss:$40 sps:$4 sm:$0xff]  }
 0x37b   : > { %v9194_v53 = vld [vmem:[#allocation4 + $0x23c] ss:$40 sps:$4 sm:$0xff]   ;;  %6441 = vmatmul.mubr.bf16.gmra.mxu1 %v9185_v47  ;;  %v9218_v21 = vld [vmem:[%s11263_s7 + $0x270] sm:$0xff]   ;;  %v9207_v51 = vld [vmem:[#allocation4 + $0x18] ss:$40 sps:$4 sm:$0xff]  }
 0x37c   : > { %6448 = vmatprep.mubr.bf16.mxu1 %v9194_v53  ;;  %v9211_v39 = vld [vmem:[%s11263_s7 + $0x238] sm:$0xff]   ;;  %v9219_v22 = vld [vmem:[%s11263_s7 + $0x230] sm:$0xff]   ;;  %v9227_v29 = vld [vmem:[%s11263_s7 + $0x228] sm:$0xff]  }
 0x37d   : > { %v9220_v23 = vld [vmem:[#allocation4 + $0xb4] ss:$40 sps:$4 sm:$0xff]   ;;  %v9234_v32 = vld [vmem:[%s11263_s7 + $0x260] sm:$0xff]   ;;  %v9217_v18 = vld [vmem:[#allocation4 + $0x68] ss:$40 sps:$4 sm:$0xff]  }
 0x37e   : > { %v9222_v35 = vld [vmem:[#allocation4 + $0xbc] ss:$40 sps:$4 sm:$0xff]   ;;  %v9224_v63 = vld [vmem:[#allocation4 + $0xb0] ss:$40 sps:$4 sm:$0xff]   ;;  %v4805_v17 = vld [vmem:[#allocation3 + $0x8] sm:$0xff] }
 0x37f   : > { %v9235_v9 = vld [vmem:[%s11263_s7 + $0x220] sm:$0xff]   ;;  %v9242_v33 = vld [vmem:[%s11263_s7 + $0x258] sm:$0xff]   ;;  %v4806_v43 = vld [vmem:[#allocation3 + $0x48] sm:$0xff]  ;;  %v4814_v20 = vrot.slane %v4805_v17, 7  ;;  %v7968_v56 = vpack.c.bf16 %v4805_v17, %v4805_v17  ;;  %v5022_v54 = vrot.slane %v4805_v17, 1 }
 0x380   : > { %6352 = vmatmul.mubr.bf16.gmra.mxu0 %v9196_v55  ;;  %v9228_v42 = vld [vmem:[#allocation4 + $0x104] ss:$40 sps:$4 sm:$0xff]   ;;  %v9225_v10 = vld [vmem:[#allocation4 + $0xb8] ss:$40 sps:$4 sm:$0xff]   ;;  %v9250_v28 = vld [vmem:[%s11263_s7 + $0x250] sm:$0xff]   ;;  %v4822_v2 = vrot.slane %v4806_v43, 7  ;;  %v7969_v19 = vpack.c.bf16 %v4806_v43, %v4806_v43 }
 0x381   : > { %6489 = vmatprep.mubr.bf16.mxu0 %v9206_v7  ;;  %v9243_v0 = vld [vmem:[%s11263_s7 + $0x218] sm:$0xff]   ;;  %v9230_v31 = vld [vmem:[#allocation4 + $0x10c] ss:$40 sps:$4 sm:$0xff]   ;;  %5013 = vst [vmem:[#allocation4 + $0x24c] sm:$0xf] %v7968_v56  ;;  %v5030_v45 = vrot.slane %v4806_v43, 1 }
 0x382   : > { %v4830_v46 = vsel %vm867_vm0, %v4814_v20, %v4822_v2  ;;  %v4838_v26 = vsel %vm867_vm0, %v4822_v2, %v4814_v20  ;;  %5014 = vst [vmem:[#allocation4 + $0x274] sm:$0xf] %v7969_v19  ;;  %v9251_v52 = vld [vmem:[%s11263_s7 + $0x210] sm:$0xff]   ;;  %v9258_v1 = vld [vmem:[%s11263_s7 + $0x248] sm:$0xff]   ;;  %v9238_v34 = vld [vmem:[#allocation4 + $0x15c] ss:$40 sps:$4 sm:$0xff]  }
 0x383   : > { %6449 = vmatmul.mubr.bf16.gmra.mxu1 %v9197_v6  ;;  %v4853_v61 = vsel %vm890_vm1, %v4838_v26, 0.0  ;;  %v7953_v62 = vpack.c.bf16 %v4830_v46, %v4830_v46  ;;  %v5038_v37 = vsel %vm1140_vm2, %v5022_v54, %v5030_v45  ;;  %v5046_v57 = vsel %vm1140_vm2, %v5030_v45, %v5022_v54  ;;  %v9232_v60 = vld [vmem:[#allocation4 + $0x100] ss:$40 sps:$4 sm:$0xff]   ;;  %v9236_v15 = vld [vmem:[#allocation4 + $0x154] ss:$40 sps:$4 sm:$0xff]  }
 0x384   : > { %6586 = vmatprep.mubr.bf16.mxu1 %v9209_v11  ;;  %v7952_v58 = vpack.c.bf16 %v4853_v61, %v4853_v61  ;;  %v5062_v25 = vsel %vm1166_vm3, %v5046_v57, 0.0  ;;  %v7984_v44 = vpack.c.bf16 %v5038_v37, %v5038_v37  ;;  %v9259_v30 = vld [vmem:[%s11263_s7 + $0x208] sm:$0xff]   ;;  %v9267_v8 = vld [vmem:[%s11263_s7 + $0x200] sm:$0xff]   ;;  %v9240_v24 = vld [vmem:[#allocation4 + $0x150] ss:$40 sps:$4 sm:$0xff]  }
 0x385   : > { %4934 = vst [vmem:[#allocation4 + $0x270] sm:$0xf] %v7953_v62  ;;  %v7985_v12 = vpack.c.bf16 %v5062_v25, %v5062_v25  ;;  %v9233_v27 = vld [vmem:[#allocation4 + $0x108] ss:$40 sps:$4 sm:$0xff]   ;;  %v9244_v49 = vld [vmem:[#allocation4 + $0x1a4] ss:$40 sps:$4 sm:$0xff]  }
 0x386   : > { %4933 = vst [vmem:[#allocation4 + $0x248] sm:$0xf] %v7952_v58  ;;  %5141 = vst [vmem:[#allocation4 + $0x250] sm:$0xf] %v7984_v44  ;;  %v9241_v36 = vld [vmem:[#allocation4 + $0x158] ss:$40 sps:$4 sm:$0xff]  }
 0x387   : > { %5142 = vst [vmem:[#allocation4 + $0x278] sm:$0xf] %v7985_v12  ;;  %v9246_v40 = vld [vmem:[#allocation4 + $0x1ac] ss:$40 sps:$4 sm:$0xff]   ;;  %v9248_v16 = vld [vmem:[#allocation4 + $0x1a0] ss:$40 sps:$4 sm:$0xff]  }
 0x388   : > { %6490 = vmatmul.mubr.bf16.vlgmr.msra.gmra.mxu0 %v9204_v50  ;;  %v9252_v5 = vld [vmem:[#allocation4 + $0x1f4] ss:$40 sps:$4 sm:$0xff]   ;;  %v9249_v4 = vld [vmem:[#allocation4 + $0x1a8] ss:$40 sps:$4 sm:$0xff]   ;;  %v9260_v47 = vld [vmem:[#allocation4 + $0x244] ss:$40 sps:$4 sm:$0xff]  }
 0x389   : > { %8644 = vmatpush3.bf16.msra.mxu0 %v9211_v39  ;;  %6497 = vmatprep.mubr.bf16.mxu0 %v9212_v3  ;;  %v9254_v13 = vld [vmem:[#allocation4 + $0x1fc] ss:$40 sps:$4 sm:$0xff]   ;;  %v9256_v41 = vld [vmem:[#allocation4 + $0x1f0] ss:$40 sps:$4 sm:$0xff]   ;;  %v9262_v55 = vld [vmem:[#allocation4 + $0x24c] ss:$40 sps:$4 sm:$0xff]  }
 0x38a   : > { %8645 = vmatprep.subr.bf16.mxu0 %v9218_v21  ;;  %v9257_v53 = vld [vmem:[#allocation4 + $0x1f8] ss:$40 sps:$4 sm:$0xff]   ;;  %v9270_v6 = vld [vmem:[#allocation4 + $0x24] ss:$40 sps:$4 sm:$0xff]   ;;  %v9274_v3 = vld [vmem:[#allocation4 + $0x74] ss:$40 sps:$4 sm:$0xff]  }
 0x38b   : > { %6587 = vmatmul.mubr.bf16.vlgmr.msra.gmra.mxu1 %v9207_v51  ;;  %v9264_v7 = vld [vmem:[#allocation4 + $0x240] ss:$40 sps:$4 sm:$0xff]   ;;  %v9273_v50 = vld [vmem:[#allocation4 + $0x204] ss:$40 sps:$4 sm:$0xff]   ;;  %v9276_v51 = vld [vmem:[#allocation4 + $0x254] ss:$40 sps:$4 sm:$0xff]  }
 0x38c   : > { %6594 = vmatprep.mubr.bf16.mxu1 %v9214_v59  ;;  %8755 = vmatpush3.bf16.msra.mxu1 %v9211_v39  ;;  %v9268_v39 = vld [vmem:[#allocation4 + $0x20] ss:$40 sps:$4 sm:$0xff]   ;;  %v9278_v59 = vld [vmem:[#allocation4 + $0x70] ss:$40 sps:$4 sm:$0xff]  }
 0x38d   : > { %8646 = vmatpush3.bf16.msra.mxu0 %v9219_v22  ;;  %8748 = vmatprep.subr.bf16.mxu1 %v9218_v21  ;;  %v9265_v11 = vld [vmem:[#allocation4 + $0x248] ss:$40 sps:$4 sm:$0xff]  }
 0x38e   : > { %8647 = vmatprep.subr.bf16.mxu0 %v9226_v38  ;;  %v9271_v21 = vld [vmem:[#allocation4 + $0x200] ss:$40 sps:$4 sm:$0xff]  }
 0x390   : > { %6498 = vmatmul.mubr.bf16.gmra.mxu0 %v9216_v48  ;;  %8756 = vmatpush3.bf16.msra.mxu1 %v9219_v22  ;;  %v9280_v22 = vld [vmem:[#allocation4 + $0xc4] ss:$40 sps:$4 sm:$0xff]   ;;  %v9282_v48 = vld [vmem:[#allocation4 + $0xc0] ss:$40 sps:$4 sm:$0xff]  }
 0x391   : > { %6505 = vmatprep.mubr.bf16.mxu0 %v9220_v23  ;;  %8648 = vmatpush3.bf16.msra.mxu0 %v9227_v29  ;;  %v9283_v23 = vld [vmem:[#allocation4 + $0x114] ss:$40 sps:$4 sm:$0xff]  }
 0x392   : > { %8649 = vmatprep.subr.bf16.mxu0 %v9234_v32  ;;  %8749 = vmatprep.subr.bf16.mxu1 %v9226_v38  ;;  %v9279_v38 = vld [vmem:[#allocation4 + $0x250] ss:$40 sps:$4 sm:$0xff]  }
 0x393   : > { %6595 = vmatmul.mubr.bf16.gmra.mxu1 %v9217_v18  ;;  %v9288_v18 = vld [vmem:[#allocation4 + $0x160] ss:$40 sps:$4 sm:$0xff]  }
 0x394   : > { %6602 = vmatprep.mubr.bf16.mxu1 %v9222_v35  ;;  %8757 = vmatpush3.bf16.msra.mxu1 %v9227_v29  ;;  %v9285_v29 = vld [vmem:[#allocation4 + $0x110] ss:$40 sps:$4 sm:$0xff]   ;;  %v9289_v35 = vld [vmem:[#allocation4 + $0x1b4] ss:$40 sps:$4 sm:$0xff]  }
 0x395   : > { %8650 = vmatpush3.bf16.msra.mxu0 %v9235_v9  ;;  %8750 = vmatprep.subr.bf16.mxu1 %v9234_v32  ;;  %v9286_v32 = vld [vmem:[#allocation4 + $0x164] ss:$40 sps:$4 sm:$0xff]  }
 0x396   : > { %8651 = vmatprep.subr.bf16.mxu0 %v9242_v33 }
 0x398   : > { %6506 = vmatmul.mubr.bf16.gmra.mxu0 %v9224_v63  ;;  %8758 = vmatpush3.bf16.msra.mxu1 %v9235_v9  ;;  %v9291_v9 = vld [vmem:[#allocation4 + $0x1b0] ss:$40 sps:$4 sm:$0xff]  }
 0x399   : > { %6513 = vmatprep.mubr.bf16.mxu0 %v9228_v42  ;;  %8652 = vmatpush3.bf16.msra.mxu0 %v9243_v0 }
 0x39a   : > { %8653 = vmatprep.subr.bf16.mxu0 %v9250_v28  ;;  %8751 = vmatprep.subr.bf16.mxu1 %v9242_v33 }
 0x39b   : > { %6603 = vmatmul.mubr.bf16.gmra.mxu1 %v9225_v10 }
 0x39c   : > { %6610 = vmatprep.mubr.bf16.mxu1 %v9230_v31  ;;  %8759 = vmatpush3.bf16.msra.mxu1 %v9243_v0 }
 0x39d   : > { %8654 = vmatpush3.bf16.msra.mxu0 %v9251_v52  ;;  %8752 = vmatprep.subr.bf16.mxu1 %v9250_v28 }
 0x39e   : > { %8655 = vmatprep.subr.bf16.mxu0 %v9258_v1 }
 0x3a0   : > { %6514 = vmatmul.mubr.bf16.gmra.mxu0 %v9232_v60  ;;  %8760 = vmatpush3.bf16.msra.mxu1 %v9251_v52 }
 0x3a1   : > { %6521 = vmatprep.mubr.bf16.mxu0 %v9236_v15  ;;  %8656 = vmatpush3.bf16.msra.mxu0 %v9259_v30 }
 0x3a2   : > { %8753 = vmatprep.subr.bf16.mxu1 %v9258_v1  ;;  %8657 = vmatprep.subr.bf16.mxu0 %v9266_v14 }
 0x3a3   : > { %6611 = vmatmul.mubr.bf16.gmra.mxu1 %v9233_v27 }
 0x3a4   : > { %6618 = vmatprep.mubr.bf16.mxu1 %v9238_v34  ;;  %8761 = vmatpush3.bf16.msra.mxu1 %v9259_v30 }
 0x3a5   : > { %8658 = vmatpush3.bf16.msra.mxu0 %v9267_v8  ;;  %8754 = vmatprep.subr.bf16.mxu1 %v9266_v14 }
 0x3a8   : > { %6522 = vmatmul.mubr.bf16.gmra.mxu0 %v9240_v24  ;;  %8762 = vmatpush3.bf16.msra.mxu1 %v9267_v8 }
 0x3a9   : > { %6529 = vmatprep.mubr.bf16.mxu0 %v9244_v49 }
 0x3ab   : > { %6619 = vmatmul.mubr.bf16.gmra.mxu1 %v9241_v36 }
 0x3ac   : > { %6626 = vmatprep.mubr.bf16.mxu1 %v9246_v40 }
 0x3b0   : > { %6530 = vmatmul.mubr.bf16.gmra.mxu0 %v9248_v16 }
 0x3b1   : > { %6537 = vmatprep.mubr.bf16.mxu0 %v9252_v5 }
 0x3b3   : > { %6627 = vmatmul.mubr.bf16.gmra.mxu1 %v9249_v4 }
 0x3b4   : > { %6634 = vmatprep.mubr.bf16.mxu1 %v9254_v13 }
 0x3b8   : > { %6538 = vmatmul.mubr.bf16.gmra.mxu0 %v9256_v41 }
 0x3b9   : > { %6545 = vmatprep.mubr.bf16.mxu0 %v9260_v47 }
 0x3bb   : > { %6635 = vmatmul.mubr.bf16.gmra.mxu1 %v9257_v53 }
 0x3bc   : > { %6642 = vmatprep.mubr.bf16.mxu1 %v9262_v55 }
 0x3c0   : > { %6546 = vmatmul.mubr.bf16.gmra.mxu0 %v9264_v7 }
 0x3c1   : > { %6683 = vmatprep.mubr.bf16.mxu0 %v9270_v6 }
 0x3c3   : > { %6643 = vmatmul.mubr.bf16.gmra.mxu1 %v9265_v11 }
 0x3c4   : > { %6731 = vmatprep.mubr.bf16.mxu1 %v9273_v50 }
 0x3c8   : > { %6684 = vmatmul.mubr.bf16.vlgmr.msra.gmra.mxu0 %v9268_v39 }
 0x3c9   : > { %6691 = vmatprep.mubr.bf16.mxu0 %v9274_v3 }
 0x3cb   : > { %6732 = vmatmul.mubr.bf16.vlgmr.msra.gmra.mxu1 %v9271_v21 }
 0x3cc   : > { %6739 = vmatprep.mubr.bf16.mxu1 %v9276_v51 }
 0x3d0   : > { %6692 = vmatmul.mubr.bf16.gmra.mxu0 %v9278_v59 }
 0x3d1   : > { %6699 = vmatprep.mubr.bf16.mxu0 %v9280_v22 }
 0x3d3   : > { %6740 = vmatmul.mubr.bf16.gmra.mxu1 %v9279_v38 }
 0x3d8   : > { %6700 = vmatmul.mubr.bf16.gmra.mxu0 %v9282_v48 }
 0x3d9   : > { %6707 = vmatprep.mubr.bf16.mxu0 %v9283_v23 }
 0x3e0   : > { %6708 = vmatmul.mubr.bf16.gmra.mxu0 %v9285_v29 }
 0x3e1   : > { %6715 = vmatprep.mubr.bf16.mxu0 %v9286_v32 }
 0x3e8   : > { %6716 = vmatmul.mubr.bf16.gmra.mxu0 %v9288_v18 }
 0x3e9   : > { %6723 = vmatprep.mubr.bf16.mxu0 %v9289_v35 }
 0x3f0   : > { %6724 = vmatmul.mubr.bf16.gmra.mxu0 %v9291_v9 }
 0x406   : > { %v8403_v33 = vpop.f32.mrf.mxu0 }
 0x407   : > { %v8467_v42 = vpop.f32.mrf.mxu1 }
 0x408   : > { %v8404_v63 = vpop.f32.mrf.mxu0 }
 0x409   : > { %v8405_v10 = vadd.f32 %v8404_v63, %v8403_v33  ;;  %v8468_v17 = vpop.f32.mrf.mxu1 }
 0x40a   : > { %v8406_v0 = vpop.f32.mrf.mxu0  ;;  %v8469_v43 = vadd.f32 %v8468_v17, %v8467_v42 }
 0x40b   : > { %v8470_v20 = vpop.f32.mrf.mxu1 }
 0x40c   : > { %v8407_v28 = vpop.f32.mrf.mxu0  ;;  %v10961_v56 = vadd.f32 %v8469_v43, %v8405_v10 }
 0x40d   : > { %v8408_v2 = vadd.f32 %v8407_v28, %v8406_v0  ;;  %v8471_v54 = vpop.f32.mrf.mxu1 }
 0x40e   : > { %v8409_v19 = vpop.f32.mrf.mxu0  ;;  %v8472_v31 = vadd.f32 %v8471_v54, %v8470_v20 }
 0x410   : > { %v8410_v46 = vpop.f32.mrf.mxu0  ;;  %v8473_v26 = vpop.f32.mrf.mxu1  ;;  %v10963_v52 = vadd.f32 %v8472_v31, %v8408_v2 }
 0x411   : > { %v8411_v45 = vadd.f32 %v8410_v46, %v8409_v19 }
 0x412   : > { %v8412_v61 = vpop.f32.mrf.mxu0  ;;  %v8474_v62 = vpop.f32.mrf.mxu1 }
 0x413   : > { %v8475_v1 = vadd.f32 %v8474_v62, %v8473_v26 }
 0x414   : > { %v8413_v58 = vpop.f32.mrf.mxu0  ;;  %v8476_v37 = vpop.f32.mrf.mxu1 }
 0x415   : > { %v8414_v57 = vadd.f32 %v8413_v58, %v8412_v61  ;;  %v10965_v25 = vadd.f32 %v8475_v1, %v8411_v45 }
 0x416   : > { %v8415_v44 = vpop.f32.mrf.mxu0  ;;  %v8477_v60 = vpop.f32.mrf.mxu1 }
 0x417   : > { %v8478_v12 = vadd.f32 %v8477_v60, %v8476_v37 }
 0x418   : > { %v8416_v15 = vpop.f32.mrf.mxu0  ;;  %v8479_v30 = vpop.f32.mrf.mxu1 }
 0x419   : > { %v8417_v14 = vadd.f32 %v8416_v15, %v8415_v44  ;;  %v10967_v27 = vadd.f32 %v8478_v12, %v8414_v57 }
 0x41a   : > { %v8418_v34 = vpop.f32.mrf.mxu0  ;;  %v8480_v8 = vpop.f32.mrf.mxu1 }
 0x41b   : > { %v8481_v24 = vadd.f32 %v8480_v8, %v8479_v30 }
 0x41c   : > { %v8419_v49 = vpop.f32.mrf.mxu0  ;;  %v8482_v36 = vpop.f32.mrf.mxu1 }
 0x41d   : > { %v8420_v40 = vadd.f32 %v8419_v49, %v8418_v34  ;;  %v10969_v16 = vadd.f32 %v8481_v24, %v8417_v14 }
 0x41e   : > { %v8421_v5 = vpop.f32.mrf.mxu0  ;;  %v8483_v4 = vpop.f32.mrf.mxu1 }
 0x41f   : > { %v8484_v13 = vadd.f32 %v8483_v4, %v8482_v36 }
 0x420   : > { %v8422_v41 = vpop.f32.mrf.mxu0  ;;  %v8485_v47 = vpop.f32.mrf.mxu1 }
 0x421   : > { %v8423_v53 = vadd.f32 %v8422_v41, %v8421_v5  ;;  %v10971_v55 = vadd.f32 %v8484_v13, %v8420_v40 }
 0x422   : > { %v8424_v7 = vpop.f32.mrf.mxu0  ;;  %v8486_v6 = vpop.f32.mrf.mxu1 }
 0x423   : > { %v8487_v11 = vadd.f32 %v8486_v6, %v8485_v47 }
 0x424   : > { %v8425_v50 = vpop.f32.mrf.mxu0  ;;  %v8488_v39 = vpop.f32.mrf.mxu1 }
 0x425   : > { %v8426_v3 = vadd.f32 %v8425_v50, %v8424_v7  ;;  %v10973_v21 = vadd.f32 %v8487_v11, %v8423_v53 }
 0x426   : > { %v8427_v51 = vpop.f32.mrf.mxu0  ;;  %v8489_v59 = vpop.f32.mrf.mxu1 }
 0x427   : > { %v8490_v22 = vadd.f32 %v8489_v59, %v8488_v39 }
 0x428   : > { %v8428_v38 = vpop.f32.mrf.mxu0  ;;  %v8491_v48 = vpop.f32.mrf.mxu1 }
 0x429   : > { %v8429_v23 = vadd.f32 %v8428_v38, %v8427_v51  ;;  %v10975_v29 = vadd.f32 %v8490_v22, %v8426_v3 }
 0x42a   : > { %v8430_v32 = vpop.f32.mrf.mxu0  ;;  %v8492_v18 = vpop.f32.mrf.mxu1 }
 0x42b   : > { %11279 = vst [vmem:[#allocation13_spill] sm:$0xff] %v10975_v29  ;;  %v8493_v35 = vadd.f32 %v8492_v18, %v8491_v48 }
 0x42c   : > { %v8431_v9 = vpop.f32.mrf.mxu0  ;;  %v8494_v33 = vpop.f32.mrf.mxu1 }
 0x42d   : > { %v8432_v63 = vadd.f32 %v8431_v9, %v8430_v32  ;;  %v10977_v42 = vadd.f32 %v8493_v35, %v8429_v23 }
 0x42e   : > { %v8433_v10 = vpop.f32.mrf.mxu0  ;;  %v8495_v0 = vpop.f32.mrf.mxu1 }
 0x42f   : > { %11280 = vst [vmem:[#allocation14_spill] sm:$0xff] %v10977_v42  ;;  %v8496_v17 = vadd.f32 %v8495_v0, %v8494_v33 }
 0x430   : > { %v8434_v43 = vpop.f32.mrf.mxu0 }
 0x431   : > { %v8435_v20 = vadd.f32 %v8434_v43, %v8433_v10  ;;  %v10979_v2 = vadd.f32 %v8496_v17, %v8432_v63 }
 0x432   : > { %v8436_v19 = vpop.f32.mrf.mxu0 }
 0x433   : > { %v8497_v28 = vpop.f32.mrf.mxu1  ;;  %11281 = vst [vmem:[#allocation15_spill] sm:$0xff] %v10979_v2 }
 0x434   : > { %v8437_v46 = vpop.f32.mrf.mxu0 }
 0x435   : > { %v8498_v54 = vpop.f32.mrf.mxu1  ;;  %v8438_v45 = vadd.f32 %v8437_v46, %v8436_v19 }
 0x436   : > { %v8499_v31 = vadd.f32 %v8498_v54, %v8497_v28 }
 0x437   : > { %v8500_v26 = vpop.f32.mrf.mxu1 }
 0x438   : > { %v10981_v61 = vadd.f32 %v8499_v31, %v8435_v20  ;;  %v8439_v62 = vpop.f32.mrf.mxu0 }
 0x439   : > { %v8501_v1 = vpop.f32.mrf.mxu1 }
 0x43a   : > { %11282 = vst [vmem:[#allocation16_spill] sm:$0xff] %v10981_v61  ;;  %v8502_v58 = vadd.f32 %v8501_v1, %v8500_v26  ;;  %v8440_v37 = vpop.f32.mrf.mxu0 }
 0x43b   : > { %v8503_v57 = vpop.f32.mrf.mxu1  ;;  %v8441_v44 = vadd.f32 %v8440_v37, %v8439_v62 }
 0x43c   : > { %v10983_v60 = vadd.f32 %v8502_v58, %v8438_v45  ;;  %v8442_v12 = vpop.f32.mrf.mxu0 }
 0x43d   : > { %v8504_v15 = vpop.f32.mrf.mxu1 }
 0x43e   : > { %11283 = vst [vmem:[#allocation17_spill] sm:$0xff] %v10983_v60  ;;  %v8505_v30 = vadd.f32 %v8504_v15, %v8503_v57  ;;  %v8443_v14 = vpop.f32.mrf.mxu0 }
 0x43f   : > { %v8506_v34 = vpop.f32.mrf.mxu1  ;;  %v8444_v8 = vadd.f32 %v8443_v14, %v8442_v12 }
 0x440   : > { %v10985_v24 = vadd.f32 %v8505_v30, %v8441_v44  ;;  %v8445_v49 = vpop.f32.mrf.mxu0 }
 0x441   : > { %v8507_v36 = vpop.f32.mrf.mxu1 }
 0x442   : > { %v8508_v40 = vadd.f32 %v8507_v36, %v8506_v34  ;;  %v8446_v5 = vpop.f32.mrf.mxu0 }
 0x443   : > { %v8509_v4 = vpop.f32.mrf.mxu1  ;;  %v8447_v13 = vadd.f32 %v8446_v5, %v8445_v49 }
 0x444   : > { %v10987_v41 = vadd.f32 %v8508_v40, %v8444_v8  ;;  %v8448_v47 = vpop.f32.mrf.mxu0 }
 0x445   : > { %v8510_v53 = vpop.f32.mrf.mxu1 }
 0x446   : > { %v8511_v7 = vadd.f32 %v8510_v53, %v8509_v4  ;;  %v8449_v6 = vpop.f32.mrf.mxu0 }
 0x447   : > { %v8512_v11 = vpop.f32.mrf.mxu1  ;;  %v8450_v50 = vadd.f32 %v8449_v6, %v8448_v47 }
 0x448   : > { %v10989_v39 = vadd.f32 %v8511_v7, %v8447_v13  ;;  %v8531_v3 = vpop.f32.mrf.mxu0 }
 0x449   : > { %v8513_v51 = vpop.f32.mrf.mxu1 }
 0x44a   : > { %v8514_v59 = vadd.f32 %v8513_v51, %v8512_v11  ;;  %v8532_v22 = vpop.f32.mrf.mxu0 }
 0x44b   : > { %v10991_v38 = vpop.f32.mrf.mxu1 }
 0x44c   : > { %v10993_v48 = vadd.f32 %v8514_v59, %v8450_v50  ;;  %v10995_v23 = vpop.f32.mrf.mxu0 }
 0x44d   : > { %v8596_v32 = vpop.f32.mrf.mxu1 }
 0x44e   : > { %v8535_v18 = vpop.f32.mrf.mxu0 }
 0x44f   : > { %v10997_v35 = vpop.f32.mrf.mxu1 }
 0x450   : > { %v8537_v9 = vpop.f32.mrf.mxu0 }
 0x451   : > { %v10999_v33 = vpop.f32.mrf.mxu1 }
 0x452   : > { %v8538_v63 = vpop.f32.mrf.mxu0 }
 0x453   : > { %v11001_v10 = vpop.f32.mrf.mxu1 }
 0x454   : > { %v8540_v0 = vpop.f32.mrf.mxu0 }
 0x455   : > { %v11003_v17 = vpop.f32.mrf.mxu1 }
 0x456   : > { %v8541_v43 = vpop.f32.mrf.mxu0 }
 0x457   : > { %v11005_v28 = vpop.f32.mrf.mxu1  ;;  %v8542_v29 = vadd.f32 %v8541_v43, %v8540_v0  ;;  %v11101_v0 = vld [vmem:[%s11265_s9] ss:$0 sm:$0xff] }
 0x458   : > { %v11007_v20 = vpop.f32.mrf.mxu0 }
 0x459   : > { %v11009_v19 = vpop.f32.mrf.mxu1 }
 0x45a   : > { %v11011_v54 = vpop.f32.mrf.mxu0 }
 0x45b   : > { %v11013_v31 = vpop.f32.mrf.mxu1 }
 0x45c   : > { %v11015_v46 = vpop.f32.mrf.mxu0 }
 0x45d   : > { %v11017_v26 = vpop.f32.mrf.mxu1 }
 0x45e   : > { %v11019_v45 = vpop.f32.mrf.mxu0 }
 0x45f   : > { %v11021_v62 = vpop.f32.mrf.mxu1 }
 0x460   : > { %v11023_v1 = vpop.f32.mrf.mxu0 }
 0x461   : > { %v11025_v58 = vpop.f32.mrf.mxu1 }
 0x462   : > { %v11027_v37 = vpop.f32.mrf.mxu0 }
 0x463   : > { %v11029_v57 = vpop.f32.mrf.mxu1 }
 0x464   : > { %v11031_v44 = vpop.f32.mrf.mxu0 }
 0x465   : > { %11284 = vst [vmem:[#allocation18_spill] sm:$0xff] %v11031_v44  ;;  %v11033_v12 = vpop.f32.mrf.mxu1 }
 0x466   : > { %11285 = vst [vmem:[#allocation19_spill] sm:$0xff] %v11033_v12  ;;  %v11035_v15 = vpop.f32.mrf.mxu0 }
 0x467   : > { %11286 = vst [vmem:[#allocation20_spill] sm:$0xff] %v11035_v15  ;;  %v11037_v30 = vpop.f32.mrf.mxu1 }
 0x468   : > { %11287 = vst [vmem:[#allocation21_spill] sm:$0xff] %v11037_v30  ;;  %v11039_v14 = vpop.f32.mrf.mxu0 }
 0x469   : > { %11288 = vst [vmem:[#allocation22_spill] sm:$0xff] %v11039_v14  ;;  %v11041_v34 = vpop.f32.mrf.mxu1 }
 0x46a   : > { %11289 = vst [vmem:[#allocation23_spill] sm:$0xff] %v11041_v34  ;;  %v11043_v8 = vpop.f32.mrf.mxu0  ;;  %v8597_v34 = vadd.f32 %v8596_v32, %v10991_v38 }
 0x46b   : > { %11290 = vst [vmem:[#allocation24_spill] sm:$0xff] %v11043_v8  ;;  %v11045_v49 = vpop.f32.mrf.mxu1  ;;  %v8539_v8 = vadd.f32 %v8538_v63, %v8537_v9 }
 0x46c   : > { %11291 = vst [vmem:[#allocation25_spill] sm:$0xff] %v11045_v49  ;;  %v11047_v36 = vpop.f32.mrf.mxu0 }
 0x46d   : > { %11292 = vst [vmem:[#allocation26_spill] sm:$0xff] %v11047_v36  ;;  %v11049_v40 = vpop.f32.mrf.mxu1  ;;  %v6500_v32 = vadd.f32 %v8539_v8, %v10965_v25 }
 0x46e   : > { %11293 = vst [vmem:[#allocation27_spill] sm:$0xff] %v11049_v40  ;;  %v11051_v5 = vpop.f32.mrf.mxu0  ;;  %v8533_v40 = vadd.f32 %v8532_v22, %v8531_v3 }
 0x46f   : > { %11294 = vst [vmem:[#allocation28_spill] sm:$0xff] %v11051_v5  ;;  %v11053_v4 = vpop.f32.mrf.mxu1 }
 0x470   : > { %11295 = vst [vmem:[#allocation29_spill] sm:$0xff] %v11053_v4  ;;  %v11055_v13 = vpop.f32.mrf.mxu0 }
 0x471   : > { %11296 = vst [vmem:[#allocation30_spill] sm:$0xff] %v11055_v13  ;;  %v11057_v47 = vpop.f32.mrf.mxu1 }
 0x472   : > { %11297 = vst [vmem:[#allocation31_spill] sm:$0xff] %v11057_v47  ;;  %v11059_v53 = vpop.f32.mrf.mxu0 }
 0x473   : > { %11298 = vst [vmem:[#allocation32_spill] sm:$0xff] %v11059_v53  ;;  %v11061_v7 = vpop.f32.mrf.mxu1 }
 0x474   : > { %11299 = vst [vmem:[#allocation33_spill] sm:$0xff] %v11061_v7  ;;  %v11063_v6 = vpop.f32.mrf.mxu0 }
 0x475   : > { %11300 = vst [vmem:[#allocation34_spill] sm:$0xff] %v11063_v6  ;;  %v11065_v11 = vpop.f32.mrf.mxu1 }
 0x476   : > { %11301 = vst [vmem:[#allocation35_spill] sm:$0xff] %v11065_v11  ;;  %v11067_v50 = vpop.f32.mrf.mxu0 }
 0x477   : > { %11302 = vst [vmem:[#allocation36_spill] sm:$0xff] %v11067_v50  ;;  %v11069_v51 = vpop.f32.mrf.mxu1 }
 0x478   : > { %11303 = vst [vmem:[#allocation37_spill] sm:$0xff] %v11069_v51  ;;  %v8567_v59 = vpop.f32.mrf.mxu0  ;;  %v6492_v51 = vadd.f32 %v8533_v40, %v10961_v56  ;;  %v8600_v56 = vadd.f32 %v10999_v33, %v10997_v35 }
 0x479   : > { %v11071_v60 = vpop.f32.mrf.mxu1 }
 0x47a   : > { %11304 = vst [vmem:[#allocation38_spill] sm:$0xff] %v11071_v60  ;;  %v8568_v61 = vpop.f32.mrf.mxu0  ;;  %v8536_v60 = vadd.f32 %v8535_v18, %v10995_v23  ;;  %v8603_v18 = vadd.f32 %v11003_v17, %v11001_v10 }
 0x47b   : > { %v8631_v4 = vpop.f32.mrf.mxu1  ;;  %v8569_v42 = vadd.f32 %v8568_v61, %v8567_v59  ;;  %v6589_v61 = vadd.f32 %v8597_v34, %v6492_v51 }
 0x47c   : > { %v8570_v13 = vpop.f32.mrf.mxu0  ;;  %v6495_v59 = vadd.f32 %v8536_v60, %v10963_v52  ;;  %v8606_v52 = vadd.f32 %v11009_v19, %v11005_v28  ;;  %v8545_v60 = vadd.f32 %v11011_v54, %v11007_v20 }
 0x47d   : > { %v8632_v2 = vpop.f32.mrf.mxu1  ;;  %v6540_v3 = vadd.f32 %v8569_v42, %v10985_v24  ;;  %v11090_v42 = vld [vmem:[%s11264_s8] ss:$0 sm:$0xff]  ;;  %v6503_v24 = vadd.f32 %v8542_v29, %v10967_v27 }
 0x47e   : > { %v8571_v47 = vpop.f32.mrf.mxu0  ;;  %v8633_v22 = vadd.f32 %v8632_v2, %v8631_v4  ;;  %v6592_v27 = vadd.f32 %v8600_v56, %v6495_v59  ;;  %v6508_v4 = vadd.f32 %v8545_v60, %v10969_v16  ;;  %v6807_v60 = vld [vmem:[#allocation2 + $0x68] sm:$0xff] }
 0x47f   : > { %v8634_v5 = vpop.f32.mrf.mxu1  ;;  %v8572_v44 = vadd.f32 %v8571_v47, %v8570_v13 }
 0x480   : > { %v8573_v53 = vpop.f32.mrf.mxu0  ;;  %v6637_v33 = vadd.f32 %v8633_v22, %v6540_v3 }
 0x481   : > { %v8635_v36 = vpop.f32.mrf.mxu1  ;;  %v6543_v63 = vadd.f32 %v8572_v44, %v10987_v41  ;;  %v6600_v44 = vadd.f32 %v8606_v52, %v6503_v24 }
 0x482   : > { %v8574_v7 = vpop.f32.mrf.mxu0  ;;  %v8636_v10 = vadd.f32 %v8635_v36, %v8634_v5 }
 0x483   : > { %v8637_v6 = vpop.f32.mrf.mxu1  ;;  %v8575_v9 = vadd.f32 %v8574_v7, %v8573_v53 }
 0x484   : > { %v8576_v49 = vpop.f32.mrf.mxu0  ;;  %v6640_v13 = vadd.f32 %v8636_v10, %v6543_v63 }
 0x485   : > { %v8638_v11 = vpop.f32.mrf.mxu1  ;;  %v6548_v20 = vadd.f32 %v8575_v9, %v10989_v39  ;;  %v8609_v39 = vadd.f32 %v11017_v26, %v11013_v31 }
 0x486   : > { %v8577_v50 = vpop.f32.mrf.mxu0  ;;  %v8639_v54 = vadd.f32 %v8638_v11, %v8637_v6  ;;  %v6806_v11 = vld [vmem:[#allocation2 + $0xa8] sm:$0xff] }
 0x487   : > { %v11076_v30 = vpop.f32.mrf.mxu1  ;;  %v8578_v8 = vadd.f32 %v8577_v50, %v8576_v49  ;;  %v8548_v50 = vadd.f32 %v11019_v45, %v11015_v46  ;;  %v6605_v24 = vadd.f32 %v8609_v39, %v6508_v4  ;;  %v11306_v39 = vld [vmem:[#allocation18_spill] sm:$0xff] }
 0x488   : > { %v8659_v14 = vpop.f32.mrf.mxu0  ;;  %v6645_v22 = vadd.f32 %v8639_v54, %v6548_v20 }
 0x489   : > { %v11078_v15 = vpop.f32.mrf.mxu1 }
 0x48a   : > { %v8660_v12 = vpop.f32.mrf.mxu0 }
 0x48b   : > { %v8695_v38 = vpop.f32.mrf.mxu1  ;;  %v8661_v23 = vadd.f32 %v8660_v12, %v8659_v14  ;;  %v6597_v12 = vadd.f32 %v8603_v18, %v6500_v32  ;;  %v6794_v14 = vld [vmem:[#allocation2 + $0x60] sm:$0xff]  ;;  %v8642_v18 = vadd.f32 %v11078_v15, %v11076_v30 }
 0x48c   : > { %v8662_v2 = vpop.f32.mrf.mxu0  ;;  %v6796_v15 = vld [vmem:[#allocation2 + $0x40] sm:$0xff] }
 0x48d   : > { %v6686_v35 = vadd.f32 %v8661_v23, %v6589_v61  ;;  %v8696_v25 = vpop.f32.mrf.mxu1  ;;  %v6795_v61 = vld [vmem:[#allocation2 + $0x28] sm:$0xff] }
 0x48e   : > { %v8697_v17 = vadd.f32 %v8696_v25, %v8695_v38  ;;  %v8663_v43 = vpop.f32.mrf.mxu0  ;;  %v6551_v38 = vadd.f32 %v8578_v8, %v10993_v48  ;;  %v6808_v8 = vld [vmem:[#allocation2 + $0x30] sm:$0xff] }
 0x48f   : > { %v6755_v29 = vmul.f32 %v11090_v42, %v6686_v35  ;;  %v8698_v28 = vpop.f32.mrf.mxu1  ;;  %v8664_v19 = vadd.f32 %v8663_v43, %v8662_v2  ;;  %v8551_v43 = vadd.f32 %v11027_v37, %v11023_v1 }
 0x490   : > { %v6734_v34 = vadd.f32 %v8697_v17, %v6637_v33  ;;  %v8665_v41 = vpop.f32.mrf.mxu0  ;;  %v6511_v33 = vadd.f32 %v8548_v50, %v10971_v55 }
 0x491   : > { %v6778_v36 = vadd.f32 %v11101_v0, %v6755_v29  ;;  %v6689_v40 = vadd.f32 %v8664_v19, %v6592_v27  ;;  %v8699_v5 = vpop.f32.mrf.mxu1 }
 0x492   : > { %v6767_v47 = vmul.f32 %v11090_v42, %v6734_v34  ;;  %v8700_v53 = vadd.f32 %v8699_v5, %v8698_v28  ;;  %v8666_v7 = vpop.f32.mrf.mxu0  ;;  %v8612_v34 = vadd.f32 %v11025_v58, %v11021_v62  ;;  %v11305_v58 = vld [vmem:[#allocation19_spill] sm:$0xff] }
 0x493   : > { %v6810_v6 = vadd.f32 %v6794_v14, %v6778_v36  ;;  %v6756_v51 = vmul.f32 %v11090_v42, %v6689_v40  ;;  %v8701_v3 = vpop.f32.mrf.mxu1  ;;  %v8667_v49 = vadd.f32 %v8666_v7, %v8665_v41  ;;  %v6797_v40 = vld [vmem:[#allocation2 + $0x78] sm:$0xff]  ;;  %v8615_v7 = vadd.f32 %v11305_v58, %v11029_v57 }
 0x494   : > { %v6790_v16 = vadd.f32 %v11101_v0, %v6767_v47  ;;  %v6737_v59 = vadd.f32 %v8700_v53, %v6640_v13  ;;  %v8668_v56 = vpop.f32.mrf.mxu0  ;;  %v6516_v13 = vadd.f32 %v8551_v43, %v10973_v21  ;;  %v6608_v50 = vadd.f32 %v8612_v34, %v6511_v33  ;;  %v6809_v21 = vld [vmem:[#allocation2 + $0x58] sm:$0xff] }
 0x495   : > { %v6826_v23 = vmax.f32 %v6810_v6, 0.0  ;;  %v6779_v31 = vadd.f32 %v11101_v0, %v6756_v51  ;;  %v6694_v26 = vadd.f32 %v8667_v49, %v6597_v12  ;;  %v8702_v32 = vpop.f32.mrf.mxu1  ;;  %v6648_v12 = vadd.f32 %v8642_v18, %v6551_v38  ;;  %v11307_v6 = vld [vmem:[#allocation20_spill] sm:$0xff]  ;;  %v11308_v18 = vld [vmem:[#allocation13_spill] sm:$0xff] }
 0x496   : > { %v6822_v9 = vadd.f32 %v6806_v11, %v6790_v16  ;;  %v6768_v46 = vmul.f32 %v11090_v42, %v6737_v59  ;;  %v8703_v45 = vadd.f32 %v8702_v32, %v8701_v3  ;;  %v8669_v2 = vpop.f32.mrf.mxu0  ;;  %v8554_v11 = vadd.f32 %v11307_v6, %v11306_v39  ;;  %v11320_v58 = vld [vmem:[#allocation32_spill] sm:$0xff]  ;;  %v11321_v6 = vld [vmem:[#allocation29_spill] sm:$0xff] }
 0x497   : > { %6842 = vst [vmem:[%s9627_s28] sm:$0xff] %v6826_v23  ;;  %v6811_v52 = vadd.f32 %v6795_v61, %v6779_v31  ;;  %v6757_v48 = vmul.f32 %v11090_v42, %v6694_v26  ;;  %v8704_v35 = vpop.f32.mrf.mxu1  ;;  %v8670_v25 = vadd.f32 %v8669_v2, %v8668_v56  ;;  %v6798_v56 = vld [vmem:[#allocation2 + $0x88] sm:$0xff]  ;;  %v6613_v32 = vadd.f32 %v8615_v7, %v6516_v13 }
 0x498   : > { %v6838_v63 = vmax.f32 %v6822_v9, 0.0  ;;  %v6791_v10 = vadd.f32 %v11101_v0, %v6768_v46  ;;  %v6742_v30 = vadd.f32 %v8703_v45, %v6645_v22  ;;  %v8671_v17 = vpop.f32.mrf.mxu0  ;;  %v6519_v9 = vadd.f32 %v8554_v11, %v11308_v18  ;;  %v11309_v46 = vld [vmem:[#allocation22_spill] sm:$0xff]  ;;  %v11310_v45 = vld [vmem:[#allocation24_spill] sm:$0xff]  ;;  %v11322_v11 = vld [vmem:[#allocation31_spill] sm:$0xff] }
 0x499   : > { %v6827_v27 = vmax.f32 %v6811_v52, 0.0  ;;  %v6780_v29 = vadd.f32 %v11101_v0, %v6757_v48  ;;  %v6697_v28 = vadd.f32 %v8670_v25, %v6600_v44  ;;  %v8705_v19 = vpop.f32.mrf.mxu1  ;;  %v8557_v2 = vadd.f32 %v11310_v45, %v11309_v46  ;;  %v11312_v48 = vld [vmem:[#allocation23_spill] sm:$0xff] }
 0x49a   : > { %6854 = vst [vmem:[%s9627_s28 + $0x60] sm:$0xff] %v6838_v63  ;;  %v6823_v20 = vadd.f32 %v6807_v60, %v6791_v10  ;;  %v6769_v55 = vmul.f32 %v11090_v42, %v6742_v30  ;;  %v8706_v54 = vadd.f32 %v8705_v19, %v8704_v35  ;;  %v8672_v14 = vpop.f32.mrf.mxu0  ;;  %v11311_v60 = vld [vmem:[#allocation21_spill] sm:$0xff] }
 0x49b   : > { %6843 = vst [vmem:[%s9627_s28 + $0x8] sm:$0xff] %v6827_v27  ;;  %v6812_v41 = vadd.f32 %v6796_v15, %v6780_v29  ;;  %v6758_v1 = vmul.f32 %v11090_v42, %v6697_v28  ;;  %v8673_v37 = vadd.f32 %v8672_v14, %v8671_v17  ;;  %v8618_v35 = vadd.f32 %v11312_v48, %v11311_v60  ;;  %v6799_v15 = vld [vmem:[#allocation2 + $0x90] sm:$0xff]  ;;  %v11313_v29 = vld [vmem:[#allocation14_spill] sm:$0xff]  ;;  %v11314_v19 = vld [vmem:[#allocation25_spill] sm:$0xff] }
 0x49c   : > { %v6839_v36 = vmax.f32 %v6823_v20, 0.0  ;;  %v6792_v44 = vadd.f32 %v11101_v0, %v6769_v55  ;;  %v6745_v5 = vadd.f32 %v8706_v54, %v6648_v12  ;;  %v8674_v4 = vpop.f32.mrf.mxu0  ;;  %v6524_v28 = vadd.f32 %v8557_v2, %v11313_v29  ;;  %v11315_v12 = vld [vmem:[#allocation27_spill] sm:$0xff]  ;;  %v11316_v55 = vld [vmem:[#allocation26_spill] sm:$0xff]  ;;  %v11317_v54 = vld [vmem:[#allocation28_spill] sm:$0xff] }
 0x49d   : > { %v6828_v47 = vmax.f32 %v6812_v41, 0.0  ;;  %v6781_v53 = vadd.f32 %v11101_v0, %v6758_v1  ;;  %v6702_v62 = vadd.f32 %v8673_v37, %v6605_v24  ;;  %v8621_v20 = vadd.f32 %v11315_v12, %v11314_v19  ;;  %v6803_v19 = vld [vmem:[#allocation2 + $0x50] sm:$0xff] }
 0x49e   : > { %6855 = vst [vmem:[%s9627_s28 + $0x68] sm:$0xff] %v6839_v36  ;;  %v6824_v51 = vadd.f32 %v6808_v8, %v6792_v44  ;;  %v6770_v3 = vmul.f32 %v11090_v42, %v6745_v5  ;;  %v8675_v49 = vpop.f32.mrf.mxu0  ;;  %v8560_v14 = vadd.f32 %v11317_v54, %v11316_v55  ;;  %v6616_v41 = vadd.f32 %v8618_v35, %v6519_v9  ;;  %v6800_v36 = vld [vmem:[#allocation2 + $0x18] sm:$0xff] }
 0x49f   : > { %6844 = vst [vmem:[%s9627_s28 + $0x10] sm:$0xff] %v6828_v47  ;;  %v6813_v22 = vadd.f32 %v6797_v40, %v6781_v53  ;;  %v6759_v16 = vmul.f32 %v11090_v42, %v6702_v62  ;;  %v8676_v61 = vadd.f32 %v8675_v49, %v8674_v4  ;;  %v6621_v13 = vadd.f32 %v8621_v20, %v6524_v28  ;;  %v11318_v47 = vld [vmem:[#allocation15_spill] sm:$0xff]  ;;  %v11319_v62 = vld [vmem:[#allocation30_spill] sm:$0xff] }
 0x4a0   : > { %v6840_v59 = vmax.f32 %v6824_v51, 0.0  ;;  %v6793_v57 = vadd.f32 %v11101_v0, %v6770_v3  ;;  %v8677_v38 = vpop.f32.mrf.mxu0  ;;  %v6527_v53 = vadd.f32 %v8560_v14, %v11318_v47  ;;  %v8563_v7 = vadd.f32 %v11320_v58, %v11319_v62 }
 0x4a1   : > { %v6829_v23 = vmax.f32 %v6813_v22, 0.0  ;;  %v6782_v31 = vadd.f32 %v11101_v0, %v6759_v16  ;;  %v6705_v26 = vadd.f32 %v8676_v61, %v6608_v50  ;;  %v8624_v51 = vadd.f32 %v11322_v11, %v11321_v6  ;;  %v6801_v22 = vld [vmem:[#allocation2 + $0x98] sm:$0xff] }
 0x4a2   : > { %6856 = vst [vmem:[%s9627_s28 + $0x70] sm:$0xff] %v6840_v59  ;;  %v6825_v24 = vadd.f32 %v6809_v21, %v6793_v57  ;;  %v8678_v52 = vpop.f32.mrf.mxu0  ;;  %v11323_v57 = vld [vmem:[#allocation16_spill] sm:$0xff] }
 0x4a3   : > { %6845 = vst [vmem:[%s9627_s28 + $0x18] sm:$0xff] %v6829_v23  ;;  %v6814_v25 = vadd.f32 %v6798_v56, %v6782_v31  ;;  %v6760_v33 = vmul.f32 %v11090_v42, %v6705_v26  ;;  %v8679_v63 = vadd.f32 %v8678_v52, %v8677_v38  ;;  %v6532_v56 = vadd.f32 %v8563_v7, %v11323_v57  ;;  %v11324_v38 = vld [vmem:[#allocation33_spill] sm:$0xff]  ;;  %v11325_v23 = vld [vmem:[#allocation35_spill] sm:$0xff]  ;;  %v11326_v26 = vld [vmem:[#allocation34_spill] sm:$0xff] }
 0x4a4   : > { %v6841_v10 = vmax.f32 %v6825_v24, 0.0  ;;  %v8680_v30 = vpop.f32.mrf.mxu0  ;;  %v8627_v31 = vadd.f32 %v11325_v23, %v11324_v38  ;;  %v6624_v46 = vadd.f32 %v8624_v51, %v6527_v53  ;;  %v6802_v52 = vld [vmem:[#allocation2 + $0x38] sm:$0xff] }
 0x4a5   : > { %v6830_v17 = vmax.f32 %v6814_v25, 0.0  ;;  %v6783_v43 = vadd.f32 %v11101_v0, %v6760_v33  ;;  %v6710_v27 = vadd.f32 %v8679_v63, %v6613_v32  ;;  %v11327_v32 = vld [vmem:[#allocation36_spill] sm:$0xff]  ;;  %v11328_v63 = vld [vmem:[#allocation17_spill] sm:$0xff] }
 0x4a6   : > { %6857 = vst [vmem:[%s9627_s28 + $0x78] sm:$0xff] %v6841_v10  ;;  %v8681_v34 = vpop.f32.mrf.mxu0  ;;  %v8566_v18 = vadd.f32 %v11327_v32, %v11326_v26  ;;  %v6629_v33 = vadd.f32 %v8627_v31, %v6532_v56 }
 0x4a7   : > { %6846 = vst [vmem:[%s9627_s28 + $0x20] sm:$0xff] %v6830_v17  ;;  %v6815_v8 = vadd.f32 %v6799_v15, %v6783_v43  ;;  %v6761_v1 = vmul.f32 %v11090_v42, %v6710_v27  ;;  %v8682_v37 = vadd.f32 %v8681_v34, %v8680_v30  ;;  %v11329_v30 = vld [vmem:[#allocation37_spill] sm:$0xff]  ;;  %v11330_v17 = vld [vmem:[#allocation38_spill] sm:$0xff] }
 0x4a8   : > { %v8683_v44 = vpop.f32.mrf.mxu0  ;;  %v6535_v10 = vadd.f32 %v8566_v18, %v11328_v63  ;;  %v8630_v43 = vadd.f32 %v11330_v17, %v11329_v30 }
 0x4a9   : > { %v6831_v40 = vmax.f32 %v6815_v8, 0.0  ;;  %v6784_v5 = vadd.f32 %v11101_v0, %v6761_v1  ;;  %v6713_v4 = vadd.f32 %v8682_v37, %v6616_v41  ;;  %v6804_v37 = vld [vmem:[#allocation2 + $0x70] sm:$0xff] }
 0x4aa   : > { %v8684_v39 = vpop.f32.mrf.mxu0  ;;  %v6632_v34 = vadd.f32 %v8630_v43, %v6535_v10 }
 0x4ab   : > { %6847 = vst [vmem:[%s9627_s28 + $0x28] sm:$0xff] %v6831_v40  ;;  %v6816_v3 = vadd.f32 %v6800_v36, %v6784_v5  ;;  %v6762_v49 = vmul.f32 %v11090_v42, %v6713_v4  ;;  %v8685_v50 = vadd.f32 %v8684_v39, %v8683_v44 }
 0x4ac   : > { %v8686_v21 = vpop.f32.mrf.mxu0 }
 0x4ad   : > { %v6832_v16 = vmax.f32 %v6816_v3, 0.0  ;;  %v6785_v61 = vadd.f32 %v11101_v0, %v6762_v49  ;;  %v6718_v59 = vadd.f32 %v8685_v50, %v6621_v13  ;;  %v6805_v13 = vld [vmem:[#allocation2 + $0xa0] sm:$0xff] }
 0x4ae   : > { %v8687_v9 = vpop.f32.mrf.mxu0 }
 0x4af   : > { %6848 = vst [vmem:[%s9627_s28 + $0x30] sm:$0xff] %v6832_v16  ;;  %v6817_v45 = vadd.f32 %v6801_v22, %v6785_v61  ;;  %v6763_v2 = vmul.f32 %v11090_v42, %v6718_v59  ;;  %v8688_v24 = vadd.f32 %v8687_v9, %v8686_v21 }
 0x4b0   : > { %v8689_v60 = vpop.f32.mrf.mxu0 }
 0x4b1   : > { %v6833_v48 = vmax.f32 %v6817_v45, 0.0  ;;  %v6786_v35 = vadd.f32 %v11101_v0, %v6763_v2  ;;  %v6721_v25 = vadd.f32 %v8688_v24, %v6624_v46 }
 0x4b2   : > { %v8690_v15 = vpop.f32.mrf.mxu0 }
 0x4b3   : > { %6849 = vst [vmem:[%s9627_s28 + $0x38] sm:$0xff] %v6833_v48  ;;  %v6818_v27 = vadd.f32 %v6802_v52, %v6786_v35  ;;  %v6764_v29 = vmul.f32 %v11090_v42, %v6721_v25  ;;  %v8691_v28 = vadd.f32 %v8690_v15, %v8689_v60 }
 0x4b4   : > { %v8692_v12 = vpop.f32.mrf.mxu0 }
 0x4b5   : > { %v6834_v20 = vmax.f32 %v6818_v27, 0.0  ;;  %v6787_v55 = vadd.f32 %v11101_v0, %v6764_v29  ;;  %v6726_v54 = vadd.f32 %v8691_v28, %v6629_v33 }
 0x4b6   : > { %v8693_v14 = vpop.f32.mrf.mxu0 }
 0x4b7   : > { %6850 = vst [vmem:[%s9627_s28 + $0x40] sm:$0xff] %v6834_v20  ;;  %v6819_v41 = vadd.f32 %v6803_v19, %v6787_v55  ;;  %v6765_v8 = vmul.f32 %v11090_v42, %v6726_v54  ;;  %v8694_v1 = vadd.f32 %v8693_v14, %v8692_v12 }
 0x4b9   : > { %v6835_v36 = vmax.f32 %v6819_v41, 0.0  ;;  %v6788_v44 = vadd.f32 %v11101_v0, %v6765_v8  ;;  %v6729_v40 = vadd.f32 %v8694_v1, %v6632_v34 }
 0x4bb   : > { %6851 = vst [vmem:[%s9627_s28 + $0x48] sm:$0xff] %v6835_v36  ;;  %v6820_v5 = vadd.f32 %v6804_v37, %v6788_v44  ;;  %v6766_v4 = vmul.f32 %v11090_v42, %v6729_v40 }
 0x4bd   : > { %v6836_v47 = vmax.f32 %v6820_v5, 0.0  ;;  %v6789_v53 = vadd.f32 %v11101_v0, %v6766_v4 }
 0x4bf   : > { %6852 = vst [vmem:[%s9627_s28 + $0x50] sm:$0xff] %v6836_v47  ;;  %v6821_v62 = vadd.f32 %v6805_v13, %v6789_v53 }
 0x4c1   : > { %v6837_v58 = vmax.f32 %v6821_v62, 0.0 }
 0x4c3   : > { %6853 = vst [vmem:[%s9627_s28 + $0x58] sm:$0xff] %v6837_v58 }
 0x4c4   : > { %9305 = shalt.err (!%p9302_p9)
}
 0x4c5   : > { %s9306_s28 = scalar_lea.hbm %s11200_s30, 2048  ;;  %s9310_s29 = scalar_lea.hbm %s11266_s10, 8192 }
 0x4c6   : > { %p9307_p10 = scmp.ne.s32.totalorder %s11200_s30, %s9306_s28  ;;  %p9311_p13 = scmp.lt.s32.totalorder %s11200_s30, %s11266_s10 }
 0x4c7   : > { %p9312_p0 = scmp.lt.s32.totalorder %s9310_s29, %s9306_s28 }
 0x4c8   : > { %p9308_p11 = pnand %p9307_p10, %p9500_p3 }
 0x4c9   : > { %p9313_p1 = por %p9312_p0, %p9311_p13 }
 0x4ca   : > { %p9309_p12 = pneg %p9308_p11 }
 0x4cc   : > { %p9314_p2 = pnand %p9313_p1, %p9309_p12 }
 0x4ce   : > { %9317 = shalt.err (!%p9314_p2)
}
 0x4cf   : > { %s9392_s18 = smov 128   ;;  %s9393_s12 = smov 8  }
 0x4d0   : > { %8764 = dma.vmem_to_hbm [thread:$0]  (%p9500_p3), %s11195_s25, 2048, %s11200_s30, %s11205_s11, %s9392_s18, %s9392_s18, %s9393_s12  }
 0x4d1 PF: > { %p8770_p4 = scmp.ge.s32.totalorder %s9384_s20, 2  ;;  %s6890_s21 = sand.u32 1, %s9356_s13  }
 0x4d2   : > { %s6891_s22 = scalar_lea.sflag [#allocation6], %s6890_s21 }
 0x4d3   : > { %p8767_p5 = pnand %p8770_p4, %p9509_p8 }
 0x4d5   : > { %p8768_p6 = pneg %p8767_p5 }
 0x4d7   : > { %9351 = dma.done.wait (%p8768_p6), %s6891_s22, 2048  }
 0x4d8   : > { %9353 = vsyncadd (%p8768_p6), %s6891_s22, 4294965248  ;;  %s23_s20 = sadd.s32 1, %s9384_s20   ;;  %s11332_s19 = sld [smem:[#allocation12_spill]] }
 0x4d9   : > { %p20_p7 = scmp.ge.s32.totalorder %s23_s20, 6   ;;  %s11333_s16 = sld [smem:[#allocation8_spill]] }
 0x4da   : > { %s11334_s17 = sld [smem:[#allocation9_spill]]  ;;  %s11337_s13 = smov %s9360_s14 }
 0x4db   : > { %s11335_s18 = sld [smem:[#allocation10_spill]]  ;;  %s11338_s14 = smov %s9364_s15 }
 0x4dc   : > { %s11336_s26 = sld [smem:[#allocation11_spill]] }
 0x4de   : > { %s11339_s15 = smov %s11332_s19  ;;  %22 = sbr.rel (!%p20_p7) target bundleno = 5 (0x5), region = 117 }
 0x4e2   : > { %s11340_s19 = smov %s11336_s26 }
 0x4e3   :  { %6896 = vsyncpa [#allocation6], 1 }
 0x4e4   :  { %6898 = vsyncpa [#allocation6 + $0x1], 1 }

</bundles_post_ra>
